<compile_context>
chip_gen: v7x
topology: tpu7x:2x2x1
jax: 0.10.0
libtpu: 0.0.40
codegen_flags: <defaults>
</compile_context>

<pallas_src>
import jax
import jax.numpy as jnp
from jax.experimental import pallas as pl
from jax.experimental.pallas import tpu as pltpu


def _round_up(x, m):
    return (x + m - 1) // m * m


def _row_tile(n, preferred, multiple=8):
    """Largest row tile <= preferred that divides n and is a multiple of `multiple`."""
    t = min(preferred, n)
    t -= t % multiple
    while t >= multiple:
        if n % t == 0:
            return t
        t -= multiple
    return n  # fall back to the full extent (block == array dim is always legal)


def _pick_tc(T, max_tc=32):
    """Largest time chunk <= max_tc dividing T; prefer multiples of 16 (bf16 tiling)."""
    for mult in (16, 8):
        t = min(max_tc, T)
        t -= t % mult
        while t >= mult:
            if T % t == 0:
                return t
            t -= mult
    return T


# ----------------------------------------------------------------------------
# Kernel 1: hoisted input projection  gates_x = x @ W_ih + (b_ih + b_hh)
# One large MXU-friendly GEMM over all B*T rows, row-tiled.
# ----------------------------------------------------------------------------
def proj_kernel(x_ref, w_ref, b_ref, o_ref):
    # x is already bf16 (embedding stored bf16); f32 accumulate + bias.
    o_ref[...] = (jnp.dot(x_ref[...], w_ref[...],
                          preferred_element_type=jnp.float32)
                  + b_ref[...])


def run_input_projection(x_flat, w_ih_p, b_p):
    """x_flat: (N, E) bf16. w_ih_p: (E, 4Hp) bf16. b_p: (1, 4Hp) f32."""
    N, E = x_flat.shape
    G = w_ih_p.shape[1]
    tn = _row_tile(N, preferred=512, multiple=16)
    return pl.pallas_call(
        proj_kernel,
        out_shape=jax.ShapeDtypeStruct((N, G), jnp.float32),
        grid_spec=pltpu.PrefetchScalarGridSpec(
            num_scalar_prefetch=0,
            grid=(N // tn,),
            in_specs=[
                pl.BlockSpec((tn, E), lambda i: (i, 0)),
                pl.BlockSpec((E, G), lambda i: (0, 0)),   # resident weight
                pl.BlockSpec((1, G), lambda i: (0, 0)),   # resident bias
            ],
            out_specs=pl.BlockSpec((tn, G), lambda i: (i, 0)),
        ),
        compiler_params=pltpu.CompilerParams(
            dimension_semantics=("parallel",)),
    )(x_flat, w_ih_p, b_p)


# ----------------------------------------------------------------------------
# Kernel 2: LSTM recurrence over time chunks.  Per timestep only the small
# recurrent matmul h_prev @ W_hh remains; x-projection already folded into gx.
# PyTorch gate order: i, f, g, o -- each gate occupies a 128-aligned Hp block.
# h is carried in bf16 (its rounded value is all that the matmul and the
# output ever see); c stays f32.  The chunk's outputs are written as ONE dense
# (B, tc, Hp) bf16 block store (no per-timestep masked partial stores).
# ----------------------------------------------------------------------------
def lstm_recurrent_kernel(gx_ref, whh_ref, out_ref, h_scr, c_scr):
    @pl.when(pl.program_id(0) == 0)
    def _():
        h_scr[...] = jnp.zeros_like(h_scr)
        c_scr[...] = jnp.zeros_like(c_scr)

    Hp = h_scr.shape[1]
    tc = out_ref.shape[1]                  # timesteps in this chunk (static)

    gx = gx_ref[...]                       # (B, tc, 4Hp) f32 -- one dense load
    w_hh = whh_ref[...]                    # (Hp, 4Hp) bf16 -- hoisted
    h = h_scr[...]                         # (B, Hp) bf16, carried in registers
    c = c_scr[...]                         # (B, Hp) f32

    hs = []
    for tau in range(tc):                  # static unroll inside the chunk
        gates = gx[:, tau, :] + jnp.dot(h, w_hh,
                                        preferred_element_type=jnp.float32)
        i_g = jax.nn.sigmoid(gates[:, 0 * Hp:1 * Hp])    # lane-aligned slices
        f_g = jax.nn.sigmoid(gates[:, 1 * Hp:2 * Hp])
        g_g = jnp.tanh(gates[:, 2 * Hp:3 * Hp])
        o_g = jax.nn.sigmoid(gates[:, 3 * Hp:4 * Hp])

        c = f_g * c + i_g * g_g
        h = (o_g * jnp.tanh(c)).astype(jnp.bfloat16)
        hs.append(h)

    h_scr[...] = h                          # carry across chunks (once)
    c_scr[...] = c
    out_ref[...] = jnp.stack(hs, axis=1)    # single dense bf16 block store


def run_lstm(gates_x, w_hh_p):
    """gates_x: (B, T, 4Hp) f32. w_hh_p: (Hp, 4Hp) bf16. Returns (B, T, Hp) bf16."""
    B, T, G = gates_x.shape
    Hp = G // 4
    tc = _pick_tc(T)
    return pl.pallas_call(
        lstm_recurrent_kernel,
        out_shape=jax.ShapeDtypeStruct((B, T, Hp), jnp.bfloat16),
        grid_spec=pltpu.PrefetchScalarGridSpec(
            num_scalar_prefetch=0,
            grid=(T // tc,),
            in_specs=[
                pl.BlockSpec((B, tc, G), lambda c: (0, c, 0)),
                pl.BlockSpec((Hp, G), lambda c: (0, 0)),   # resident W_hh
            ],
            out_specs=pl.BlockSpec((B, tc, Hp), lambda c: (0, c, 0)),
            scratch_shapes=[
                pltpu.VMEM((B, Hp), jnp.bfloat16),   # h carried across chunks
                pltpu.VMEM((B, Hp), jnp.float32),    # c carried across chunks
            ],
        ),
        compiler_params=pltpu.CompilerParams(
            dimension_semantics=("arbitrary",)),   # sequential time axis
    )(gates_x, w_hh_p)


# ----------------------------------------------------------------------------
# Kernel 3: final Linear + log_softmax, row-tiled over N = B*T rows.
# Vocab is padded to Vp = multiple of 128 (zero weight cols, -1e30 bias) so
# both outputs are lane-dense; the wrapper slices back to V.
# (The module spec returns BOTH log_probas and logits, so both are emitted.)
# ----------------------------------------------------------------------------
def fc_logsoftmax_kernel(h_ref, w_ref, b_ref, logp_ref, logits_ref):
    logits = (jnp.dot(h_ref[...], w_ref[...],
                      preferred_element_type=jnp.float32)
              + b_ref[...])                            # (tn, Vp) f32
    m = jnp.max(logits, axis=-1, keepdims=True)
    shifted = logits - m
    lse = jnp.log(jnp.sum(jnp.exp(shifted), axis=-1, keepdims=True))
    logp_ref[...] = shifted - lse
    logits_ref[...] = logits


def run_fc_logsoftmax(h_flat, w_fc_p, b_fc_p):
    """h_flat: (N, Hp) bf16. w_fc_p: (Hp, Vp) bf16. b_fc_p: (1, Vp) f32."""
    N, Hp = h_flat.shape
    Vp = w_fc_p.shape[1]
    tn = _row_tile(N, preferred=256, multiple=16)
    return pl.pallas_call(
        fc_logsoftmax_kernel,
        out_shape=(jax.ShapeDtypeStruct((N, Vp), jnp.float32),
                   jax.ShapeDtypeStruct((N, Vp), jnp.float32)),
        grid_spec=pltpu.PrefetchScalarGridSpec(
            num_scalar_prefetch=0,
            grid=(N // tn,),
            in_specs=[
                pl.BlockSpec((tn, Hp), lambda i: (i, 0)),
                pl.BlockSpec((Hp, Vp), lambda i: (0, 0)),   # resident weight
                pl.BlockSpec((1, Vp), lambda i: (0, 0)),    # resident bias
            ],
            out_specs=[
                pl.BlockSpec((tn, Vp), lambda i: (i, 0)),
                pl.BlockSpec((tn, Vp), lambda i: (i, 0)),
            ],
        ),
        compiler_params=pltpu.CompilerParams(
            dimension_semantics=("parallel",)),
    )(h_flat, w_fc_p, b_fc_p)


# ----------------------------------------------------------------------------
# Full model forward (gather glue in plain JAX, hot paths in Pallas).
# ----------------------------------------------------------------------------
@jax.jit
def lstm_model_forward(tokens, params):
    V = params["embedding"].shape[0]                        # static under jit
    emb = jnp.take(params["embedding"], tokens, axis=0)     # (B, T, E) bf16 gather
    B, T, E = emb.shape
    # Dropout with p=0 is identity.

    # Stage 1 (hoisted): one big GEMM for the input projection + combined bias.
    gx_flat = run_input_projection(emb.reshape(B * T, E),
                                   params["w_ih_p"], params["b_p"])
    gates_x = gx_flat.reshape(B, T, gx_flat.shape[1])       # (B, T, 4Hp), free reshape

    # Stage 2: sequential recurrence over time chunks (batch-first, no transposes).
    out_bth = run_lstm(gates_x, params["w_hh_p"])            # (B, T, Hp) bf16
    h_flat = out_bth.reshape(B * T, out_bth.shape[-1])       # (B*T, Hp), free reshape

    # Stage 3: FC + log_softmax over the 128-padded vocab; slice back to V.
    logp_p, logits_p = run_fc_logsoftmax(h_flat, params["w_fc_p"], params["b_fc_p"])
    return logp_p[:, :V], logits_p[:, :V]


def init_params(key, num_tokens, emb_size, hidden_size):
    ks = jax.random.split(key, 7)
    H = hidden_size
    Hp = _round_up(H, 128)          # lane-aligned padded hidden size
    Vp = _round_up(num_tokens, 128)  # lane-aligned padded vocab size
    bound = 1.0 / jnp.sqrt(jnp.float32(H))
    # nn.Embedding default: N(0, 1)
    embedding = jax.random.normal(ks[0], (num_tokens, emb_size), jnp.float32)
    # nn.LSTM: weight_ih (4H, E), weight_hh (4H, H), biases (4H,), U(-b, b)
    w_ih = jax.random.uniform(ks[1], (4 * H, emb_size), jnp.float32, -bound, bound)
    w_hh = jax.random.uniform(ks[2], (4 * H, H), jnp.float32, -bound, bound)
    b_ih = jax.random.uniform(ks[3], (4 * H,), jnp.float32, -bound, bound)
    b_hh = jax.random.uniform(ks[4], (4 * H,), jnp.float32, -bound, bound)
    # nn.Linear: weight (V, H), bias (V,)
    w_fc = jax.random.uniform(ks[5], (num_tokens, H), jnp.float32, -bound, bound)
    b_fc = jax.random.uniform(ks[6], (num_tokens,), jnp.float32, -bound, bound)

    # Pad hidden dim to Hp; each gate gets its own 128-aligned Hp-wide block.
    # Padded units: zero weights + zero bias -> their h/c remain exactly 0.
    b = b_ih + b_hh
    w_ih_p = jnp.zeros((emb_size, 4 * Hp), jnp.float32)
    w_hh_p = jnp.zeros((Hp, 4 * Hp), jnp.float32)
    b_p = jnp.zeros((1, 4 * Hp), jnp.float32)
    for g in range(4):
        w_ih_p = w_ih_p.at[:, g * Hp:g * Hp + H].set(w_ih[g * H:(g + 1) * H, :].T)
        w_hh_p = w_hh_p.at[:H, g * Hp:g * Hp + H].set(w_hh[g * H:(g + 1) * H, :].T)
        b_p = b_p.at[0, g * Hp:g * Hp + H].set(b[g * H:(g + 1) * H])
    # Pad vocab dim to Vp: zero weight columns, -1e30 bias so log_softmax over
    # the padded width is exact for the real columns (padded ones are sliced off).
    w_fc_p = jnp.zeros((Hp, Vp), jnp.float32).at[:H, :num_tokens].set(w_fc.T)
    b_fc_p = jnp.full((1, Vp), -1e30, jnp.float32).at[0, :num_tokens].set(b_fc)

    return {
        "embedding": embedding.astype(jnp.bfloat16),   # (V, E) bf16
        "w_ih_p": w_ih_p.astype(jnp.bfloat16),          # (E, 4Hp) bf16
        "w_hh_p": w_hh_p.astype(jnp.bfloat16),          # (Hp, 4Hp) bf16
        "b_p": b_p,                                     # (1, 4Hp) f32 (b_ih + b_hh)
        "w_fc_p": w_fc_p.astype(jnp.bfloat16),          # (Hp, Vp) bf16
        "b_fc_p": b_fc_p,                               # (1, Vp) f32, -1e30 padding
    }


# Pure-JAX reference using the SAME bf16-rounded weights / activation casts,
# to validate the kernels without bf16-vs-f32 reference drift.
@jax.jit
def reference_forward(tokens, params):
    V = params["embedding"].shape[0]
    emb = jnp.take(params["embedding"], tokens, axis=0).astype(jnp.float32)
    B, T, E = emb.shape
    w_ih = params["w_ih_p"].astype(jnp.float32)
    w_hh = params["w_hh_p"].astype(jnp.float32)
    Hp = w_hh.shape[0]
    gx = (emb.reshape(B * T, E) @ w_ih + params["b_p"]).reshape(B, T, 4 * Hp)

    def step(carry, g_t):
        h, c = carry
        hb = h.astype(jnp.bfloat16).astype(jnp.float32)   # h is rounded before W_hh
        gates = g_t + hb @ w_hh
        i = jax.nn.sigmoid(gates[:, 0 * Hp:1 * Hp])
        f = jax.nn.sigmoid(gates[:, 1 * Hp:2 * Hp])
        g = jnp.tanh(gates[:, 2 * Hp:3 * Hp])
        o = jax.nn.sigmoid(gates[:, 3 * Hp:4 * Hp])
        c = f * c + i * g
        h = o * jnp.tanh(c)
        return (h, c), h

    h0 = jnp.zeros((B, Hp), jnp.float32)
    _, hs = jax.lax.scan(step, (h0, h0), jnp.transpose(gx, (1, 0, 2)))
    out = jnp.transpose(hs, (1, 0, 2)).reshape(B * T, Hp)
    hb = out.astype(jnp.bfloat16).astype(jnp.float32)     # FC sees bf16 h
    w_fc = params["w_fc_p"].astype(jnp.float32)
    logits = (hb @ w_fc + params["b_fc_p"])[:, :V]
    return jax.nn.log_softmax(logits, axis=-1), logits


if __name__ == "__main__":
    NUM_TOKENS = 64
    EMB_SIZE = 16
    HIDDEN = 32
    B, T = 2, 16

    key = jax.random.PRNGKey(0)
    k_tok, k_par = jax.random.split(key)
    tokens = jax.random.randint(k_tok, (B, T), 0, NUM_TOKENS, dtype=jnp.int32)
    params = init_params(k_par, NUM_TOKENS, EMB_SIZE, HIDDEN)

    log_probas, logits = lstm_model_forward(tokens, params)
    jax.block_until_ready((log_probas, logits))

    assert log_probas.shape == (B * T, NUM_TOKENS)
    assert logits.shape == (B * T, NUM_TOKENS)
    assert bool(jnp.all(jnp.isfinite(log_probas)))
    # log_softmax sanity: rows exponentiate and sum to 1.
    assert bool(jnp.allclose(jnp.sum(jnp.exp(log_probas), axis=-1), 1.0, atol=1e-4))

    # End-to-end numerical check against the pure-JAX reference.
    ref_logp, ref_logits = reference_forward(tokens, params)
    assert bool(jnp.allclose(logits, ref_logits, atol=1e-2, rtol=1e-2))
    assert bool(jnp.allclose(log_probas, ref_logp, atol=1e-2, rtol=1e-2))

    print("KERNEL_OK")
</pallas_src>

<mosaic_0001>
module attributes {stable_mosaic.version = 11 : i64} {
  func.func @proj_kernel(%arg0: i32, %arg1: memref<32x16xbf16, #tpu.memory_space<vmem>>, %arg2: memref<16x512xbf16, #tpu.memory_space<vmem>>, %arg3: memref<1x512xf32, #tpu.memory_space<vmem>>, %arg4: memref<32x512xf32, #tpu.memory_space<vmem>>) attributes {dimension_semantics = [#tpu.dimension_semantics<parallel>], iteration_bounds = array<i64: 1>, scalar_prefetch = 0 : i64, scratch_operands = 0 : i64, tpu.core_type = #tpu.core_type<tc>, window_params = [{transform_indices = @transform_0, window_bounds = array<i64: 32, 16>}, {pipeline_mode = #tpu.pipeline_mode<synchronous>, transform_indices = @transform_1, window_bounds = array<i64: 16, 512>}, {pipeline_mode = #tpu.pipeline_mode<synchronous>, transform_indices = @transform_2, window_bounds = array<i64: 1, 512>}, {transform_indices = @transform_3, window_bounds = array<i64: 32, 512>}]} {
    %c0 = arith.constant 0 : index
    %c0_0 = arith.constant 0 : index
    %0 = vector.load %arg1[%c0, %c0_0] : memref<32x16xbf16, #tpu.memory_space<vmem>>, vector<32x16xbf16>
    %c0_1 = arith.constant 0 : index
    %c0_2 = arith.constant 0 : index
    %1 = vector.load %arg2[%c0_1, %c0_2] : memref<16x512xbf16, #tpu.memory_space<vmem>>, vector<16x512xbf16>
    %cst = arith.constant dense<0.000000e+00> : vector<32x512xf32>
    %2 = tpu.matmul %0, %1, %cst {dimension_numbers = #tpu.dot_dimension_numbers<[1], [0], [0], [1], [0, 0, 1, 1], [], []>} : vector<32x16xbf16>, vector<16x512xbf16>, vector<32x512xf32> -> vector<32x512xf32>
    %c0_3 = arith.constant 0 : index
    %c0_4 = arith.constant 0 : index
    %3 = vector.load %arg3[%c0_3, %c0_4] : memref<1x512xf32, #tpu.memory_space<vmem>>, vector<1x512xf32>
    %4 = vector.broadcast %3 : vector<1x512xf32> to vector<32x512xf32>
    %5 = arith.addf %2, %4 : vector<32x512xf32>
    %c0_5 = arith.constant 0 : index
    %c0_6 = arith.constant 0 : index
    %6 = vector.load %arg4[%c0_5, %c0_6] : memref<32x512xf32, #tpu.memory_space<vmem>>, vector<32x512xf32>
    tpu.vector_store %arg4[%c0_5, %c0_6], %5 {strides = array<i32>} : memref<32x512xf32, #tpu.memory_space<vmem>>, vector<32x512xf32>,
    return
  }
  func.func @transform_0(%arg0: i32) -> (i32, i32) {
    %c0_i32 = arith.constant 0 : i32
    %c0_i32_0 = arith.constant 0 : i32
    return %arg0, %c0_i32 : i32, i32
  }
  func.func @transform_1(%arg0: i32) -> (i32, i32) {
    %c0_i32 = arith.constant 0 : i32
    %c0_i32_0 = arith.constant 0 : i32
    %c0_i32_1 = arith.constant 0 : i32
    return %c0_i32, %c0_i32_0 : i32, i32
  }
  func.func @transform_2(%arg0: i32) -> (i32, i32) {
    %c0_i32 = arith.constant 0 : i32
    %c0_i32_0 = arith.constant 0 : i32
    %c0_i32_1 = arith.constant 0 : i32
    return %c0_i32, %c0_i32_0 : i32, i32
  }
  func.func @transform_3(%arg0: i32) -> (i32, i32) {
    %c0_i32 = arith.constant 0 : i32
    %c0_i32_0 = arith.constant 0 : i32
    return %arg0, %c0_i32 : i32, i32
  }
}

module attributes {stable_mosaic.version = 11 : i64} {
  func.func @fc_logsoftmax_kernel(%arg0: i32, %arg1: memref<32x128xbf16, #tpu.memory_space<vmem>>, %arg2: memref<128x128xbf16, #tpu.memory_space<vmem>>, %arg3: memref<1x128xf32, #tpu.memory_space<vmem>>, %arg4: memref<32x128xf32, #tpu.memory_space<vmem>>, %arg5: memref<32x128xf32, #tpu.memory_space<vmem>>) attributes {dimension_semantics = [#tpu.dimension_semantics<parallel>], iteration_bounds = array<i64: 1>, scalar_prefetch = 0 : i64, scratch_operands = 0 : i64, tpu.core_type = #tpu.core_type<tc>, window_params = [{transform_indices = @transform_0, window_bounds = array<i64: 32, 128>}, {pipeline_mode = #tpu.pipeline_mode<synchronous>, transform_indices = @transform_1, window_bounds = array<i64: 128, 128>}, {pipeline_mode = #tpu.pipeline_mode<synchronous>, transform_indices = @transform_2, window_bounds = array<i64: 1, 128>}, {transform_indices = @transform_3, window_bounds = array<i64: 32, 128>}, {transform_indices = @transform_4, window_bounds = array<i64: 32, 128>}]} {
    %c0 = arith.constant 0 : index
    %c0_0 = arith.constant 0 : index
    %0 = vector.load %arg1[%c0, %c0_0] : memref<32x128xbf16, #tpu.memory_space<vmem>>, vector<32x128xbf16>
    %c0_1 = arith.constant 0 : index
    %c0_2 = arith.constant 0 : index
    %1 = vector.load %arg2[%c0_1, %c0_2] : memref<128x128xbf16, #tpu.memory_space<vmem>>, vector<128x128xbf16>
    %cst = arith.constant dense<0.000000e+00> : vector<32x128xf32>
    %2 = tpu.matmul %0, %1, %cst {dimension_numbers = #tpu.dot_dimension_numbers<[1], [0], [0], [1], [0, 0, 1, 1], [], []>} : vector<32x128xbf16>, vector<128x128xbf16>, vector<32x128xf32> -> vector<32x128xf32>
    %c0_3 = arith.constant 0 : index
    %c0_4 = arith.constant 0 : index
    %3 = vector.load %arg3[%c0_3, %c0_4] : memref<1x128xf32, #tpu.memory_space<vmem>>, vector<1x128xf32>
    %4 = vector.broadcast %3 : vector<1x128xf32> to vector<32x128xf32>
    %5 = arith.addf %2, %4 : vector<32x128xf32>
    %cst_5 = arith.constant dense<0xFF800000> : vector<32xf32>
    %6 = vector.multi_reduction <maximumf>, %5, %cst_5 [1] : vector<32x128xf32> to vector<32xf32>
    %7 = vector.shape_cast %6 : vector<32xf32> to vector<32x1xf32>
    %8 = vector.broadcast %7 : vector<32x1xf32> to vector<32x128xf32>
    %9 = arith.subf %5, %8 : vector<32x128xf32>
    %10 = math.exp %9 : vector<32x128xf32>
    %cst_6 = arith.constant dense<0.000000e+00> : vector<32xf32>
    %11 = vector.multi_reduction <add>, %10, %cst_6 [1] : vector<32x128xf32> to vector<32xf32>
    %12 = vector.shape_cast %11 : vector<32xf32> to vector<32x1xf32>
    %13 = math.log %12 : vector<32x1xf32>
    %14 = vector.broadcast %13 : vector<32x1xf32> to vector<32x128xf32>
    %15 = arith.subf %9, %14 : vector<32x128xf32>
    %c0_7 = arith.constant 0 : index
    %c0_8 = arith.constant 0 : index
    %16 = vector.load %arg4[%c0_7, %c0_8] : memref<32x128xf32, #tpu.memory_space<vmem>>, vector<32x128xf32>
    tpu.vector_store %arg4[%c0_7, %c0_8], %15 {strides = array<i32>} : memref<32x128xf32, #tpu.memory_space<vmem>>, vector<32x128xf32>,
    %c0_9 = arith.constant 0 : index
    %c0_10 = arith.constant 0 : index
    %17 = vector.load %arg5[%c0_9, %c0_10] : memref<32x128xf32, #tpu.memory_space<vmem>>, vector<32x128xf32>
    tpu.vector_store %arg5[%c0_9, %c0_10], %5 {strides = array<i32>} : memref<32x128xf32, #tpu.memory_space<vmem>>, vector<32x128xf32>,
    return
  }
  func.func @transform_0(%arg0: i32) -> (i32, i32) {
    %c0_i32 = arith.constant 0 : i32
    %c0_i32_0 = arith.constant 0 : i32
    return %arg0, %c0_i32 : i32, i32
  }
  func.func @transform_1(%arg0: i32) -> (i32, i32) {
    %c0_i32 = arith.constant 0 : i32
    %c0_i32_0 = arith.constant 0 : i32
    %c0_i32_1 = arith.constant 0 : i32
    return %c0_i32, %c0_i32_0 : i32, i32
  }
  func.func @transform_2(%arg0: i32) -> (i32, i32) {
    %c0_i32 = arith.constant 0 : i32
    %c0_i32_0 = arith.constant 0 : i32
    %c0_i32_1 = arith.constant 0 : i32
    return %c0_i32, %c0_i32_0 : i32, i32
  }
  func.func @transform_3(%arg0: i32) -> (i32, i32) {
    %c0_i32 = arith.constant 0 : i32
    %c0_i32_0 = arith.constant 0 : i32
    return %arg0, %c0_i32 : i32, i32
  }
  func.func @transform_4(%arg0: i32) -> (i32, i32) {
    %c0_i32 = arith.constant 0 : i32
    %c0_i32_0 = arith.constant 0 : i32
    return %arg0, %c0_i32 : i32, i32
  }
}

module attributes {stable_mosaic.version = 11 : i64} {
  func.func @lstm_recurrent_kernel(%arg0: i32, %arg1: memref<2x16x512xf32, #tpu.memory_space<vmem>>, %arg2: memref<128x512xbf16, #tpu.memory_space<vmem>>, %arg3: memref<2x16x128xbf16, #tpu.memory_space<vmem>>, %arg4: memref<2x128xbf16, #tpu.memory_space<vmem>>, %arg5: memref<2x128xf32, #tpu.memory_space<vmem>>) attributes {dimension_semantics = [#tpu.dimension_semantics<arbitrary>], iteration_bounds = array<i64: 1>, scalar_prefetch = 0 : i64, scratch_operands = 2 : i64, tpu.core_type = #tpu.core_type<tc>, window_params = [{transform_indices = @transform_0, window_bounds = array<i64: 2, 16, 512>}, {pipeline_mode = #tpu.pipeline_mode<synchronous>, transform_indices = @transform_1, window_bounds = array<i64: 128, 512>}, {transform_indices = @transform_2, window_bounds = array<i64: 2, 16, 128>}]} {
    %c0_i32 = arith.constant 0 : i32
    %0 = arith.cmpi eq, %arg0, %c0_i32 : i32
    %1 = arith.extui %0 : i1 to i32
    %c0_i32_0 = arith.constant 0 : i32
    %2 = arith.cmpi ne, %1, %c0_i32_0 : i32
    scf.if %2 {
      %cst_79 = arith.constant 0.000000e+00 : bf16
      %507 = vector.broadcast %cst_79 : bf16 to vector<2x128xbf16>
      %c0_80 = arith.constant 0 : index
      %c0_81 = arith.constant 0 : index
      %508 = vector.load %arg4[%c0_80, %c0_81] : memref<2x128xbf16, #tpu.memory_space<vmem>>, vector<2x128xbf16>
      tpu.vector_store %arg4[%c0_80, %c0_81], %507 {strides = array<i32>} : memref<2x128xbf16, #tpu.memory_space<vmem>>, vector<2x128xbf16>,
      %cst_82 = arith.constant 0.000000e+00 : f32
      %509 = vector.broadcast %cst_82 : f32 to vector<2x128xf32>
      %c0_83 = arith.constant 0 : index
      %c0_84 = arith.constant 0 : index
      %510 = vector.load %arg5[%c0_83, %c0_84] : memref<2x128xf32, #tpu.memory_space<vmem>>, vector<2x128xf32>
      tpu.vector_store %arg5[%c0_83, %c0_84], %509 {strides = array<i32>} : memref<2x128xf32, #tpu.memory_space<vmem>>, vector<2x128xf32>,
    } else {
    }
    %c0 = arith.constant 0 : index
    %c0_1 = arith.constant 0 : index
    %c0_2 = arith.constant 0 : index
    %3 = vector.load %arg1[%c0, %c0_1, %c0_2] : memref<2x16x512xf32, #tpu.memory_space<vmem>>, vector<2x16x512xf32>
    %c0_3 = arith.constant 0 : index
    %c0_4 = arith.constant 0 : index
    %4 = vector.load %arg2[%c0_3, %c0_4] : memref<128x512xbf16, #tpu.memory_space<vmem>>, vector<128x512xbf16>
    %c0_5 = arith.constant 0 : index
    %c0_6 = arith.constant 0 : index
    %5 = vector.load %arg4[%c0_5, %c0_6] : memref<2x128xbf16, #tpu.memory_space<vmem>>, vector<2x128xbf16>
    %c0_7 = arith.constant 0 : index
    %c0_8 = arith.constant 0 : index
    %6 = vector.load %arg5[%c0_7, %c0_8] : memref<2x128xf32, #tpu.memory_space<vmem>>, vector<2x128xf32>
    %7 = vector.extract_strided_slice %3 {offsets = [0, 0, 0], sizes = [2, 1, 512], strides = [1, 1, 1]} : vector<2x16x512xf32> to vector<2x1x512xf32>
    %8 = vector.shape_cast %7 : vector<2x1x512xf32> to vector<2x512xf32>
    %cst = arith.constant dense<0.000000e+00> : vector<2x512xf32>
    %9 = tpu.matmul %5, %4, %cst {dimension_numbers = #tpu.dot_dimension_numbers<[1], [0], [0], [1], [0, 0, 1, 1], [], []>} : vector<2x128xbf16>, vector<128x512xbf16>, vector<2x512xf32> -> vector<2x512xf32>
    %10 = arith.addf %8, %9 : vector<2x512xf32>
    %11 = vector.extract_strided_slice %10 {offsets = [0, 0], sizes = [2, 128], strides = [1, 1]} : vector<2x512xf32> to vector<2x128xf32>
    %12 = arith.negf %11 : vector<2x128xf32>
    %13 = math.exp %12 : vector<2x128xf32>
    %cst_9 = arith.constant 1.000000e+00 : f32
    %14 = vector.broadcast %cst_9 : f32 to vector<2x128xf32>
    %15 = arith.addf %14, %13 : vector<2x128xf32>
    %16 = arith.divf %14, %15 : vector<2x128xf32>
    %17 = vector.extract_strided_slice %10 {offsets = [0, 128], sizes = [2, 128], strides = [1, 1]} : vector<2x512xf32> to vector<2x128xf32>
    %18 = arith.negf %17 : vector<2x128xf32>
    %19 = math.exp %18 : vector<2x128xf32>
    %cst_10 = arith.constant 1.000000e+00 : f32
    %20 = vector.broadcast %cst_10 : f32 to vector<2x128xf32>
    %21 = arith.addf %20, %19 : vector<2x128xf32>
    %22 = arith.divf %20, %21 : vector<2x128xf32>
    %23 = vector.extract_strided_slice %10 {offsets = [0, 256], sizes = [2, 128], strides = [1, 1]} : vector<2x512xf32> to vector<2x128xf32>
    %24 = math.tanh %23 : vector<2x128xf32>
    %25 = vector.extract_strided_slice %10 {offsets = [0, 384], sizes = [2, 128], strides = [1, 1]} : vector<2x512xf32> to vector<2x128xf32>
    %26 = arith.negf %25 : vector<2x128xf32>
    %27 = math.exp %26 : vector<2x128xf32>
    %cst_11 = arith.constant 1.000000e+00 : f32
    %28 = vector.broadcast %cst_11 : f32 to vector<2x128xf32>
    %29 = arith.addf %28, %27 : vector<2x128xf32>
    %30 = arith.divf %28, %29 : vector<2x128xf32>
    %31 = arith.mulf %22, %6 : vector<2x128xf32>
    %32 = arith.mulf %16, %24 : vector<2x128xf32>
    %33 = arith.addf %31, %32 : vector<2x128xf32>
    %34 = math.tanh %33 : vector<2x128xf32>
    %35 = arith.mulf %30, %34 : vector<2x128xf32>
    %36 = arith.truncf %35 : vector<2x128xf32> to vector<2x128xbf16>
    %37 = vector.extract_strided_slice %3 {offsets = [0, 1, 0], sizes = [2, 1, 512], strides = [1, 1, 1]} : vector<2x16x512xf32> to vector<2x1x512xf32>
    %38 = vector.shape_cast %37 : vector<2x1x512xf32> to vector<2x512xf32>
    %cst_12 = arith.constant dense<0.000000e+00> : vector<2x512xf32>
    %39 = tpu.matmul %36, %4, %cst_12 {dimension_numbers = #tpu.dot_dimension_numbers<[1], [0], [0], [1], [0, 0, 1, 1], [], []>} : vector<2x128xbf16>, vector<128x512xbf16>, vector<2x512xf32> -> vector<2x512xf32>
    %40 = arith.addf %38, %39 : vector<2x512xf32>
    %41 = vector.extract_strided_slice %40 {offsets = [0, 0], sizes = [2, 128], strides = [1, 1]} : vector<2x512xf32> to vector<2x128xf32>
    %42 = arith.negf %41 : vector<2x128xf32>
    %43 = math.exp %42 : vector<2x128xf32>
    %cst_13 = arith.constant 1.000000e+00 : f32
    %44 = vector.broadcast %cst_13 : f32 to vector<2x128xf32>
    %45 = arith.addf %44, %43 : vector<2x128xf32>
    %46 = arith.divf %44, %45 : vector<2x128xf32>
    %47 = vector.extract_strided_slice %40 {offsets = [0, 128], sizes = [2, 128], strides = [1, 1]} : vector<2x512xf32> to vector<2x128xf32>
    %48 = arith.negf %47 : vector<2x128xf32>
    %49 = math.exp %48 : vector<2x128xf32>
    %cst_14 = arith.constant 1.000000e+00 : f32
    %50 = vector.broadcast %cst_14 : f32 to vector<2x128xf32>
    %51 = arith.addf %50, %49 : vector<2x128xf32>
    %52 = arith.divf %50, %51 : vector<2x128xf32>
    %53 = vector.extract_strided_slice %40 {offsets = [0, 256], sizes = [2, 128], strides = [1, 1]} : vector<2x512xf32> to vector<2x128xf32>
    %54 = math.tanh %53 : vector<2x128xf32>
    %55 = vector.extract_strided_slice %40 {offsets = [0, 384], sizes = [2, 128], strides = [1, 1]} : vector<2x512xf32> to vector<2x128xf32>
    %56 = arith.negf %55 : vector<2x128xf32>
    %57 = math.exp %56 : vector<2x128xf32>
    %cst_15 = arith.constant 1.000000e+00 : f32
    %58 = vector.broadcast %cst_15 : f32 to vector<2x128xf32>
    %59 = arith.addf %58, %57 : vector<2x128xf32>
    %60 = arith.divf %58, %59 : vector<2x128xf32>
    %61 = arith.mulf %52, %33 : vector<2x128xf32>
    %62 = arith.mulf %46, %54 : vector<2x128xf32>
    %63 = arith.addf %61, %62 : vector<2x128xf32>
    %64 = math.tanh %63 : vector<2x128xf32>
    %65 = arith.mulf %60, %64 : vector<2x128xf32>
    %66 = arith.truncf %65 : vector<2x128xf32> to vector<2x128xbf16>
    %67 = vector.extract_strided_slice %3 {offsets = [0, 2, 0], sizes = [2, 1, 512], strides = [1, 1, 1]} : vector<2x16x512xf32> to vector<2x1x512xf32>
    %68 = vector.shape_cast %67 : vector<2x1x512xf32> to vector<2x512xf32>
    %cst_16 = arith.constant dense<0.000000e+00> : vector<2x512xf32>
    %69 = tpu.matmul %66, %4, %cst_16 {dimension_numbers = #tpu.dot_dimension_numbers<[1], [0], [0], [1], [0, 0, 1, 1], [], []>} : vector<2x128xbf16>, vector<128x512xbf16>, vector<2x512xf32> -> vector<2x512xf32>
    %70 = arith.addf %68, %69 : vector<2x512xf32>
    %71 = vector.extract_strided_slice %70 {offsets = [0, 0], sizes = [2, 128], strides = [1, 1]} : vector<2x512xf32> to vector<2x128xf32>
    %72 = arith.negf %71 : vector<2x128xf32>
    %73 = math.exp %72 : vector<2x128xf32>
    %cst_17 = arith.constant 1.000000e+00 : f32
    %74 = vector.broadcast %cst_17 : f32 to vector<2x128xf32>
    %75 = arith.addf %74, %73 : vector<2x128xf32>
    %76 = arith.divf %74, %75 : vector<2x128xf32>
    %77 = vector.extract_strided_slice %70 {offsets = [0, 128], sizes = [2, 128], strides = [1, 1]} : vector<2x512xf32> to vector<2x128xf32>
    %78 = arith.negf %77 : vector<2x128xf32>
    %79 = math.exp %78 : vector<2x128xf32>
    %cst_18 = arith.constant 1.000000e+00 : f32
    %80 = vector.broadcast %cst_18 : f32 to vector<2x128xf32>
    %81 = arith.addf %80, %79 : vector<2x128xf32>
    %82 = arith.divf %80, %81 : vector<2x128xf32>
    %83 = vector.extract_strided_slice %70 {offsets = [0, 256], sizes = [2, 128], strides = [1, 1]} : vector<2x512xf32> to vector<2x128xf32>
    %84 = math.tanh %83 : vector<2x128xf32>
    %85 = vector.extract_strided_slice %70 {offsets = [0, 384], sizes = [2, 128], strides = [1, 1]} : vector<2x512xf32> to vector<2x128xf32>
    %86 = arith.negf %85 : vector<2x128xf32>
    %87 = math.exp %86 : vector<2x128xf32>
    %cst_19 = arith.constant 1.000000e+00 : f32
    %88 = vector.broadcast %cst_19 : f32 to vector<2x128xf32>
    %89 = arith.addf %88, %87 : vector<2x128xf32>
    %90 = arith.divf %88, %89 : vector<2x128xf32>
    %91 = arith.mulf %82, %63 : vector<2x128xf32>
    %92 = arith.mulf %76, %84 : vector<2x128xf32>
    %93 = arith.addf %91, %92 : vector<2x128xf32>
    %94 = math.tanh %93 : vector<2x128xf32>
    %95 = arith.mulf %90, %94 : vector<2x128xf32>
    %96 = arith.truncf %95 : vector<2x128xf32> to vector<2x128xbf16>
    %97 = vector.extract_strided_slice %3 {offsets = [0, 3, 0], sizes = [2, 1, 512], strides = [1, 1, 1]} : vector<2x16x512xf32> to vector<2x1x512xf32>
    %98 = vector.shape_cast %97 : vector<2x1x512xf32> to vector<2x512xf32>
    %cst_20 = arith.constant dense<0.000000e+00> : vector<2x512xf32>
    %99 = tpu.matmul %96, %4, %cst_20 {dimension_numbers = #tpu.dot_dimension_numbers<[1], [0], [0], [1], [0, 0, 1, 1], [], []>} : vector<2x128xbf16>, vector<128x512xbf16>, vector<2x512xf32> -> vector<2x512xf32>
    %100 = arith.addf %98, %99 : vector<2x512xf32>
    %101 = vector.extract_strided_slice %100 {offsets = [0, 0], sizes = [2, 128], strides = [1, 1]} : vector<2x512xf32> to vector<2x128xf32>
    %102 = arith.negf %101 : vector<2x128xf32>
    %103 = math.exp %102 : vector<2x128xf32>
    %cst_21 = arith.constant 1.000000e+00 : f32
    %104 = vector.broadcast %cst_21 : f32 to vector<2x128xf32>
    %105 = arith.addf %104, %103 : vector<2x128xf32>
    %106 = arith.divf %104, %105 : vector<2x128xf32>
    %107 = vector.extract_strided_slice %100 {offsets = [0, 128], sizes = [2, 128], strides = [1, 1]} : vector<2x512xf32> to vector<2x128xf32>
    %108 = arith.negf %107 : vector<2x128xf32>
    %109 = math.exp %108 : vector<2x128xf32>
    %cst_22 = arith.constant 1.000000e+00 : f32
    %110 = vector.broadcast %cst_22 : f32 to vector<2x128xf32>
    %111 = arith.addf %110, %109 : vector<2x128xf32>
    %112 = arith.divf %110, %111 : vector<2x128xf32>
    %113 = vector.extract_strided_slice %100 {offsets = [0, 256], sizes = [2, 128], strides = [1, 1]} : vector<2x512xf32> to vector<2x128xf32>
    %114 = math.tanh %113 : vector<2x128xf32>
    %115 = vector.extract_strided_slice %100 {offsets = [0, 384], sizes = [2, 128], strides = [1, 1]} : vector<2x512xf32> to vector<2x128xf32>
    %116 = arith.negf %115 : vector<2x128xf32>
    %117 = math.exp %116 : vector<2x128xf32>
    %cst_23 = arith.constant 1.000000e+00 : f32
    %118 = vector.broadcast %cst_23 : f32 to vector<2x128xf32>
    %119 = arith.addf %118, %117 : vector<2x128xf32>
    %120 = arith.divf %118, %119 : vector<2x128xf32>
    %121 = arith.mulf %112, %93 : vector<2x128xf32>
    %122 = arith.mulf %106, %114 : vector<2x128xf32>
    %123 = arith.addf %121, %122 : vector<2x128xf32>
    %124 = math.tanh %123 : vector<2x128xf32>
    %125 = arith.mulf %120, %124 : vector<2x128xf32>
    %126 = arith.truncf %125 : vector<2x128xf32> to vector<2x128xbf16>
    %127 = vector.extract_strided_slice %3 {offsets = [0, 4, 0], sizes = [2, 1, 512], strides = [1, 1, 1]} : vector<2x16x512xf32> to vector<2x1x512xf32>
    %128 = vector.shape_cast %127 : vector<2x1x512xf32> to vector<2x512xf32>
    %cst_24 = arith.constant dense<0.000000e+00> : vector<2x512xf32>
    %129 = tpu.matmul %126, %4, %cst_24 {dimension_numbers = #tpu.dot_dimension_numbers<[1], [0], [0], [1], [0, 0, 1, 1], [], []>} : vector<2x128xbf16>, vector<128x512xbf16>, vector<2x512xf32> -> vector<2x512xf32>
    %130 = arith.addf %128, %129 : vector<2x512xf32>
    %131 = vector.extract_strided_slice %130 {offsets = [0, 0], sizes = [2, 128], strides = [1, 1]} : vector<2x512xf32> to vector<2x128xf32>
    %132 = arith.negf %131 : vector<2x128xf32>
    %133 = math.exp %132 : vector<2x128xf32>
    %cst_25 = arith.constant 1.000000e+00 : f32
    %134 = vector.broadcast %cst_25 : f32 to vector<2x128xf32>
    %135 = arith.addf %134, %133 : vector<2x128xf32>
    %136 = arith.divf %134, %135 : vector<2x128xf32>
    %137 = vector.extract_strided_slice %130 {offsets = [0, 128], sizes = [2, 128], strides = [1, 1]} : vector<2x512xf32> to vector<2x128xf32>
    %138 = arith.negf %137 : vector<2x128xf32>
    %139 = math.exp %138 : vector<2x128xf32>
    %cst_26 = arith.constant 1.000000e+00 : f32
    %140 = vector.broadcast %cst_26 : f32 to vector<2x128xf32>
    %141 = arith.addf %140, %139 : vector<2x128xf32>
    %142 = arith.divf %140, %141 : vector<2x128xf32>
    %143 = vector.extract_strided_slice %130 {offsets = [0, 256], sizes = [2, 128], strides = [1, 1]} : vector<2x512xf32> to vector<2x128xf32>
    %144 = math.tanh %143 : vector<2x128xf32>
    %145 = vector.extract_strided_slice %130 {offsets = [0, 384], sizes = [2, 128], strides = [1, 1]} : vector<2x512xf32> to vector<2x128xf32>
    %146 = arith.negf %145 : vector<2x128xf32>
    %147 = math.exp %146 : vector<2x128xf32>
    %cst_27 = arith.constant 1.000000e+00 : f32
    %148 = vector.broadcast %cst_27 : f32 to vector<2x128xf32>
    %149 = arith.addf %148, %147 : vector<2x128xf32>
    %150 = arith.divf %148, %149 : vector<2x128xf32>
    %151 = arith.mulf %142, %123 : vector<2x128xf32>
    %152 = arith.mulf %136, %144 : vector<2x128xf32>
    %153 = arith.addf %151, %152 : vector<2x128xf32>
    %154 = math.tanh %153 : vector<2x128xf32>
    %155 = arith.mulf %150, %154 : vector<2x128xf32>
    %156 = arith.truncf %155 : vector<2x128xf32> to vector<2x128xbf16>
    %157 = vector.extract_strided_slice %3 {offsets = [0, 5, 0], sizes = [2, 1, 512], strides = [1, 1, 1]} : vector<2x16x512xf32> to vector<2x1x512xf32>
    %158 = vector.shape_cast %157 : vector<2x1x512xf32> to vector<2x512xf32>
    %cst_28 = arith.constant dense<0.000000e+00> : vector<2x512xf32>
    %159 = tpu.matmul %156, %4, %cst_28 {dimension_numbers = #tpu.dot_dimension_numbers<[1], [0], [0], [1], [0, 0, 1, 1], [], []>} : vector<2x128xbf16>, vector<128x512xbf16>, vector<2x512xf32> -> vector<2x512xf32>
    %160 = arith.addf %158, %159 : vector<2x512xf32>
    %161 = vector.extract_strided_slice %160 {offsets = [0, 0], sizes = [2, 128], strides = [1, 1]} : vector<2x512xf32> to vector<2x128xf32>
    %162 = arith.negf %161 : vector<2x128xf32>
    %163 = math.exp %162 : vector<2x128xf32>
    %cst_29 = arith.constant 1.000000e+00 : f32
    %164 = vector.broadcast %cst_29 : f32 to vector<2x128xf32>
    %165 = arith.addf %164, %163 : vector<2x128xf32>
    %166 = arith.divf %164, %165 : vector<2x128xf32>
    %167 = vector.extract_strided_slice %160 {offsets = [0, 128], sizes = [2, 128], strides = [1, 1]} : vector<2x512xf32> to vector<2x128xf32>
    %168 = arith.negf %167 : vector<2x128xf32>
    %169 = math.exp %168 : vector<2x128xf32>
    %cst_30 = arith.constant 1.000000e+00 : f32
    %170 = vector.broadcast %cst_30 : f32 to vector<2x128xf32>
    %171 = arith.addf %170, %169 : vector<2x128xf32>
    %172 = arith.divf %170, %171 : vector<2x128xf32>
    %173 = vector.extract_strided_slice %160 {offsets = [0, 256], sizes = [2, 128], strides = [1, 1]} : vector<2x512xf32> to vector<2x128xf32>
    %174 = math.tanh %173 : vector<2x128xf32>
    %175 = vector.extract_strided_slice %160 {offsets = [0, 384], sizes = [2, 128], strides = [1, 1]} : vector<2x512xf32> to vector<2x128xf32>
    %176 = arith.negf %175 : vector<2x128xf32>
    %177 = math.exp %176 : vector<2x128xf32>
    %cst_31 = arith.constant 1.000000e+00 : f32
    %178 = vector.broadcast %cst_31 : f32 to vector<2x128xf32>
    %179 = arith.addf %178, %177 : vector<2x128xf32>
    %180 = arith.divf %178, %179 : vector<2x128xf32>
    %181 = arith.mulf %172, %153 : vector<2x128xf32>
    %182 = arith.mulf %166, %174 : vector<2x128xf32>
    %183 = arith.addf %181, %182 : vector<2x128xf32>
    %184 = math.tanh %183 : vector<2x128xf32>
    %185 = arith.mulf %180, %184 : vector<2x128xf32>
    %186 = arith.truncf %185 : vector<2x128xf32> to vector<2x128xbf16>
    %187 = vector.extract_strided_slice %3 {offsets = [0, 6, 0], sizes = [2, 1, 512], strides = [1, 1, 1]} : vector<2x16x512xf32> to vector<2x1x512xf32>
    %188 = vector.shape_cast %187 : vector<2x1x512xf32> to vector<2x512xf32>
    %cst_32 = arith.constant dense<0.000000e+00> : vector<2x512xf32>
    %189 = tpu.matmul %186, %4, %cst_32 {dimension_numbers = #tpu.dot_dimension_numbers<[1], [0], [0], [1], [0, 0, 1, 1], [], []>} : vector<2x128xbf16>, vector<128x512xbf16>, vector<2x512xf32> -> vector<2x512xf32>
    %190 = arith.addf %188, %189 : vector<2x512xf32>
    %191 = vector.extract_strided_slice %190 {offsets = [0, 0], sizes = [2, 128], strides = [1, 1]} : vector<2x512xf32> to vector<2x128xf32>
    %192 = arith.negf %191 : vector<2x128xf32>
    %193 = math.exp %192 : vector<2x128xf32>
    %cst_33 = arith.constant 1.000000e+00 : f32
    %194 = vector.broadcast %cst_33 : f32 to vector<2x128xf32>
    %195 = arith.addf %194, %193 : vector<2x128xf32>
    %196 = arith.divf %194, %195 : vector<2x128xf32>
    %197 = vector.extract_strided_slice %190 {offsets = [0, 128], sizes = [2, 128], strides = [1, 1]} : vector<2x512xf32> to vector<2x128xf32>
    %198 = arith.negf %197 : vector<2x128xf32>
    %199 = math.exp %198 : vector<2x128xf32>
    %cst_34 = arith.constant 1.000000e+00 : f32
    %200 = vector.broadcast %cst_34 : f32 to vector<2x128xf32>
    %201 = arith.addf %200, %199 : vector<2x128xf32>
    %202 = arith.divf %200, %201 : vector<2x128xf32>
    %203 = vector.extract_strided_slice %190 {offsets = [0, 256], sizes = [2, 128], strides = [1, 1]} : vector<2x512xf32> to vector<2x128xf32>
    %204 = math.tanh %203 : vector<2x128xf32>
    %205 = vector.extract_strided_slice %190 {offsets = [0, 384], sizes = [2, 128], strides = [1, 1]} : vector<2x512xf32> to vector<2x128xf32>
    %206 = arith.negf %205 : vector<2x128xf32>
    %207 = math.exp %206 : vector<2x128xf32>
    %cst_35 = arith.constant 1.000000e+00 : f32
    %208 = vector.broadcast %cst_35 : f32 to vector<2x128xf32>
    %209 = arith.addf %208, %207 : vector<2x128xf32>
    %210 = arith.divf %208, %209 : vector<2x128xf32>
    %211 = arith.mulf %202, %183 : vector<2x128xf32>
    %212 = arith.mulf %196, %204 : vector<2x128xf32>
    %213 = arith.addf %211, %212 : vector<2x128xf32>
    %214 = math.tanh %213 : vector<2x128xf32>
    %215 = arith.mulf %210, %214 : vector<2x128xf32>
    %216 = arith.truncf %215 : vector<2x128xf32> to vector<2x128xbf16>
    %217 = vector.extract_strided_slice %3 {offsets = [0, 7, 0], sizes = [2, 1, 512], strides = [1, 1, 1]} : vector<2x16x512xf32> to vector<2x1x512xf32>
    %218 = vector.shape_cast %217 : vector<2x1x512xf32> to vector<2x512xf32>
    %cst_36 = arith.constant dense<0.000000e+00> : vector<2x512xf32>
    %219 = tpu.matmul %216, %4, %cst_36 {dimension_numbers = #tpu.dot_dimension_numbers<[1], [0], [0], [1], [0, 0, 1, 1], [], []>} : vector<2x128xbf16>, vector<128x512xbf16>, vector<2x512xf32> -> vector<2x512xf32>
    %220 = arith.addf %218, %219 : vector<2x512xf32>
    %221 = vector.extract_strided_slice %220 {offsets = [0, 0], sizes = [2, 128], strides = [1, 1]} : vector<2x512xf32> to vector<2x128xf32>
    %222 = arith.negf %221 : vector<2x128xf32>
    %223 = math.exp %222 : vector<2x128xf32>
    %cst_37 = arith.constant 1.000000e+00 : f32
    %224 = vector.broadcast %cst_37 : f32 to vector<2x128xf32>
    %225 = arith.addf %224, %223 : vector<2x128xf32>
    %226 = arith.divf %224, %225 : vector<2x128xf32>
    %227 = vector.extract_strided_slice %220 {offsets = [0, 128], sizes = [2, 128], strides = [1, 1]} : vector<2x512xf32> to vector<2x128xf32>
    %228 = arith.negf %227 : vector<2x128xf32>
    %229 = math.exp %228 : vector<2x128xf32>
    %cst_38 = arith.constant 1.000000e+00 : f32
    %230 = vector.broadcast %cst_38 : f32 to vector<2x128xf32>
    %231 = arith.addf %230, %229 : vector<2x128xf32>
    %232 = arith.divf %230, %231 : vector<2x128xf32>
    %233 = vector.extract_strided_slice %220 {offsets = [0, 256], sizes = [2, 128], strides = [1, 1]} : vector<2x512xf32> to vector<2x128xf32>
    %234 = math.tanh %233 : vector<2x128xf32>
    %235 = vector.extract_strided_slice %220 {offsets = [0, 384], sizes = [2, 128], strides = [1, 1]} : vector<2x512xf32> to vector<2x128xf32>
    %236 = arith.negf %235 : vector<2x128xf32>
    %237 = math.exp %236 : vector<2x128xf32>
    %cst_39 = arith.constant 1.000000e+00 : f32
    %238 = vector.broadcast %cst_39 : f32 to vector<2x128xf32>
    %239 = arith.addf %238, %237 : vector<2x128xf32>
    %240 = arith.divf %238, %239 : vector<2x128xf32>
    %241 = arith.mulf %232, %213 : vector<2x128xf32>
    %242 = arith.mulf %226, %234 : vector<2x128xf32>
    %243 = arith.addf %241, %242 : vector<2x128xf32>
    %244 = math.tanh %243 : vector<2x128xf32>
    %245 = arith.mulf %240, %244 : vector<2x128xf32>
    %246 = arith.truncf %245 : vector<2x128xf32> to vector<2x128xbf16>
    %247 = vector.extract_strided_slice %3 {offsets = [0, 8, 0], sizes = [2, 1, 512], strides = [1, 1, 1]} : vector<2x16x512xf32> to vector<2x1x512xf32>
    %248 = vector.shape_cast %247 : vector<2x1x512xf32> to vector<2x512xf32>
    %cst_40 = arith.constant dense<0.000000e+00> : vector<2x512xf32>
    %249 = tpu.matmul %246, %4, %cst_40 {dimension_numbers = #tpu.dot_dimension_numbers<[1], [0], [0], [1], [0, 0, 1, 1], [], []>} : vector<2x128xbf16>, vector<128x512xbf16>, vector<2x512xf32> -> vector<2x512xf32>
    %250 = arith.addf %248, %249 : vector<2x512xf32>
    %251 = vector.extract_strided_slice %250 {offsets = [0, 0], sizes = [2, 128], strides = [1, 1]} : vector<2x512xf32> to vector<2x128xf32>
    %252 = arith.negf %251 : vector<2x128xf32>
    %253 = math.exp %252 : vector<2x128xf32>
    %cst_41 = arith.constant 1.000000e+00 : f32
    %254 = vector.broadcast %cst_41 : f32 to vector<2x128xf32>
    %255 = arith.addf %254, %253 : vector<2x128xf32>
    %256 = arith.divf %254, %255 : vector<2x128xf32>
    %257 = vector.extract_strided_slice %250 {offsets = [0, 128], sizes = [2, 128], strides = [1, 1]} : vector<2x512xf32> to vector<2x128xf32>
    %258 = arith.negf %257 : vector<2x128xf32>
    %259 = math.exp %258 : vector<2x128xf32>
    %cst_42 = arith.constant 1.000000e+00 : f32
    %260 = vector.broadcast %cst_42 : f32 to vector<2x128xf32>
    %261 = arith.addf %260, %259 : vector<2x128xf32>
    %262 = arith.divf %260, %261 : vector<2x128xf32>
    %263 = vector.extract_strided_slice %250 {offsets = [0, 256], sizes = [2, 128], strides = [1, 1]} : vector<2x512xf32> to vector<2x128xf32>
    %264 = math.tanh %263 : vector<2x128xf32>
    %265 = vector.extract_strided_slice %250 {offsets = [0, 384], sizes = [2, 128], strides = [1, 1]} : vector<2x512xf32> to vector<2x128xf32>
    %266 = arith.negf %265 : vector<2x128xf32>
    %267 = math.exp %266 : vector<2x128xf32>
    %cst_43 = arith.constant 1.000000e+00 : f32
    %268 = vector.broadcast %cst_43 : f32 to vector<2x128xf32>
    %269 = arith.addf %268, %267 : vector<2x128xf32>
    %270 = arith.divf %268, %269 : vector<2x128xf32>
    %271 = arith.mulf %262, %243 : vector<2x128xf32>
    %272 = arith.mulf %256, %264 : vector<2x128xf32>
    %273 = arith.addf %271, %272 : vector<2x128xf32>
    %274 = math.tanh %273 : vector<2x128xf32>
    %275 = arith.mulf %270, %274 : vector<2x128xf32>
    %276 = arith.truncf %275 : vector<2x128xf32> to vector<2x128xbf16>
    %277 = vector.extract_strided_slice %3 {offsets = [0, 9, 0], sizes = [2, 1, 512], strides = [1, 1, 1]} : vector<2x16x512xf32> to vector<2x1x512xf32>
    %278 = vector.shape_cast %277 : vector<2x1x512xf32> to vector<2x512xf32>
    %cst_44 = arith.constant dense<0.000000e+00> : vector<2x512xf32>
    %279 = tpu.matmul %276, %4, %cst_44 {dimension_numbers = #tpu.dot_dimension_numbers<[1], [0], [0], [1], [0, 0, 1, 1], [], []>} : vector<2x128xbf16>, vector<128x512xbf16>, vector<2x512xf32> -> vector<2x512xf32>
    %280 = arith.addf %278, %279 : vector<2x512xf32>
    %281 = vector.extract_strided_slice %280 {offsets = [0, 0], sizes = [2, 128], strides = [1, 1]} : vector<2x512xf32> to vector<2x128xf32>
    %282 = arith.negf %281 : vector<2x128xf32>
    %283 = math.exp %282 : vector<2x128xf32>
    %cst_45 = arith.constant 1.000000e+00 : f32
    %284 = vector.broadcast %cst_45 : f32 to vector<2x128xf32>
    %285 = arith.addf %284, %283 : vector<2x128xf32>
    %286 = arith.divf %284, %285 : vector<2x128xf32>
    %287 = vector.extract_strided_slice %280 {offsets = [0, 128], sizes = [2, 128], strides = [1, 1]} : vector<2x512xf32> to vector<2x128xf32>
    %288 = arith.negf %287 : vector<2x128xf32>
    %289 = math.exp %288 : vector<2x128xf32>
    %cst_46 = arith.constant 1.000000e+00 : f32
    %290 = vector.broadcast %cst_46 : f32 to vector<2x128xf32>
    %291 = arith.addf %290, %289 : vector<2x128xf32>
    %292 = arith.divf %290, %291 : vector<2x128xf32>
    %293 = vector.extract_strided_slice %280 {offsets = [0, 256], sizes = [2, 128], strides = [1, 1]} : vector<2x512xf32> to vector<2x128xf32>
    %294 = math.tanh %293 : vector<2x128xf32>
    %295 = vector.extract_strided_slice %280 {offsets = [0, 384], sizes = [2, 128], strides = [1, 1]} : vector<2x512xf32> to vector<2x128xf32>
    %296 = arith.negf %295 : vector<2x128xf32>
    %297 = math.exp %296 : vector<2x128xf32>
    %cst_47 = arith.constant 1.000000e+00 : f32
    %298 = vector.broadcast %cst_47 : f32 to vector<2x128xf32>
    %299 = arith.addf %298, %297 : vector<2x128xf32>
    %300 = arith.divf %298, %299 : vector<2x128xf32>
    %301 = arith.mulf %292, %273 : vector<2x128xf32>
    %302 = arith.mulf %286, %294 : vector<2x128xf32>
    %303 = arith.addf %301, %302 : vector<2x128xf32>
    %304 = math.tanh %303 : vector<2x128xf32>
    %305 = arith.mulf %300, %304 : vector<2x128xf32>
    %306 = arith.truncf %305 : vector<2x128xf32> to vector<2x128xbf16>
    %307 = vector.extract_strided_slice %3 {offsets = [0, 10, 0], sizes = [2, 1, 512], strides = [1, 1, 1]} : vector<2x16x512xf32> to vector<2x1x512xf32>
    %308 = vector.shape_cast %307 : vector<2x1x512xf32> to vector<2x512xf32>
    %cst_48 = arith.constant dense<0.000000e+00> : vector<2x512xf32>
    %309 = tpu.matmul %306, %4, %cst_48 {dimension_numbers = #tpu.dot_dimension_numbers<[1], [0], [0], [1], [0, 0, 1, 1], [], []>} : vector<2x128xbf16>, vector<128x512xbf16>, vector<2x512xf32> -> vector<2x512xf32>
    %310 = arith.addf %308, %309 : vector<2x512xf32>
    %311 = vector.extract_strided_slice %310 {offsets = [0, 0], sizes = [2, 128], strides = [1, 1]} : vector<2x512xf32> to vector<2x128xf32>
    %312 = arith.negf %311 : vector<2x128xf32>
    %313 = math.exp %312 : vector<2x128xf32>
    %cst_49 = arith.constant 1.000000e+00 : f32
    %314 = vector.broadcast %cst_49 : f32 to vector<2x128xf32>
    %315 = arith.addf %314, %313 : vector<2x128xf32>
    %316 = arith.divf %314, %315 : vector<2x128xf32>
    %317 = vector.extract_strided_slice %310 {offsets = [0, 128], sizes = [2, 128], strides = [1, 1]} : vector<2x512xf32> to vector<2x128xf32>
    %318 = arith.negf %317 : vector<2x128xf32>
    %319 = math.exp %318 : vector<2x128xf32>
    %cst_50 = arith.constant 1.000000e+00 : f32
    %320 = vector.broadcast %cst_50 : f32 to vector<2x128xf32>
    %321 = arith.addf %320, %319 : vector<2x128xf32>
    %322 = arith.divf %320, %321 : vector<2x128xf32>
    %323 = vector.extract_strided_slice %310 {offsets = [0, 256], sizes = [2, 128], strides = [1, 1]} : vector<2x512xf32> to vector<2x128xf32>
    %324 = math.tanh %323 : vector<2x128xf32>
    %325 = vector.extract_strided_slice %310 {offsets = [0, 384], sizes = [2, 128], strides = [1, 1]} : vector<2x512xf32> to vector<2x128xf32>
    %326 = arith.negf %325 : vector<2x128xf32>
    %327 = math.exp %326 : vector<2x128xf32>
    %cst_51 = arith.constant 1.000000e+00 : f32
    %328 = vector.broadcast %cst_51 : f32 to vector<2x128xf32>
    %329 = arith.addf %328, %327 : vector<2x128xf32>
    %330 = arith.divf %328, %329 : vector<2x128xf32>
    %331 = arith.mulf %322, %303 : vector<2x128xf32>
    %332 = arith.mulf %316, %324 : vector<2x128xf32>
    %333 = arith.addf %331, %332 : vector<2x128xf32>
    %334 = math.tanh %333 : vector<2x128xf32>
    %335 = arith.mulf %330, %334 : vector<2x128xf32>
    %336 = arith.truncf %335 : vector<2x128xf32> to vector<2x128xbf16>
    %337 = vector.extract_strided_slice %3 {offsets = [0, 11, 0], sizes = [2, 1, 512], strides = [1, 1, 1]} : vector<2x16x512xf32> to vector<2x1x512xf32>
    %338 = vector.shape_cast %337 : vector<2x1x512xf32> to vector<2x512xf32>
    %cst_52 = arith.constant dense<0.000000e+00> : vector<2x512xf32>
    %339 = tpu.matmul %336, %4, %cst_52 {dimension_numbers = #tpu.dot_dimension_numbers<[1], [0], [0], [1], [0, 0, 1, 1], [], []>} : vector<2x128xbf16>, vector<128x512xbf16>, vector<2x512xf32> -> vector<2x512xf32>
    %340 = arith.addf %338, %339 : vector<2x512xf32>
    %341 = vector.extract_strided_slice %340 {offsets = [0, 0], sizes = [2, 128], strides = [1, 1]} : vector<2x512xf32> to vector<2x128xf32>
    %342 = arith.negf %341 : vector<2x128xf32>
    %343 = math.exp %342 : vector<2x128xf32>
    %cst_53 = arith.constant 1.000000e+00 : f32
    %344 = vector.broadcast %cst_53 : f32 to vector<2x128xf32>
    %345 = arith.addf %344, %343 : vector<2x128xf32>
    %346 = arith.divf %344, %345 : vector<2x128xf32>
    %347 = vector.extract_strided_slice %340 {offsets = [0, 128], sizes = [2, 128], strides = [1, 1]} : vector<2x512xf32> to vector<2x128xf32>
    %348 = arith.negf %347 : vector<2x128xf32>
    %349 = math.exp %348 : vector<2x128xf32>
    %cst_54 = arith.constant 1.000000e+00 : f32
    %350 = vector.broadcast %cst_54 : f32 to vector<2x128xf32>
    %351 = arith.addf %350, %349 : vector<2x128xf32>
    %352 = arith.divf %350, %351 : vector<2x128xf32>
    %353 = vector.extract_strided_slice %340 {offsets = [0, 256], sizes = [2, 128], strides = [1, 1]} : vector<2x512xf32> to vector<2x128xf32>
    %354 = math.tanh %353 : vector<2x128xf32>
    %355 = vector.extract_strided_slice %340 {offsets = [0, 384], sizes = [2, 128], strides = [1, 1]} : vector<2x512xf32> to vector<2x128xf32>
    %356 = arith.negf %355 : vector<2x128xf32>
    %357 = math.exp %356 : vector<2x128xf32>
    %cst_55 = arith.constant 1.000000e+00 : f32
    %358 = vector.broadcast %cst_55 : f32 to vector<2x128xf32>
    %359 = arith.addf %358, %357 : vector<2x128xf32>
    %360 = arith.divf %358, %359 : vector<2x128xf32>
    %361 = arith.mulf %352, %333 : vector<2x128xf32>
    %362 = arith.mulf %346, %354 : vector<2x128xf32>
    %363 = arith.addf %361, %362 : vector<2x128xf32>
    %364 = math.tanh %363 : vector<2x128xf32>
    %365 = arith.mulf %360, %364 : vector<2x128xf32>
    %366 = arith.truncf %365 : vector<2x128xf32> to vector<2x128xbf16>
    %367 = vector.extract_strided_slice %3 {offsets = [0, 12, 0], sizes = [2, 1, 512], strides = [1, 1, 1]} : vector<2x16x512xf32> to vector<2x1x512xf32>
    %368 = vector.shape_cast %367 : vector<2x1x512xf32> to vector<2x512xf32>
    %cst_56 = arith.constant dense<0.000000e+00> : vector<2x512xf32>
    %369 = tpu.matmul %366, %4, %cst_56 {dimension_numbers = #tpu.dot_dimension_numbers<[1], [0], [0], [1], [0, 0, 1, 1], [], []>} : vector<2x128xbf16>, vector<128x512xbf16>, vector<2x512xf32> -> vector<2x512xf32>
    %370 = arith.addf %368, %369 : vector<2x512xf32>
    %371 = vector.extract_strided_slice %370 {offsets = [0, 0], sizes = [2, 128], strides = [1, 1]} : vector<2x512xf32> to vector<2x128xf32>
    %372 = arith.negf %371 : vector<2x128xf32>
    %373 = math.exp %372 : vector<2x128xf32>
    %cst_57 = arith.constant 1.000000e+00 : f32
    %374 = vector.broadcast %cst_57 : f32 to vector<2x128xf32>
    %375 = arith.addf %374, %373 : vector<2x128xf32>
    %376 = arith.divf %374, %375 : vector<2x128xf32>
    %377 = vector.extract_strided_slice %370 {offsets = [0, 128], sizes = [2, 128], strides = [1, 1]} : vector<2x512xf32> to vector<2x128xf32>
    %378 = arith.negf %377 : vector<2x128xf32>
    %379 = math.exp %378 : vector<2x128xf32>
    %cst_58 = arith.constant 1.000000e+00 : f32
    %380 = vector.broadcast %cst_58 : f32 to vector<2x128xf32>
    %381 = arith.addf %380, %379 : vector<2x128xf32>
    %382 = arith.divf %380, %381 : vector<2x128xf32>
    %383 = vector.extract_strided_slice %370 {offsets = [0, 256], sizes = [2, 128], strides = [1, 1]} : vector<2x512xf32> to vector<2x128xf32>
    %384 = math.tanh %383 : vector<2x128xf32>
    %385 = vector.extract_strided_slice %370 {offsets = [0, 384], sizes = [2, 128], strides = [1, 1]} : vector<2x512xf32> to vector<2x128xf32>
    %386 = arith.negf %385 : vector<2x128xf32>
    %387 = math.exp %386 : vector<2x128xf32>
    %cst_59 = arith.constant 1.000000e+00 : f32
    %388 = vector.broadcast %cst_59 : f32 to vector<2x128xf32>
    %389 = arith.addf %388, %387 : vector<2x128xf32>
    %390 = arith.divf %388, %389 : vector<2x128xf32>
    %391 = arith.mulf %382, %363 : vector<2x128xf32>
    %392 = arith.mulf %376, %384 : vector<2x128xf32>
    %393 = arith.addf %391, %392 : vector<2x128xf32>
    %394 = math.tanh %393 : vector<2x128xf32>
    %395 = arith.mulf %390, %394 : vector<2x128xf32>
    %396 = arith.truncf %395 : vector<2x128xf32> to vector<2x128xbf16>
    %397 = vector.extract_strided_slice %3 {offsets = [0, 13, 0], sizes = [2, 1, 512], strides = [1, 1, 1]} : vector<2x16x512xf32> to vector<2x1x512xf32>
    %398 = vector.shape_cast %397 : vector<2x1x512xf32> to vector<2x512xf32>
    %cst_60 = arith.constant dense<0.000000e+00> : vector<2x512xf32>
    %399 = tpu.matmul %396, %4, %cst_60 {dimension_numbers = #tpu.dot_dimension_numbers<[1], [0], [0], [1], [0, 0, 1, 1], [], []>} : vector<2x128xbf16>, vector<128x512xbf16>, vector<2x512xf32> -> vector<2x512xf32>
    %400 = arith.addf %398, %399 : vector<2x512xf32>
    %401 = vector.extract_strided_slice %400 {offsets = [0, 0], sizes = [2, 128], strides = [1, 1]} : vector<2x512xf32> to vector<2x128xf32>
    %402 = arith.negf %401 : vector<2x128xf32>
    %403 = math.exp %402 : vector<2x128xf32>
    %cst_61 = arith.constant 1.000000e+00 : f32
    %404 = vector.broadcast %cst_61 : f32 to vector<2x128xf32>
    %405 = arith.addf %404, %403 : vector<2x128xf32>
    %406 = arith.divf %404, %405 : vector<2x128xf32>
    %407 = vector.extract_strided_slice %400 {offsets = [0, 128], sizes = [2, 128], strides = [1, 1]} : vector<2x512xf32> to vector<2x128xf32>
    %408 = arith.negf %407 : vector<2x128xf32>
    %409 = math.exp %408 : vector<2x128xf32>
    %cst_62 = arith.constant 1.000000e+00 : f32
    %410 = vector.broadcast %cst_62 : f32 to vector<2x128xf32>
    %411 = arith.addf %410, %409 : vector<2x128xf32>
    %412 = arith.divf %410, %411 : vector<2x128xf32>
    %413 = vector.extract_strided_slice %400 {offsets = [0, 256], sizes = [2, 128], strides = [1, 1]} : vector<2x512xf32> to vector<2x128xf32>
    %414 = math.tanh %413 : vector<2x128xf32>
    %415 = vector.extract_strided_slice %400 {offsets = [0, 384], sizes = [2, 128], strides = [1, 1]} : vector<2x512xf32> to vector<2x128xf32>
    %416 = arith.negf %415 : vector<2x128xf32>
    %417 = math.exp %416 : vector<2x128xf32>
    %cst_63 = arith.constant 1.000000e+00 : f32
    %418 = vector.broadcast %cst_63 : f32 to vector<2x128xf32>
    %419 = arith.addf %418, %417 : vector<2x128xf32>
    %420 = arith.divf %418, %419 : vector<2x128xf32>
    %421 = arith.mulf %412, %393 : vector<2x128xf32>
    %422 = arith.mulf %406, %414 : vector<2x128xf32>
    %423 = arith.addf %421, %422 : vector<2x128xf32>
    %424 = math.tanh %423 : vector<2x128xf32>
    %425 = arith.mulf %420, %424 : vector<2x128xf32>
    %426 = arith.truncf %425 : vector<2x128xf32> to vector<2x128xbf16>
    %427 = vector.extract_strided_slice %3 {offsets = [0, 14, 0], sizes = [2, 1, 512], strides = [1, 1, 1]} : vector<2x16x512xf32> to vector<2x1x512xf32>
    %428 = vector.shape_cast %427 : vector<2x1x512xf32> to vector<2x512xf32>
    %cst_64 = arith.constant dense<0.000000e+00> : vector<2x512xf32>
    %429 = tpu.matmul %426, %4, %cst_64 {dimension_numbers = #tpu.dot_dimension_numbers<[1], [0], [0], [1], [0, 0, 1, 1], [], []>} : vector<2x128xbf16>, vector<128x512xbf16>, vector<2x512xf32> -> vector<2x512xf32>
    %430 = arith.addf %428, %429 : vector<2x512xf32>
    %431 = vector.extract_strided_slice %430 {offsets = [0, 0], sizes = [2, 128], strides = [1, 1]} : vector<2x512xf32> to vector<2x128xf32>
    %432 = arith.negf %431 : vector<2x128xf32>
    %433 = math.exp %432 : vector<2x128xf32>
    %cst_65 = arith.constant 1.000000e+00 : f32
    %434 = vector.broadcast %cst_65 : f32 to vector<2x128xf32>
    %435 = arith.addf %434, %433 : vector<2x128xf32>
    %436 = arith.divf %434, %435 : vector<2x128xf32>
    %437 = vector.extract_strided_slice %430 {offsets = [0, 128], sizes = [2, 128], strides = [1, 1]} : vector<2x512xf32> to vector<2x128xf32>
    %438 = arith.negf %437 : vector<2x128xf32>
    %439 = math.exp %438 : vector<2x128xf32>
    %cst_66 = arith.constant 1.000000e+00 : f32
    %440 = vector.broadcast %cst_66 : f32 to vector<2x128xf32>
    %441 = arith.addf %440, %439 : vector<2x128xf32>
    %442 = arith.divf %440, %441 : vector<2x128xf32>
    %443 = vector.extract_strided_slice %430 {offsets = [0, 256], sizes = [2, 128], strides = [1, 1]} : vector<2x512xf32> to vector<2x128xf32>
    %444 = math.tanh %443 : vector<2x128xf32>
    %445 = vector.extract_strided_slice %430 {offsets = [0, 384], sizes = [2, 128], strides = [1, 1]} : vector<2x512xf32> to vector<2x128xf32>
    %446 = arith.negf %445 : vector<2x128xf32>
    %447 = math.exp %446 : vector<2x128xf32>
    %cst_67 = arith.constant 1.000000e+00 : f32
    %448 = vector.broadcast %cst_67 : f32 to vector<2x128xf32>
    %449 = arith.addf %448, %447 : vector<2x128xf32>
    %450 = arith.divf %448, %449 : vector<2x128xf32>
    %451 = arith.mulf %442, %423 : vector<2x128xf32>
    %452 = arith.mulf %436, %444 : vector<2x128xf32>
    %453 = arith.addf %451, %452 : vector<2x128xf32>
    %454 = math.tanh %453 : vector<2x128xf32>
    %455 = arith.mulf %450, %454 : vector<2x128xf32>
    %456 = arith.truncf %455 : vector<2x128xf32> to vector<2x128xbf16>
    %457 = vector.extract_strided_slice %3 {offsets = [0, 15, 0], sizes = [2, 1, 512], strides = [1, 1, 1]} : vector<2x16x512xf32> to vector<2x1x512xf32>
    %458 = vector.shape_cast %457 : vector<2x1x512xf32> to vector<2x512xf32>
    %cst_68 = arith.constant dense<0.000000e+00> : vector<2x512xf32>
    %459 = tpu.matmul %456, %4, %cst_68 {dimension_numbers = #tpu.dot_dimension_numbers<[1], [0], [0], [1], [0, 0, 1, 1], [], []>} : vector<2x128xbf16>, vector<128x512xbf16>, vector<2x512xf32> -> vector<2x512xf32>
    %460 = arith.addf %458, %459 : vector<2x512xf32>
    %461 = vector.extract_strided_slice %460 {offsets = [0, 0], sizes = [2, 128], strides = [1, 1]} : vector<2x512xf32> to vector<2x128xf32>
    %462 = arith.negf %461 : vector<2x128xf32>
    %463 = math.exp %462 : vector<2x128xf32>
    %cst_69 = arith.constant 1.000000e+00 : f32
    %464 = vector.broadcast %cst_69 : f32 to vector<2x128xf32>
    %465 = arith.addf %464, %463 : vector<2x128xf32>
    %466 = arith.divf %464, %465 : vector<2x128xf32>
    %467 = vector.extract_strided_slice %460 {offsets = [0, 128], sizes = [2, 128], strides = [1, 1]} : vector<2x512xf32> to vector<2x128xf32>
    %468 = arith.negf %467 : vector<2x128xf32>
    %469 = math.exp %468 : vector<2x128xf32>
    %cst_70 = arith.constant 1.000000e+00 : f32
    %470 = vector.broadcast %cst_70 : f32 to vector<2x128xf32>
    %471 = arith.addf %470, %469 : vector<2x128xf32>
    %472 = arith.divf %470, %471 : vector<2x128xf32>
    %473 = vector.extract_strided_slice %460 {offsets = [0, 256], sizes = [2, 128], strides = [1, 1]} : vector<2x512xf32> to vector<2x128xf32>
    %474 = math.tanh %473 : vector<2x128xf32>
    %475 = vector.extract_strided_slice %460 {offsets = [0, 384], sizes = [2, 128], strides = [1, 1]} : vector<2x512xf32> to vector<2x128xf32>
    %476 = arith.negf %475 : vector<2x128xf32>
    %477 = math.exp %476 : vector<2x128xf32>
    %cst_71 = arith.constant 1.000000e+00 : f32
    %478 = vector.broadcast %cst_71 : f32 to vector<2x128xf32>
    %479 = arith.addf %478, %477 : vector<2x128xf32>
    %480 = arith.divf %478, %479 : vector<2x128xf32>
    %481 = arith.mulf %472, %453 : vector<2x128xf32>
    %482 = arith.mulf %466, %474 : vector<2x128xf32>
    %483 = arith.addf %481, %482 : vector<2x128xf32>
    %484 = math.tanh %483 : vector<2x128xf32>
    %485 = arith.mulf %480, %484 : vector<2x128xf32>
    %486 = arith.truncf %485 : vector<2x128xf32> to vector<2x128xbf16>
    %c0_72 = arith.constant 0 : index
    %c0_73 = arith.constant 0 : index
    %487 = vector.load %arg4[%c0_72, %c0_73] : memref<2x128xbf16, #tpu.memory_space<vmem>>, vector<2x128xbf16>
    tpu.vector_store %arg4[%c0_72, %c0_73], %486 {strides = array<i32>} : memref<2x128xbf16, #tpu.memory_space<vmem>>, vector<2x128xbf16>,
    %c0_74 = arith.constant 0 : index
    %c0_75 = arith.constant 0 : index
    %488 = vector.load %arg5[%c0_74, %c0_75] : memref<2x128xf32, #tpu.memory_space<vmem>>, vector<2x128xf32>
    tpu.vector_store %arg5[%c0_74, %c0_75], %483 {strides = array<i32>} : memref<2x128xf32, #tpu.memory_space<vmem>>, vector<2x128xf32>,
    %489 = vector.shape_cast %36 : vector<2x128xbf16> to vector<2x1x128xbf16>
    %490 = vector.shape_cast %66 : vector<2x128xbf16> to vector<2x1x128xbf16>
    %491 = vector.shape_cast %96 : vector<2x128xbf16> to vector<2x1x128xbf16>
    %492 = vector.shape_cast %126 : vector<2x128xbf16> to vector<2x1x128xbf16>
    %493 = vector.shape_cast %156 : vector<2x128xbf16> to vector<2x1x128xbf16>
    %494 = vector.shape_cast %186 : vector<2x128xbf16> to vector<2x1x128xbf16>
    %495 = vector.shape_cast %216 : vector<2x128xbf16> to vector<2x1x128xbf16>
    %496 = vector.shape_cast %246 : vector<2x128xbf16> to vector<2x1x128xbf16>
    %497 = vector.shape_cast %276 : vector<2x128xbf16> to vector<2x1x128xbf16>
    %498 = vector.shape_cast %306 : vector<2x128xbf16> to vector<2x1x128xbf16>
    %499 = vector.shape_cast %336 : vector<2x128xbf16> to vector<2x1x128xbf16>
    %500 = vector.shape_cast %366 : vector<2x128xbf16> to vector<2x1x128xbf16>
    %501 = vector.shape_cast %396 : vector<2x128xbf16> to vector<2x1x128xbf16>
    %502 = vector.shape_cast %426 : vector<2x128xbf16> to vector<2x1x128xbf16>
    %503 = vector.shape_cast %456 : vector<2x128xbf16> to vector<2x1x128xbf16>
    %504 = vector.shape_cast %486 : vector<2x128xbf16> to vector<2x1x128xbf16>
    %505 = tpu.concatenate %489, %490, %491, %492, %493, %494, %495, %496, %497, %498, %499, %500, %501, %502, %503, %504 in 1 : vector<2x1x128xbf16>, vector<2x1x128xbf16>, vector<2x1x128xbf16>, vector<2x1x128xbf16>, vector<2x1x128xbf16>, vector<2x1x128xbf16>, vector<2x1x128xbf16>, vector<2x1x128xbf16>, vector<2x1x128xbf16>, vector<2x1x128xbf16>, vector<2x1x128xbf16>, vector<2x1x128xbf16>, vector<2x1x128xbf16>, vector<2x1x128xbf16>, vector<2x1x128xbf16>, vector<2x1x128xbf16> -> vector<2x16x128xbf16>
    %c0_76 = arith.constant 0 : index
    %c0_77 = arith.constant 0 : index
    %c0_78 = arith.constant 0 : index
    %506 = vector.load %arg3[%c0_76, %c0_77, %c0_78] : memref<2x16x128xbf16, #tpu.memory_space<vmem>>, vector<2x16x128xbf16>
    tpu.vector_store %arg3[%c0_76, %c0_77, %c0_78], %505 {strides = array<i32>} : memref<2x16x128xbf16, #tpu.memory_space<vmem>>, vector<2x16x128xbf16>,
    return
  }
  func.func @transform_0(%arg0: i32) -> (i32, i32, i32) {
    %c0_i32 = arith.constant 0 : i32
    %c0_i32_0 = arith.constant 0 : i32
    %c0_i32_1 = arith.constant 0 : i32
    return %c0_i32, %arg0, %c0_i32_0 : i32, i32, i32
  }
  func.func @transform_1(%arg0: i32) -> (i32, i32) {
    %c0_i32 = arith.constant 0 : i32
    %c0_i32_0 = arith.constant 0 : i32
    %c0_i32_1 = arith.constant 0 : i32
    return %c0_i32, %c0_i32_0 : i32, i32
  }
  func.func @transform_2(%arg0: i32) -> (i32, i32, i32) {
    %c0_i32 = arith.constant 0 : i32
    %c0_i32_0 = arith.constant 0 : i32
    %c0_i32_1 = arith.constant 0 : i32
    return %c0_i32, %arg0, %c0_i32_0 : i32, i32, i32
  }
}

</mosaic_0001>

<bundles_post_ra>
// kernel: lstm_model_forward.5
= control target key start
LH: loop header
LB: loop body
LE: loop exit
PB: predicated region body
PF: predicated region fallthrough
CT: control target
= control target key end

     0   :  { %10 = vsyncpa [#allocation3], 0  ;;  %s450_s0 = inlined_call_operand.vmem [shape: bf16[32,128], index: 0, kind: input, shape index: {}]   ;;  %s451_s1 = inlined_call_operand.vmem [shape: bf16[128,128], index: 1, kind: input, shape index: {}]   ;;  %s452_s2 = inlined_call_operand.vmem [shape: f32[1,128], index: 2, kind: input, shape index: {}]   ;;  %s453_s3 = inlined_call_operand.hbm [shape: f32[32,128], index: 3, kind: output, shape index: {0}]   ;;  %s454_s4 = inlined_call_operand.hbm [shape: f32[32,128], index: 4, kind: output, shape index: {1}]  }
   0x1   :  { %v280_v0 = vld [vmem:[%s451_s1] sm:$0xff]   ;;  %v281_v1 = vld [vmem:[%s451_s1 + $0x8] sm:$0xff]   ;;  %v282_v2 = vld [vmem:[%s451_s1 + $0x10] sm:$0xff]  }
   0x2   :  { %256 = vmatprep.subr.bf16.mxu0 %v280_v0  ;;  %v283_v3 = vld [vmem:[%s451_s1 + $0x18] sm:$0xff]   ;;  %v288_v4 = vld [vmem:[%s450_s0] sm:$0xff]  }
   0x3   :  { %257 = vmatpush3.bf16.msra.mxu0 %v280_v0  ;;  %272 = vmatprep.mubr.bf16.mxu0 %v288_v4 }
   0x4   :  { %258 = vmatprep.subr.bf16.mxu0 %v281_v1 }
   0x7   :  { %259 = vmatpush3.bf16.msra.mxu0 %v281_v1 }
   0x8   :  { %260 = vmatprep.subr.bf16.mxu0 %v282_v2 }
   0x9   :  { %11 = vsyncpa [#allocation5], 0  ;;  %v284_v5 = vld [vmem:[%s451_s1 + $0x20] sm:$0xff]   ;;  %v285_v6 = vld [vmem:[%s451_s1 + $0x28] sm:$0xff]  }
   0xa   :  { %v286_v7 = vld [vmem:[%s451_s1 + $0x30] sm:$0xff]   ;;  %v287_v8 = vld [vmem:[%s451_s1 + $0x38] sm:$0xff]   ;;  %v289_v9 = vld [vmem:[%s450_s0 + $0x8] sm:$0xff]   ;;  %s354_s0 = smov [#allocation4]  }
   0xb   :  { %261 = vmatpush3.bf16.msra.mxu0 %v282_v2  ;;  %v235_v10 = vld [vmem:[%s452_s2] ss:$0 sm:$0xff]  ;;  %s220_s1 = sshll.u32 %s354_s0, 4  ;;  %s221_s1 = int_to_ptr.vmem [resolvable:$true] %s220_s1 }
   0xc   :  { %262 = vmatprep.subr.bf16.mxu0 %v283_v3  ;;  %s306_s2 = scalar_lea.vmem %s221_s1, 512  ;;  %p311_p1 = scmp.lt.s32.totalorder %s221_s1, %s221_s1 }
   0xd   :  { %p307_p0 = scmp.ne.s32.totalorder %s221_s1, %s306_s2  ;;  %p312_p2 = scmp.lt.s32.totalorder %s306_s2, %s306_s2 }
   0xf   :  { %263 = vmatpush3.bf16.msra.mxu0 %v283_v3  ;;  %p313_p3 = por %p312_p2, %p311_p1 }
  0x10   :  { %264 = vmatprep.subr.bf16.mxu0 %v284_v5 }
  0x11   :  { %p314_p4 = pnand %p313_p3, %p307_p0 }
  0x13   :  { %265 = vmatpush3.bf16.msra.mxu0 %v284_v5 }
  0x14   :  { %266 = vmatprep.subr.bf16.mxu0 %v285_v6 }
  0x17   :  { %267 = vmatpush3.bf16.msra.mxu0 %v285_v6 }
  0x18   :  { %268 = vmatprep.subr.bf16.mxu0 %v286_v7 }
  0x1b   :  { %269 = vmatpush3.bf16.msra.mxu0 %v286_v7 }
  0x1c   :  { %270 = vmatprep.subr.bf16.mxu0 %v287_v8 }
  0x1f   :  { %271 = vmatpush3.bf16.msra.mxu0 %v287_v8 }
  0x22   :  { %273 = vmatmul.mubr.bf16.vlgmr.msra.gmra.mrb[0].mxu0 %v289_v9 }
  0xf5   :  { %v274_v11 = vpop.f32.mrb[0].mxu0 }
  0xf6   :  { %v149_v12 = vadd.f32 %v274_v11, %v235_v10  ;;  %v140_v13 = vpop.f32.mrb[1].mxu0 }
  0xf7   :  { %v141_v14 = vadd.f32 %v235_v10, %v140_v13  ;;  %v275_v15 = vpop.f32.mrb[2].mxu0 }
  0xf8   :  { %201 = vst [vmem:[#allocation4 + $0x10] sm:$0xff] %v149_v12  ;;  %v152_v16 = vadd.f32 %v275_v15, %v235_v10  ;;  %159 = vmax.xlane.f32.xlu1 %v149_v12  ;;  %v143_v17 = vpop.f32.mrb[3].mxu0 }
  0xf9   :  { %199 = vst [vmem:[#allocation4] sm:$0xff] %v141_v14  ;;  %v144_v18 = vadd.f32 %v235_v10, %v143_v17  ;;  %155 = vmax.xlane.f32.xlu0 %v141_v14 }
  0xfa   :  { %202 = vst [vmem:[#allocation4 + $0x18] sm:$0xff] %v152_v16 }
  0xfb   :  { %200 = vst [vmem:[#allocation4 + $0x8] sm:$0xff] %v144_v18 }
  0xfc   :  { %161 = vmax.xlane.f32.xlu1 %v152_v16 }
  0xfd   :  { %157 = vmax.xlane.f32.xlu0 %v144_v18 }
 0x185   :  { %v160_v19 = vpop.xlane.xlu1 %159 }
 0x186   :  { %v416_v20 = vsub.f32 %v149_v12, %v160_v19  ;;  %v156_v21 = vpop.xlane.xlu0 %155 }
 0x187   :  { %v163_v22 = vsub.f32 %v141_v14, %v156_v21 }
 0x188   :  { %v171_v25 = vmul.f32 1.442695, %v416_v20 }
 0x189   :  { %v167_v23 = vmul.f32 1.442695, %v163_v22  ;;  %v162_v24 = vpop.xlane.xlu1 %161 }
 0x18a   :  { %v158_v26 = vpop.xlane.xlu0 %157  ;;  %v166_v27 = vsub.f32 %v152_v16, %v162_v24 }
 0x18b   :  { %290 = vpow2.f32 %v167_v23  ;;  %v164_v28 = vsub.f32 %v144_v18, %v158_v26 }
 0x18c   :  { %292 = vpow2.f32 %v171_v25  ;;  %v173_v30 = vmul.f32 1.442695, %v166_v27 }
 0x18d   :  { %v169_v29 = vmul.f32 1.442695, %v164_v28 }
 0x18f   :  { %294 = vpow2.f32 %v169_v29 }
 0x190   :  { %296 = vpow2.f32 %v173_v30 }
 0x195   :  { %v291_v31 = vpop.eup %290 }
 0x196   :  { %175 = vadd.xlane.f32.xlu0 %v291_v31  ;;  %v293_v32 = vpop.eup %292 }
 0x199   :  { %v295_v33 = vpop.eup %294 }
 0x19a   :  { %179 = vadd.xlane.f32.xlu0 %v293_v32  ;;  %177 = vadd.xlane.f32.xlu1 %v295_v33  ;;  %v297_v34 = vpop.eup %296 }
 0x19e   :  { %181 = vadd.xlane.f32.xlu1 %v297_v34 }
 0x19f   :  { %317 = shalt.err (!%p314_p4)
}
 0x1a0   :  { %s318_s13 = scalar_lea.hbm %s454_s4, 512 }
 0x1a1   :  { %p319_p5 = scmp.ne.s32.totalorder %s454_s4, %s318_s13  ;;  %p322_p6 = scmp.lt.u32.totalorder %s318_s13, %s454_s4 }
 0x1a3   :  { %p324_p7 = pnand %p322_p6, %p319_p5 }
 0x1a5   :  { %327 = shalt.err (!%p324_p7)
}
 0x1a6   :  { %s355_s18 = smov 128   ;;  %s356_s19 = smov 8  }
 0x1a7   :  { %226 = dma.vmem_to_hbm [thread:$0]  %s221_s1, 512, %s454_s4, [#allocation5], %s355_s18, %s355_s18, %s356_s19  }
 0x1a8   :  { %s357_s4 = smov [#allocation2]  }
 0x1a9   :  { %s208_s22 = sshll.u32 %s357_s4, 4  ;;  %s209_s22 = int_to_ptr.vmem [resolvable:$true] %s208_s22 }
 0x1aa   :  { %s328_s23 = scalar_lea.vmem %s209_s22, 512  ;;  %p333_p9 = scmp.lt.s32.totalorder %s209_s22, %s209_s22 }
 0x1ab   :  { %p329_p8 = scmp.ne.s32.totalorder %s209_s22, %s328_s23  ;;  %p334_p10 = scmp.lt.s32.totalorder %s328_s23, %s328_s23 }
 0x1ad   :  { %p335_p11 = por %p334_p10, %p333_p9 }
 0x1af   :  { %p336_p12 = pnand %p335_p11, %p329_p8 }
 0x223   :  { %v176_v35 = vpop.xlane.xlu0 %175 }
 0x224   :  { %298 = vlog2.f32 %v176_v35 }
 0x227   :  { %v178_v36 = vpop.xlane.xlu1 %177  ;;  %v180_v37 = vpop.xlane.xlu0 %179 }
 0x228   :  { %300 = vlog2.f32 %v178_v36 }
 0x229   :  { %302 = vlog2.f32 %v180_v37 }
 0x22b   :  { %v182_v38 = vpop.xlane.xlu1 %181 }
 0x22c   :  { %304 = vlog2.f32 %v182_v38 }
 0x22e   :  { %v299_v39 = vpop.eup %298 }
 0x22f   :  { %v184_v40 = vmul.f32 0.6931472, %v299_v39 }
 0x231   :  { %v191_v41 = vsub.f32 %v163_v22, %v184_v40 }
 0x232   :  { %v301_v42 = vpop.eup %300 }
 0x233   :  { %v303_v43 = vpop.eup %302  ;;  %195 = vst [vmem:[#allocation2] sm:$0xff] %v191_v41  ;;  %v186_v44 = vmul.f32 0.6931472, %v301_v42 }
 0x234   :  { %v188_v45 = vmul.f32 0.6931472, %v303_v43 }
 0x235   :  { %v192_v46 = vsub.f32 %v164_v28, %v186_v44 }
 0x236   :  { %v305_v47 = vpop.eup %304  ;;  %v193_v48 = vsub.f32 %v416_v20, %v188_v45 }
 0x237   :  { %196 = vst [vmem:[#allocation2 + $0x8] sm:$0xff] %v192_v46  ;;  %v190_v49 = vmul.f32 0.6931472, %v305_v47 }
 0x238   :  { %197 = vst [vmem:[#allocation2 + $0x10] sm:$0xff] %v193_v48 }
 0x239   :  { %v194_v50 = vsub.f32 %v166_v27, %v190_v49 }
 0x23b   :  { %198 = vst [vmem:[#allocation2 + $0x18] sm:$0xff] %v194_v50 }
 0x23c   :  { %339 = shalt.err (!%p336_p12)
}
 0x23d   :  { %s340_s26 = scalar_lea.hbm %s453_s3, 512 }
 0x23e   :  { %p341_p13 = scmp.ne.s32.totalorder %s453_s3, %s340_s26  ;;  %p344_p0 = scmp.lt.u32.totalorder %s340_s26, %s453_s3 }
 0x240   :  { %p346_p1 = pnand %p344_p0, %p341_p13 }
 0x242   :  { %349 = shalt.err (!%p346_p1)
}
 0x243   :  { %214 = dma.vmem_to_hbm [thread:$0]  %s209_s22, 512, %s453_s3, [#allocation3], %s355_s18, %s355_s18, %s356_s19  }
 0x244   :  { %350 = dma.done.wait [#allocation3], 512  }
 0x245   :  { %351 = vsyncadd [#allocation3], 4294966784 }
 0x246   :  { %352 = dma.done.wait [#allocation5], 512  }
 0x247   :  { %353 = vsyncadd [#allocation5], 4294966784 }
 0x248   :  { %233 = vsyncpa [#allocation3], 1 }
 0x249   :  { %234 = vsyncpa [#allocation5], 1 }

// kernel: lstm_model_forward.3
= control target key start
LH: loop header
LB: loop body
LE: loop exit
PB: predicated region body
PF: predicated region fallthrough
CT: control target
= control target key end

     0   :  { %8 = vsyncpa [#allocation3], 0  ;;  %s265_s12 = smov [#allocation2]   ;;  %s365_s0 = inlined_call_operand.vmem [shape: bf16[32,16], index: 0, kind: input, shape index: {}]   ;;  %s366_s1 = inlined_call_operand.vmem [shape: bf16[16,512], index: 1, kind: input, shape index: {}]   ;;  %s367_s2 = inlined_call_operand.hbm [shape: f32[1,512], index: 2, kind: input, shape index: {}]   ;;  %s368_s3 = inlined_call_operand.vmem [shape: f32[32,512], index: 3, kind: output, shape index: {}]  }
   0x1   :  { %s19_s13 = sshll.u32 %s265_s12, 4  ;;  %s241_s16 = scalar_lea.hbm %s367_s2, 64  ;;  %s20_s13 = int_to_ptr.vmem [resolvable:$true] %s19_s13 }
   0x2   :  { %p242_p0 = scmp.ne.s32.totalorder %s367_s2, %s241_s16  ;;  %p245_p1 = scmp.lt.u32.totalorder %s241_s16, %s367_s2 }
   0x4   :  { %p247_p2 = pnand %p245_p1, %p242_p0 }
   0x6   :  { %250 = shalt.err (!%p247_p2)
}
   0x7   :  { %s251_s21 = scalar_lea.vmem %s20_s13, 64  ;;  %p256_p4 = scmp.lt.s32.totalorder %s20_s13, %s20_s13 }
   0x8   :  { %p252_p3 = scmp.ne.s32.totalorder %s20_s13, %s251_s21  ;;  %p257_p5 = scmp.lt.s32.totalorder %s251_s21, %s251_s21 }
   0xa   :  { %p258_p6 = por %p257_p5, %p256_p4 }
   0xc   :  { %p259_p7 = pnand %p258_p6, %p252_p3 }
   0xe   :  { %262 = shalt.err (!%p259_p7)
}
   0xf   :  { %22 = dma.hbm_to_vmem [thread:$0]  %s367_s2, 64, %s20_s13, [#allocation3]  }
  0x10   :  { %263 = dma.done.wait [#allocation3], 64  }
  0x11   :  { %264 = vsyncadd [#allocation3], 4294967232  ;;  %v266_v0 = vmov 0   ;;  %v233_v1 = vld [vmem:[%s366_s1 + $0x4] ss:$16 sps:$4 sm:$0xff]   ;;  %vm87_vm0 = vcmask 130048   ;;  %v37_v7 = vlaneseq }
  0x12   :  { %126 = vmatprep.mubr.bf16.mxu0 %v266_v0  ;;  %179 = vmatprep.mubr.bf16.mxu1 %v266_v0  ;;  %v235_v2 = vld [vmem:[%s366_s1 + $0xc] ss:$16 sps:$4 sm:$0xff]   ;;  %v237_v3 = vld [vmem:[%s366_s1] ss:$16 sps:$4 sm:$0xff]   ;;  %v238_v4 = vld [vmem:[%s366_s1 + $0x8] ss:$16 sps:$4 sm:$0xff]  }
  0x13   :  { %94 = vmatprep.subr.bf16.mxu0 %v233_v1  ;;  %147 = vmatprep.subr.bf16.mxu1 %v235_v2  ;;  %v239_v5 = vld [vmem:[%s365_s0] sm:$0xff]   ;;  %v240_v6 = vld [vmem:[%s365_s0 + $0x8] sm:$0xff]   ;;  %v38_v8 = vshrl.u32 %v37_v7, 7 }
  0x14   :  { %95 = vmatpush1.bf16.msra.mxu0 %v237_v3  ;;  %148 = vmatpush1.bf16.msra.mxu1 %v238_v4  ;;  %v35_v11 = vld [vmem:[#allocation2] sm:$0xf] }
  0x15   :  { %v39_v9 = vsub.s32 0, %v38_v8  ;;  %v47_v10 = vsub.s32 2, %v38_v8  ;;  %v43_v12 = vsub.s32 1, %v38_v8  ;;  %v51_v13 = vsub.s32 3, %v38_v8 }
  0x17   :  { %227 = vmatmul.mubr.msk.bf16.vlgmr.msra.gmra.mrb[0].mxu0 %vm87_vm0, %v239_v5  ;;  %229 = vmatmul.mubr.msk.bf16.vlgmr.msra.gmra.mrb[0].mxu1 %vm87_vm0, %v239_v5  ;;  %v40_v14 = vrot.slane %v35_v11, %v39_v9  ;;  %v48_v15 = vrot.slane %v35_v11, %v47_v10  ;;  %v44_v16 = vrot.slane %v35_v11, %v43_v12 }
  0x18   :  { %136 = vmatprep.mubr.bf16.mxu0 %v266_v0  ;;  %189 = vmatprep.mubr.bf16.mxu1 %v266_v0  ;;  %v52_v17 = vrot.slane %v35_v11, %v51_v13 }
  0x1f   :  { %228 = vmatmul.mubr.msk.bf16.gmra.mrb[4].mxu0 %vm87_vm0, %v240_v6  ;;  %230 = vmatmul.mubr.msk.bf16.gmra.mrb[4].mxu1 %vm87_vm0, %v240_v6 }
  0xea   :  { %v128_v18 = vpop.f32.mrb[0].mxu0  ;;  %v181_v19 = vpop.f32.mrb[0].mxu1 }
  0xeb   :  { %v129_v20 = vadd.f32 %v128_v18, %v40_v14  ;;  %v182_v21 = vadd.f32 %v181_v19, %v48_v15  ;;  %v130_v22 = vpop.f32.mrb[1].mxu0  ;;  %v183_v23 = vpop.f32.mrb[1].mxu1 }
  0xec   :  { %v131_v24 = vadd.f32 %v130_v22, %v44_v16  ;;  %v184_v25 = vadd.f32 %v183_v23, %v52_v17  ;;  %v132_v26 = vpop.f32.mrb[2].mxu0  ;;  %v185_v27 = vpop.f32.mrb[2].mxu1 }
  0xed   :  { %200 = vst [vmem:[%s368_s3] sm:$0xff] %v129_v20  ;;  %202 = vst [vmem:[%s368_s3 + $0x10] sm:$0xff] %v182_v21  ;;  %v133_v28 = vadd.f32 %v132_v26, %v40_v14  ;;  %v186_v29 = vadd.f32 %v185_v27, %v48_v15  ;;  %v134_v30 = vpop.f32.mrb[3].mxu0  ;;  %v187_v31 = vpop.f32.mrb[3].mxu1 }
  0xee   :  { %201 = vst [vmem:[%s368_s3 + $0x8] sm:$0xff] %v131_v24  ;;  %203 = vst [vmem:[%s368_s3 + $0x18] sm:$0xff] %v184_v25  ;;  %v135_v32 = vadd.f32 %v134_v30, %v44_v16  ;;  %v188_v33 = vadd.f32 %v187_v31, %v52_v17 }
  0xef   :  { %204 = vst [vmem:[%s368_s3 + $0x20] sm:$0xff] %v133_v28  ;;  %206 = vst [vmem:[%s368_s3 + $0x30] sm:$0xff] %v186_v29 }
  0xf0   :  { %205 = vst [vmem:[%s368_s3 + $0x28] sm:$0xff] %v135_v32  ;;  %207 = vst [vmem:[%s368_s3 + $0x38] sm:$0xff] %v188_v33 }
  0xf2   :  { %v138_v34 = vpop.f32.mrb[4].mxu0  ;;  %v191_v35 = vpop.f32.mrb[4].mxu1 }
  0xf3   :  { %v139_v36 = vadd.f32 %v138_v34, %v40_v14  ;;  %v192_v37 = vadd.f32 %v191_v35, %v48_v15  ;;  %v140_v38 = vpop.f32.mrb[5].mxu0  ;;  %v193_v39 = vpop.f32.mrb[5].mxu1 }
  0xf4   :  { %v141_v40 = vadd.f32 %v140_v38, %v44_v16  ;;  %v194_v41 = vadd.f32 %v193_v39, %v52_v17  ;;  %v142_v42 = vpop.f32.mrb[6].mxu0  ;;  %v195_v43 = vpop.f32.mrb[6].mxu1 }
  0xf5   :  { %208 = vst [vmem:[%s368_s3 + $0x40] sm:$0xff] %v139_v36  ;;  %210 = vst [vmem:[%s368_s3 + $0x50] sm:$0xff] %v192_v37  ;;  %v143_v44 = vadd.f32 %v142_v42, %v40_v14  ;;  %v196_v45 = vadd.f32 %v195_v43, %v48_v15  ;;  %v144_v46 = vpop.f32.mrb[7].mxu0  ;;  %v197_v47 = vpop.f32.mrb[7].mxu1 }
  0xf6   :  { %209 = vst [vmem:[%s368_s3 + $0x48] sm:$0xff] %v141_v40  ;;  %211 = vst [vmem:[%s368_s3 + $0x58] sm:$0xff] %v194_v41  ;;  %v145_v48 = vadd.f32 %v144_v46, %v44_v16  ;;  %v198_v49 = vadd.f32 %v197_v47, %v52_v17 }
  0xf7   :  { %212 = vst [vmem:[%s368_s3 + $0x60] sm:$0xff] %v143_v44  ;;  %214 = vst [vmem:[%s368_s3 + $0x70] sm:$0xff] %v196_v45 }
  0xf8   :  { %213 = vst [vmem:[%s368_s3 + $0x68] sm:$0xff] %v145_v48  ;;  %215 = vst [vmem:[%s368_s3 + $0x78] sm:$0xff] %v198_v49 }
  0xf9   :  { %220 = vsyncpa [#allocation3], 1 }

// kernel: lstm_model_forward.4
= control target key start
LH: loop header
LB: loop body
LE: loop exit
PB: predicated region body
PF: predicated region fallthrough
CT: control target
= control target key end

     0   :  { %v5759_v1 = vmov 0   ;;  %v4045_v34 = vmov 0.0   ;;  %vm393_vm0 = vcmask 1041409   ;;  %vm3112_vm1 = vcmask 1040384   ;;  %s5756_s1 = inlined_call_operand.vmem [shape: bf16[128,512], index: 1, kind: input, shape index: {}]   ;;  %s5757_s0 = inlined_call_operand.vmem [shape: f32[2,16,512], index: 0, kind: input, shape index: {}]   ;;  %s5758_s2 = inlined_call_operand.vmem [shape: bf16[2,16,128], index: 2, kind: output, shape index: {}]  }
   0x1   :  { %v4066_v0 = vld [vmem:[%s5756_s1 + $0x4] ss:$16 sps:$4 sm:$0xff]   ;;  %260 = vmatprep.mubr.bf16.mxu0 %v5759_v1  ;;  %16 = vst [vmem:[#allocation2] sm:$0x1] %v5759_v1  ;;  %301 = vmatprep.mubr.bf16.mxu1 %v5759_v1  ;;  %v4074_v2 = vld [vmem:[%s5756_s1] ss:$16 sps:$4 sm:$0xff]  }
   0x2   :  { %5779 = vst [vmem:[#allocation4_spill] sm:$0xff] %v4066_v0  ;;  %228 = vmatprep.subr.bf16.mxu0 %v4066_v0  ;;  %v4080_v3 = vld [vmem:[%s5756_s1 + $0x24] ss:$16 sps:$4 sm:$0xff]   ;;  %v4086_v4 = vld [vmem:[%s5756_s1 + $0x20] ss:$16 sps:$4 sm:$0xff]   ;;  %v4302_v36 = vld [vmem:[%s5757_s0 + $0x8] sm:$0xff] }
   0x3   :  { %229 = vmatpush1.bf16.msra.mxu0 %v4074_v2  ;;  %v4092_v5 = vld [vmem:[%s5756_s1 + $0x44] ss:$16 sps:$4 sm:$0xff]   ;;  %v4097_v6 = vld [vmem:[%s5756_s1 + $0xc] ss:$16 sps:$4 sm:$0xff]   ;;  %v4102_v7 = vld [vmem:[%s5756_s1 + $0x8] ss:$16 sps:$4 sm:$0xff]  }
   0x4   :  { %230 = vmatprep.subr.bf16.mxu0 %v4080_v3  ;;  %5780 = vst [vmem:[#allocation5_spill] sm:$0xff] %v4097_v6  ;;  %v4108_v8 = vld [vmem:[%s5756_s1 + $0x40] ss:$16 sps:$4 sm:$0xff]   ;;  %269 = vmatprep.subr.bf16.mxu1 %v4097_v6  ;;  %v4115_v9 = vld [vmem:[%s5756_s1 + $0x64] ss:$16 sps:$4 sm:$0xff]   ;;  %v4313_v41 = vld [vmem:[%s5757_s0 + $0x48] sm:$0xff] }
   0x5   :  { %270 = vmatpush1.bf16.msra.mxu1 %v4102_v7  ;;  %v4121_v10 = vld [vmem:[%s5756_s1 + $0x2c] ss:$16 sps:$4 sm:$0xff]   ;;  %v4126_v11 = vld [vmem:[%s5756_s1 + $0x28] ss:$16 sps:$4 sm:$0xff]   ;;  %v4133_v12 = vld [vmem:[%s5756_s1 + $0x60] ss:$16 sps:$4 sm:$0xff]  }
   0x6   :  { %271 = vmatprep.subr.bf16.mxu1 %v4121_v10  ;;  %v4138_v13 = vld [vmem:[%s5756_s1 + $0x84] ss:$16 sps:$4 sm:$0xff]   ;;  %v4143_v14 = vld [vmem:[%s5756_s1 + $0x4c] ss:$16 sps:$4 sm:$0xff]   ;;  %v4150_v15 = vld [vmem:[%s5756_s1 + $0x48] ss:$16 sps:$4 sm:$0xff]  }
   0x7   :  { %231 = vmatpush1.bf16.msra.mxu0 %v4086_v4  ;;  %v4156_v16 = vld [vmem:[%s5756_s1 + $0x6c] ss:$16 sps:$4 sm:$0xff]   ;;  %v4162_v17 = vld [vmem:[%s5756_s1 + $0x80] ss:$16 sps:$4 sm:$0xff]   ;;  %v4168_v18 = vld [vmem:[%s5756_s1 + $0xa4] ss:$16 sps:$4 sm:$0xff]  }
   0x8   :  { %232 = vmatprep.subr.bf16.mxu0 %v4092_v5  ;;  %v4174_v19 = vld [vmem:[%s5756_s1 + $0x68] ss:$16 sps:$4 sm:$0xff]   ;;  %v4180_v20 = vld [vmem:[%s5756_s1 + $0x8c] ss:$16 sps:$4 sm:$0xff]   ;;  %v4185_v21 = vld [vmem:[%s5756_s1 + $0xa0] ss:$16 sps:$4 sm:$0xff]  }
   0x9   :  { %272 = vmatpush1.bf16.msra.mxu1 %v4126_v11  ;;  %v4191_v22 = vld [vmem:[%s5756_s1 + $0xc4] ss:$16 sps:$4 sm:$0xff]   ;;  %v4198_v23 = vld [vmem:[%s5756_s1 + $0x88] ss:$16 sps:$4 sm:$0xff]   ;;  %v4204_v24 = vld [vmem:[%s5756_s1 + $0xac] ss:$16 sps:$4 sm:$0xff]  }
   0xa   :  { %273 = vmatprep.subr.bf16.mxu1 %v4143_v14  ;;  %v4210_v25 = vld [vmem:[%s5756_s1 + $0xc0] ss:$16 sps:$4 sm:$0xff]   ;;  %v4216_v26 = vld [vmem:[%s5756_s1 + $0xe4] ss:$16 sps:$4 sm:$0xff]   ;;  %v4222_v27 = vld [vmem:[%s5756_s1 + $0xa8] ss:$16 sps:$4 sm:$0xff]  }
   0xb   :  { %233 = vmatpush1.bf16.msra.mxu0 %v4108_v8  ;;  %v4228_v28 = vld [vmem:[%s5756_s1 + $0xcc] ss:$16 sps:$4 sm:$0xff]   ;;  %v4234_v29 = vld [vmem:[%s5756_s1 + $0xe0] ss:$16 sps:$4 sm:$0xff]   ;;  %v4241_v30 = vld [vmem:[%s5756_s1 + $0xc8] ss:$16 sps:$4 sm:$0xff]  }
   0xc   :  { %234 = vmatprep.subr.bf16.mxu0 %v4115_v9  ;;  %v4247_v31 = vld [vmem:[%s5756_s1 + $0xec] ss:$16 sps:$4 sm:$0xff]   ;;  %v66_v32 = vld [vmem:[#allocation2] sm:$0x1]  ;;  %v4254_v33 = vld [vmem:[%s5756_s1 + $0xe8] ss:$16 sps:$4 sm:$0xff]  }
   0xd   :  { %274 = vmatpush1.bf16.msra.mxu1 %v4150_v15  ;;  %5781 = vst [vmem:[#allocation6_spill] sm:$0xff] %v4254_v33  ;;  %17 = vst [vmem:[#allocation3] sm:$0x3] %v4045_v34  ;;  %v4297_v35 = vld [vmem:[%s5757_s0] sm:$0xff]  ;;  %v4321_v51 = vld [vmem:[%s5757_s0 + $0x18] sm:$0xff]  ;;  %vm3126_vm4 = vcmask 1041408  }
   0xe   :  { %275 = vmatprep.subr.bf16.mxu1 %v4156_v16  ;;  %v4307_v37 = vld [vmem:[%s5757_s0 + $0x40] sm:$0xff]  ;;  %v4326_v55 = vld [vmem:[%s5757_s0 + $0x58] sm:$0xff]  ;;  %v4331_v57 = vld [vmem:[%s5757_s0 + $0x10] sm:$0xff]  ;;  %vm3113_vm2 = vsmask.f32 256  ;;  %vm3140_vm7 = vcmask 1042432  }
   0xf   :  { %235 = vmatpush1.bf16.msra.mxu0 %v4133_v12  ;;  %vm3114_vm3 = vmand %vm3112_vm1, %vm3113_vm2  ;;  %vm3127_vm5 = vsmask.f32 1280  ;;  %vm3141_vm8 = vsmask.f32 2304  ;;  %vm3154_vm10 = vcmask 1043456   ;;  %vm3168_vm13 = vcmask 1044480  }
  0x10   :  { %236 = vmatprep.subr.bf16.mxu0 %v4138_v13  ;;  %vm4522_vm6 = vmand %vm3126_vm4, %vm3127_vm5  ;;  %vm3155_vm11 = vsmask.f32 3328  ;;  %vm3169_vm14 = vsmask.f32 4352  ;;  %vm3183_vm2 = vsmask.f32 5376 }
  0x11   :  { %276 = vmatpush1.bf16.msra.mxu1 %v4174_v19  ;;  %vm4859_vm9 = vmand %vm3140_vm7, %vm3141_vm8  ;;  %vm3197_vm5 = vsmask.f32 6400  ;;  %vm3211_vm8 = vsmask.f32 7424 }
  0x12   :  { %277 = vmatprep.subr.bf16.mxu1 %v4180_v20  ;;  %vm4996_vm12 = vmand %vm3154_vm10, %vm3155_vm11 }
  0x13   :  { %237 = vmatpush1.bf16.msra.mxu0 %v4162_v17  ;;  %vm3170_vm15 = vmand %vm3168_vm13, %vm3169_vm14 }
  0x14   :  { %238 = vmatprep.subr.bf16.mxu0 %v4168_v18 }
  0x15   :  { %278 = vmatpush1.bf16.msra.mxu1 %v4198_v23 }
  0x16   :  { %279 = vmatprep.subr.bf16.mxu1 %v4204_v24 }
  0x17   :  { %239 = vmatpush1.bf16.msra.mxu0 %v4185_v21 }
  0x18   :  { %240 = vmatprep.subr.bf16.mxu0 %v4191_v22 }
  0x19   :  { %280 = vmatpush1.bf16.msra.mxu1 %v4222_v27 }
  0x1a   :  { %281 = vmatprep.subr.bf16.mxu1 %v4228_v28 }
  0x1b   :  { %241 = vmatpush1.bf16.msra.mxu0 %v4210_v25 }
  0x1c   :  { %242 = vmatprep.subr.bf16.mxu0 %v4216_v26 }
  0x1d   :  { %282 = vmatpush1.bf16.msra.mxu1 %v4241_v30 }
  0x1e   :  { %283 = vmatprep.subr.bf16.mxu1 %v4247_v31 }
  0x1f   :  { %243 = vmatpush1.bf16.msra.mxu0 %v4234_v29 }
  0x20   :  { %397 = vmatprep.subr.bf16.mxu0 %v4066_v0 }
  0x21   :  { %284 = vmatpush1.bf16.msra.mxu1 %v4254_v33 }
  0x22   :  { %261 = vmatmul.mubr.bf16.vlgmr.msra.gmra.mrb[0].mxu0 %v66_v32  ;;  %438 = vmatprep.subr.bf16.mxu1 %v4097_v6 }
  0x23   :  { %398 = vmatpush1.bf16.msra.mxu0 %v4074_v2  ;;  %429 = vmatprep.mubr.bf16.mxu0 %v5759_v1 }
  0x24   :  { %399 = vmatprep.subr.bf16.mxu0 %v4080_v3  ;;  %302 = vmatmul.mubr.bf16.vlgmr.msra.gmra.mrb[0].mxu1 %v66_v32  ;;  %v4338_v32 = vld [vmem:[%s5757_s0 + $0x50] sm:$0xff] }
  0x25   :  { %439 = vmatpush1.bf16.msra.mxu1 %v4102_v7  ;;  %470 = vmatprep.mubr.bf16.mxu1 %v5759_v1 }
  0x26   :  { %440 = vmatprep.subr.bf16.mxu1 %v4121_v10 }
  0x27   :  { %400 = vmatpush1.bf16.msra.mxu0 %v4086_v4 }
  0x28   :  { %401 = vmatprep.subr.bf16.mxu0 %v4092_v5 }
  0x29   :  { %441 = vmatpush1.bf16.msra.mxu1 %v4126_v11 }
  0x2a   :  { %442 = vmatprep.subr.bf16.mxu1 %v4143_v14 }
  0x2b   :  { %402 = vmatpush1.bf16.msra.mxu0 %v4108_v8 }
  0x2c   :  { %403 = vmatprep.subr.bf16.mxu0 %v4115_v9 }
  0x2d   :  { %443 = vmatpush1.bf16.msra.mxu1 %v4150_v15 }
  0x2e   :  { %444 = vmatprep.subr.bf16.mxu1 %v4156_v16 }
  0x2f   :  { %404 = vmatpush1.bf16.msra.mxu0 %v4133_v12 }
  0x30   :  { %405 = vmatprep.subr.bf16.mxu0 %v4138_v13 }
  0x31   :  { %445 = vmatpush1.bf16.msra.mxu1 %v4174_v19 }
  0x32   :  { %446 = vmatprep.subr.bf16.mxu1 %v4180_v20 }
  0x33   :  { %406 = vmatpush1.bf16.msra.mxu0 %v4162_v17 }
  0x34   :  { %407 = vmatprep.subr.bf16.mxu0 %v4168_v18 }
  0x35   :  { %447 = vmatpush1.bf16.msra.mxu1 %v4198_v23 }
  0x36   :  { %448 = vmatprep.subr.bf16.mxu1 %v4204_v24 }
  0x37   :  { %408 = vmatpush1.bf16.msra.mxu0 %v4185_v21 }
  0x38   :  { %409 = vmatprep.subr.bf16.mxu0 %v4191_v22 }
  0x39   :  { %449 = vmatpush1.bf16.msra.mxu1 %v4222_v27 }
  0x3a   :  { %450 = vmatprep.subr.bf16.mxu1 %v4228_v28 }
  0x3b   :  { %410 = vmatpush1.bf16.msra.mxu0 %v4210_v25 }
  0x3c   :  { %411 = vmatprep.subr.bf16.mxu0 %v4216_v26 }
  0x3d   :  { %451 = vmatpush1.bf16.msra.mxu1 %v4241_v30 }
  0x3e   :  { %452 = vmatprep.subr.bf16.mxu1 %v4247_v31 }
  0x3f   :  { %412 = vmatpush1.bf16.msra.mxu0 %v4234_v29 }
  0x40   :  { %567 = vmatprep.subr.bf16.mxu0 %v4066_v0 }
  0x41   :  { %453 = vmatpush1.bf16.msra.mxu1 %v4254_v33 }
  0x42   :  { %608 = vmatprep.subr.bf16.mxu1 %v4097_v6 }
  0xf5   :  { %v262_v38 = vpop.f32.mrb[0].mxu0 }
  0xf6   :  { %v314_v39 = vrot.slane %v262_v38, 1  ;;  %v326_v40 = vadd.f32 %v262_v38, %v4297_v35  ;;  %v264_v42 = vpop.f32.mrb[1].mxu0 }
  0xf7   :  { %v315_v43 = vrot.slane %v264_v42, 1  ;;  %v327_v44 = vadd.f32 %v264_v42, %v4302_v36  ;;  %v266_v45 = vpop.f32.mrb[2].mxu0  ;;  %v303_v53 = vpop.f32.mrb[0].mxu1 }
  0xf8   :  { %v330_v46 = vadd.f32 %v314_v39, %v4307_v37  ;;  %v3269_v47 = vmul.f32 -1.442695, %v326_v40  ;;  %v267_v48 = vpop.f32.mrb[3].mxu0  ;;  %v305_v56 = vpop.f32.mrb[1].mxu1  ;;  %v316_v62 = vrot.slane %v303_v53, 1  ;;  %v328_v34 = vadd.f32 %v303_v53, %v4331_v57 }
  0xf9   :  { %v331_v49 = vadd.f32 %v315_v43, %v4313_v41  ;;  %v3271_v50 = vmul.f32 -1.442695, %v327_v44  ;;  %v317_v58 = vrot.slane %v305_v56, 1  ;;  %v329_v59 = vadd.f32 %v305_v56, %v4321_v51  ;;  %v307_v60 = vpop.f32.mrb[2].mxu1  ;;  %v67_v53 = vld [vmem:[#allocation3] sm:$0x3] }
  0xfa   :  { %3422 = vpow2.f32 %v3269_v47  ;;  %v3270_v52 = vmul.f32 -1.442695, %v330_v46  ;;  %v308_v61 = vpop.f32.mrb[3].mxu1  ;;  %v332_v40 = vadd.f32 %v316_v62, %v4338_v32 }
  0xfb   :  { %3424 = vpow2.f32 %v3271_v50  ;;  %v3272_v54 = vmul.f32 -1.442695, %v331_v49  ;;  %v333_v63 = vadd.f32 %v317_v58, %v4326_v55  ;;  %v3273_v38 = vmul.f32 -1.442695, %v329_v59 }
  0xfc   :  { %3426 = vpow2.f32 %v3270_v52  ;;  %v373_v59 = vrot.slane %v67_v53, 1 }
  0xfd   :  { %3428 = vpow2.f32 %v3272_v54  ;;  %v3274_v39 = vmul.f32 -1.442695, %v333_v63 }
  0xfe   :  { %3430 = vtanh.f32 %v328_v34 }
  0xff   :  { %3432 = vpow2.f32 %v3273_v38 }
 0x100   :  { %3434 = vpow2.f32 %v3274_v39 }
 0x101   :  { %3436 = vtanh.f32 %v332_v40 }
 0x104   :  { %v3423_v42 = vpop.eup %3422 }
 0x105   :  { %v3425_v43 = vpop.eup %3424  ;;  %v340_v44 = vadd.f32 1.0, %v3423_v42 }
 0x106   :  { %v3427_v45 = vpop.eup %3426  ;;  %v352_v46 = vadd.f32 1.0, %v3425_v43 }
 0x107   :  { %v3429_v47 = vpop.eup %3428  ;;  %v341_v48 = vadd.f32 1.0, %v3427_v45  ;;  %3438 = vrcp.f32 %v340_v44 }
 0x108   :  { %v353_v49 = vadd.f32 1.0, %v3429_v47  ;;  %3440 = vrcp.f32 %v352_v46  ;;  %v3431_v50 = vpop.eup %3430 }
 0x109   :  { %3442 = vrcp.f32 %v341_v48  ;;  %v3433_v52 = vpop.eup %3432 }
 0x10a   :  { %3444 = vrcp.f32 %v353_v49  ;;  %v3435_v54 = vpop.eup %3434  ;;  %v366_v60 = vadd.f32 1.0, %v3433_v52 }
 0x10b   :  { %v3437_v56 = vpop.eup %3436  ;;  %v367_v63 = vadd.f32 1.0, %v3435_v54 }
 0x10c   :  { %3446 = vrcp.f32 %v366_v60 }
 0x10d   :  { %3448 = vrcp.f32 %v367_v63 }
 0x111   :  { %v3439_v58 = vpop.eup %3438 }
 0x112   :  { %v3441_v61 = vpop.eup %3440  ;;  %v378_v62 = vmul.f32 %v3439_v58, %v3431_v50 }
 0x113   :  { %v3443_v34 = vpop.eup %3442  ;;  %v376_v38 = vmul.f32 %v3441_v61, %v67_v53 }
 0x114   :  { %v3445_v39 = vpop.eup %3444  ;;  %v379_v40 = vmul.f32 %v3443_v34, %v3437_v56 }
 0x115   :  { %v377_v42 = vmul.f32 %v3445_v39, %v373_v59  ;;  %v4342_v43 = vadd.f32 %v378_v62, %v376_v38 }
 0x116   :  { %v3447_v45 = vpop.eup %3446 }
 0x117   :  { %v4344_v44 = vadd.f32 %v379_v40, %v377_v42  ;;  %3450 = vtanh.f32 %v4342_v43  ;;  %v3449_v46 = vpop.eup %3448 }
 0x119   :  { %3452 = vtanh.f32 %v4344_v44 }
 0x121   :  { %v3451_v47 = vpop.eup %3450 }
 0x122   :  { %v384_v48 = vmul.f32 %v3451_v47, %v3447_v45 }
 0x123   :  { %v3453_v49 = vpop.eup %3452 }
 0x124   :  { %v385_v50 = vmul.f32 %v3453_v49, %v3449_v46  ;;  %v4348_v52 = vpack.c.bf16 %v384_v48, %v384_v48 }
 0x126   :  { %v4350_v53 = vpack.c.bf16 %v385_v50, %v385_v50  ;;  %v390_v56 = vunpack.c.l.b16 %v4348_v52 }
 0x128   :  { %v391_v54 = vunpack.c.l.b16 %v4350_v53 }
 0x12a   :  { %v392_v58 = vrot.slane %v391_v54, 7 }
 0x12c   :  { %v394_v59 = vsel %vm393_vm0, %v392_v58, %v390_v56 }
 0x12d   :  { %v395_v60 = vpack.c.b16 %v394_v59, %v394_v59 }
 0x12f   :  { %430 = vmatmul.mubr.bf16.vlgmr.msra.gmra.mrb[4].mxu0 %v395_v60  ;;  %471 = vmatmul.mubr.bf16.vlgmr.msra.gmra.mrb[4].mxu1 %v395_v60 }
 0x130   :  { %568 = vmatpush1.bf16.msra.mxu0 %v4074_v2  ;;  %609 = vmatpush1.bf16.msra.mxu1 %v4102_v7 }
 0x131   :  { %569 = vmatprep.subr.bf16.mxu0 %v4080_v3  ;;  %610 = vmatprep.subr.bf16.mxu1 %v4121_v10 }
 0x132   :  { %599 = vmatprep.mubr.bf16.mxu0 %v5759_v1  ;;  %640 = vmatprep.mubr.bf16.mxu1 %v5759_v1 }
 0x134   :  { %570 = vmatpush1.bf16.msra.mxu0 %v4086_v4  ;;  %611 = vmatpush1.bf16.msra.mxu1 %v4126_v11 }
 0x135   :  { %571 = vmatprep.subr.bf16.mxu0 %v4092_v5  ;;  %612 = vmatprep.subr.bf16.mxu1 %v4143_v14 }
 0x138   :  { %572 = vmatpush1.bf16.msra.mxu0 %v4108_v8  ;;  %613 = vmatpush1.bf16.msra.mxu1 %v4150_v15 }
 0x139   :  { %573 = vmatprep.subr.bf16.mxu0 %v4115_v9  ;;  %614 = vmatprep.subr.bf16.mxu1 %v4156_v16 }
 0x13c   :  { %574 = vmatpush1.bf16.msra.mxu0 %v4133_v12  ;;  %615 = vmatpush1.bf16.msra.mxu1 %v4174_v19 }
 0x13d   :  { %575 = vmatprep.subr.bf16.mxu0 %v4138_v13  ;;  %616 = vmatprep.subr.bf16.mxu1 %v4180_v20 }
 0x140   :  { %576 = vmatpush1.bf16.msra.mxu0 %v4162_v17  ;;  %617 = vmatpush1.bf16.msra.mxu1 %v4198_v23 }
 0x141   :  { %577 = vmatprep.subr.bf16.mxu0 %v4168_v18  ;;  %618 = vmatprep.subr.bf16.mxu1 %v4204_v24 }
 0x144   :  { %578 = vmatpush1.bf16.msra.mxu0 %v4185_v21  ;;  %619 = vmatpush1.bf16.msra.mxu1 %v4222_v27 }
 0x145   :  { %579 = vmatprep.subr.bf16.mxu0 %v4191_v22  ;;  %620 = vmatprep.subr.bf16.mxu1 %v4228_v28 }
 0x148   :  { %580 = vmatpush1.bf16.msra.mxu0 %v4210_v25  ;;  %621 = vmatpush1.bf16.msra.mxu1 %v4241_v30 }
 0x149   :  { %581 = vmatprep.subr.bf16.mxu0 %v4216_v26  ;;  %622 = vmatprep.subr.bf16.mxu1 %v4247_v31 }
 0x14c   :  { %582 = vmatpush1.bf16.msra.mxu0 %v4234_v29  ;;  %623 = vmatpush1.bf16.msra.mxu1 %v4254_v33 }
 0x14d   :  { %742 = vmatprep.subr.bf16.mxu0 %v4066_v0  ;;  %783 = vmatprep.subr.bf16.mxu1 %v4097_v6 }
 0x202   :  { %v431_v61 = vpop.f32.mrb[4].mxu0  ;;  %v472_v62 = vpop.f32.mrb[4].mxu1 }
 0x203   :  { %v483_v63 = vrot.slane %v431_v61, 7  ;;  %v499_v34 = vadd.f32 %v431_v61, %v4307_v37  ;;  %v433_v38 = vpop.f32.mrb[5].mxu0  ;;  %v474_v39 = vpop.f32.mrb[5].mxu1 }
 0x204   :  { %v484_v40 = vrot.slane %v433_v38, 7  ;;  %v500_v42 = vadd.f32 %v433_v38, %v4313_v41  ;;  %v435_v45 = vpop.f32.mrb[6].mxu0  ;;  %v476_v46 = vpop.f32.mrb[6].mxu1  ;;  %v486_v56 = vrot.slane %v474_v39, 7  ;;  %v502_v38 = vadd.f32 %v474_v39, %v4326_v55 }
 0x205   :  { %v495_v47 = vadd.f32 %v483_v63, %v4297_v35  ;;  %v3276_v48 = vmul.f32 -1.442695, %v499_v34  ;;  %v436_v49 = vpop.f32.mrb[7].mxu0  ;;  %v477_v50 = vpop.f32.mrb[7].mxu1  ;;  %v485_v45 = vrot.slane %v472_v62, 7  ;;  %v501_v63 = vadd.f32 %v472_v62, %v4338_v32 }
 0x206   :  { %v496_v54 = vadd.f32 %v484_v40, %v4302_v36  ;;  %v3278_v59 = vmul.f32 -1.442695, %v500_v42  ;;  %v498_v61 = vadd.f32 %v486_v56, %v4321_v51  ;;  %v3280_v46 = vmul.f32 -1.442695, %v502_v38 }
 0x207   :  { %v3275_v58 = vmul.f32 -1.442695, %v495_v47  ;;  %3454 = vpow2.f32 %v3276_v48  ;;  %v497_v40 = vadd.f32 %v485_v45, %v4331_v57 }
 0x208   :  { %v3277_v60 = vmul.f32 -1.442695, %v496_v54  ;;  %v3279_v34 = vmul.f32 -1.442695, %v498_v61 }
 0x209   :  { %3456 = vpow2.f32 %v3275_v58 }
 0x20a   :  { %3458 = vpow2.f32 %v3277_v60 }
 0x20b   :  { %3460 = vpow2.f32 %v3278_v59 }
 0x20c   :  { %3462 = vtanh.f32 %v501_v63  ;;  %v543_v63 = vrot.slane %v4342_v43, 7 }
 0x20d   :  { %3464 = vpow2.f32 %v3279_v34 }
 0x20e   :  { %3466 = vpow2.f32 %v3280_v46 }
 0x211   :  { %v3455_v49 = vpop.eup %3454 }
 0x212   :  { %v510_v47 = vadd.f32 1.0, %v3455_v49 }
 0x213   :  { %v3457_v42 = vpop.eup %3456 }
 0x214   :  { %v3459_v48 = vpop.eup %3458  ;;  %v509_v50 = vadd.f32 1.0, %v3457_v42  ;;  %3468 = vrcp.f32 %v510_v47  ;;  %v544_v47 = vrot.slane %v4344_v44, 7 }
 0x215   :  { %v3461_v54 = vpop.eup %3460  ;;  %3470 = vtanh.f32 %v497_v40  ;;  %v521_v56 = vadd.f32 1.0, %v3459_v48 }
 0x216   :  { %3472 = vrcp.f32 %v509_v50  ;;  %v522_v39 = vadd.f32 1.0, %v3461_v54  ;;  %v3463_v62 = vpop.eup %3462 }
 0x217   :  { %3474 = vrcp.f32 %v521_v56  ;;  %v3465_v58 = vpop.eup %3464 }
 0x218   :  { %3476 = vrcp.f32 %v522_v39  ;;  %v3467_v59 = vpop.eup %3466  ;;  %v535_v34 = vadd.f32 1.0, %v3465_v58 }
 0x219   :  { %v536_v40 = vadd.f32 1.0, %v3467_v59 }
 0x21a   :  { %3478 = vrcp.f32 %v535_v34 }
 0x21b   :  { %3480 = vrcp.f32 %v536_v40 }
 0x21e   :  { %v3469_v60 = vpop.eup %3468 }
 0x21f   :  { %v3471_v61 = vpop.eup %3470  ;;  %v550_v38 = vmul.f32 %v3469_v60, %v3463_v62 }
 0x220   :  { %v3473_v45 = vpop.eup %3472 }
 0x221   :  { %v3475_v46 = vpop.eup %3474  ;;  %v549_v49 = vmul.f32 %v3473_v45, %v3471_v61 }
 0x222   :  { %v3477_v42 = vpop.eup %3476  ;;  %v547_v48 = vmul.f32 %v3475_v46, %v543_v63 }
 0x223   :  { %v548_v50 = vmul.f32 %v3477_v42, %v544_v47 }
 0x224   :  { %v4399_v54 = vadd.f32 %v549_v49, %v547_v48  ;;  %v3479_v43 = vpop.eup %3478 }
 0x225   :  { %v4401_v56 = vadd.f32 %v550_v38, %v548_v50  ;;  %v3481_v39 = vpop.eup %3480 }
 0x226   :  { %3482 = vtanh.f32 %v4399_v54 }
 0x227   :  { %3484 = vtanh.f32 %v4401_v56 }
 0x230   :  { %v3483_v62 = vpop.eup %3482 }
 0x231   :  { %v3485_v58 = vpop.eup %3484  ;;  %v555_v60 = vmul.f32 %v3483_v62, %v3479_v43 }
 0x232   :  { %v556_v44 = vmul.f32 %v3485_v58, %v3481_v39 }
 0x233   :  { %v4405_v59 = vpack.c.bf16 %v555_v60, %v555_v60 }
 0x234   :  { %v4407_v61 = vpack.c.bf16 %v556_v44, %v556_v44 }
 0x235   :  { %v561_v45 = vunpack.c.l.b16 %v4405_v59 }
 0x236   :  { %v562_v38 = vunpack.c.l.b16 %v4407_v61 }
 0x237   :  { %v563_v63 = vrot.slane %v561_v45, 1 }
 0x239   :  { %v564_v34 = vsel %vm393_vm0, %v562_v38, %v563_v63 }
 0x23a   :  { %v565_v46 = vpack.c.b16 %v564_v34, %v564_v34 }
 0x23c   :  { %600 = vmatmul.mubr.bf16.vlgmr.msra.gmra.mrb[8].mxu0 %v565_v46  ;;  %641 = vmatmul.mubr.bf16.vlgmr.msra.gmra.mrb[8].mxu1 %v565_v46 }
 0x23d   :  { %743 = vmatpush1.bf16.msra.mxu0 %v4074_v2  ;;  %784 = vmatpush1.bf16.msra.mxu1 %v4102_v7 }
 0x23e   :  { %744 = vmatprep.subr.bf16.mxu0 %v4080_v3  ;;  %785 = vmatprep.subr.bf16.mxu1 %v4121_v10 }
 0x23f   :  { %774 = vmatprep.mubr.bf16.mxu0 %v5759_v1  ;;  %815 = vmatprep.mubr.bf16.mxu1 %v5759_v1 }
 0x241   :  { %745 = vmatpush1.bf16.msra.mxu0 %v4086_v4  ;;  %786 = vmatpush1.bf16.msra.mxu1 %v4126_v11 }
 0x242   :  { %746 = vmatprep.subr.bf16.mxu0 %v4092_v5  ;;  %787 = vmatprep.subr.bf16.mxu1 %v4143_v14 }
 0x245   :  { %747 = vmatpush1.bf16.msra.mxu0 %v4108_v8  ;;  %788 = vmatpush1.bf16.msra.mxu1 %v4150_v15 }
 0x246   :  { %748 = vmatprep.subr.bf16.mxu0 %v4115_v9  ;;  %789 = vmatprep.subr.bf16.mxu1 %v4156_v16 }
 0x249   :  { %749 = vmatpush1.bf16.msra.mxu0 %v4133_v12  ;;  %790 = vmatpush1.bf16.msra.mxu1 %v4174_v19 }
 0x24a   :  { %750 = vmatprep.subr.bf16.mxu0 %v4138_v13  ;;  %791 = vmatprep.subr.bf16.mxu1 %v4180_v20 }
 0x24d   :  { %751 = vmatpush1.bf16.msra.mxu0 %v4162_v17  ;;  %792 = vmatpush1.bf16.msra.mxu1 %v4198_v23 }
 0x24e   :  { %752 = vmatprep.subr.bf16.mxu0 %v4168_v18  ;;  %793 = vmatprep.subr.bf16.mxu1 %v4204_v24 }
 0x251   :  { %753 = vmatpush1.bf16.msra.mxu0 %v4185_v21  ;;  %794 = vmatpush1.bf16.msra.mxu1 %v4222_v27 }
 0x252   :  { %754 = vmatprep.subr.bf16.mxu0 %v4191_v22  ;;  %795 = vmatprep.subr.bf16.mxu1 %v4228_v28 }
 0x255   :  { %755 = vmatpush1.bf16.msra.mxu0 %v4210_v25  ;;  %796 = vmatpush1.bf16.msra.mxu1 %v4241_v30 }
 0x256   :  { %756 = vmatprep.subr.bf16.mxu0 %v4216_v26  ;;  %797 = vmatprep.subr.bf16.mxu1 %v4247_v31 }
 0x259   :  { %757 = vmatpush1.bf16.msra.mxu0 %v4234_v29  ;;  %798 = vmatpush1.bf16.msra.mxu1 %v4254_v33 }
 0x25a   :  { %917 = vmatprep.subr.bf16.mxu0 %v4066_v0  ;;  %958 = vmatprep.subr.bf16.mxu1 %v4097_v6 }
 0x30f   :  { %v601_v49 = vpop.f32.mrb[8].mxu0  ;;  %v642_v47 = vpop.f32.mrb[8].mxu1 }
 0x310   :  { %v653_v40 = vrot.slane %v601_v49, 6  ;;  %v657_v42 = vrot.slane %v601_v49, 7  ;;  %v603_v48 = vpop.f32.mrb[9].mxu0  ;;  %v644_v50 = vpop.f32.mrb[9].mxu1 }
 0x311   :  { %v654_v43 = vrot.slane %v603_v48, 6  ;;  %v658_v39 = vrot.slane %v603_v48, 7  ;;  %v605_v62 = vpop.f32.mrb[10].mxu0  ;;  %v646_v58 = vpop.f32.mrb[10].mxu1  ;;  %v656_v0 = vrot.slane %v644_v50, 6  ;;  %v660_v33 = vrot.slane %v644_v50, 7 }
 0x312   :  { %v669_v60 = vadd.f32 %v653_v40, %v4297_v35  ;;  %v673_v44 = vadd.f32 %v657_v42, %v4307_v37  ;;  %v606_v45 = vpop.f32.mrb[11].mxu0  ;;  %v647_v38 = vpop.f32.mrb[11].mxu1  ;;  %v655_v48 = vrot.slane %v642_v47, 6  ;;  %v659_v62 = vrot.slane %v642_v47, 7 }
 0x313   :  { %v670_v63 = vadd.f32 %v654_v43, %v4302_v36  ;;  %v674_v34 = vadd.f32 %v658_v39, %v4313_v41  ;;  %v672_v40 = vadd.f32 %v656_v0, %v4321_v51  ;;  %v676_v42 = vadd.f32 %v660_v33, %v4326_v55 }
 0x314   :  { %v3281_v46 = vmul.f32 -1.442695, %v669_v60  ;;  %v3282_v1 = vmul.f32 -1.442695, %v673_v44  ;;  %v671_v43 = vadd.f32 %v655_v48, %v4331_v57  ;;  %v675_v39 = vadd.f32 %v659_v62, %v4338_v32 }
 0x315   :  { %v3283_v6 = vmul.f32 -1.442695, %v670_v63  ;;  %v3284_v49 = vmul.f32 -1.442695, %v674_v34  ;;  %v3285_v58 = vmul.f32 -1.442695, %v672_v40 }
 0x316   :  { %3486 = vpow2.f32 %v3281_v46  ;;  %v3286_v60 = vmul.f32 -1.442695, %v676_v42  ;;  %v717_v40 = vrot.slane %v4399_v54, 7 }
 0x317   :  { %3488 = vpow2.f32 %v3282_v1 }
 0x318   :  { %3490 = vpow2.f32 %v3283_v6 }
 0x319   :  { %3492 = vpow2.f32 %v3284_v49 }
 0x31a   :  { %3494 = vtanh.f32 %v671_v43 }
 0x31b   :  { %3496 = vtanh.f32 %v675_v39 }
 0x31c   :  { %3498 = vpow2.f32 %v3285_v58  ;;  %v718_v58 = vrot.slane %v4401_v56, 7 }
 0x31d   :  { %3500 = vpow2.f32 %v3286_v60 }
 0x320   :  { %v3487_v44 = vpop.eup %3486 }
 0x321   :  { %v3489_v45 = vpop.eup %3488  ;;  %v683_v50 = vadd.f32 1.0, %v3487_v44 }
 0x322   :  { %v3491_v1 = vpop.eup %3490  ;;  %v684_v47 = vadd.f32 1.0, %v3489_v45 }
 0x323   :  { %v3493_v6 = vpop.eup %3492  ;;  %3502 = vrcp.f32 %v683_v50  ;;  %v695_v0 = vadd.f32 1.0, %v3491_v1 }
 0x324   :  { %3504 = vrcp.f32 %v684_v47  ;;  %v696_v33 = vadd.f32 1.0, %v3493_v6  ;;  %v3495_v38 = vpop.eup %3494 }
 0x325   :  { %3506 = vrcp.f32 %v695_v0  ;;  %v3497_v63 = vpop.eup %3496 }
 0x326   :  { %3508 = vrcp.f32 %v696_v33  ;;  %v3499_v34 = vpop.eup %3498 }
 0x327   :  { %v3501_v46 = vpop.eup %3500  ;;  %v709_v42 = vadd.f32 1.0, %v3499_v34  ;;  %v3115_v34 = vsel %vm3114_vm3, %v4348_v52, %v4405_v59  ;;  %v5782_v52 = vmov 0  }
 0x328   :  { %v710_v60 = vadd.f32 1.0, %v3501_v46 }
 0x329   :  { %3510 = vrcp.f32 %v709_v42 }
 0x32a   :  { %3512 = vrcp.f32 %v710_v60 }
 0x32d   :  { %v3503_v49 = vpop.eup %3502 }
 0x32e   :  { %v3505_v48 = vpop.eup %3504  ;;  %v723_v62 = vmul.f32 %v3503_v49, %v3495_v38  ;;  %v3116_v49 = vsel %vm3114_vm3, %v4350_v53, %v4407_v61 }
 0x32f   :  { %v3507_v43 = vpop.eup %3506  ;;  %v724_v39 = vmul.f32 %v3505_v48, %v3497_v63 }
 0x330   :  { %v3509_v44 = vpop.eup %3508  ;;  %v721_v45 = vmul.f32 %v3507_v43, %v717_v40 }
 0x331   :  { %v722_v50 = vmul.f32 %v3509_v44, %v718_v58 }
 0x332   :  { %v4456_v1 = vadd.f32 %v723_v62, %v721_v45 }
 0x333   :  { %v4458_v47 = vadd.f32 %v724_v39, %v722_v50  ;;  %v3511_v54 = vpop.eup %3510 }
 0x334   :  { %3514 = vtanh.f32 %v4456_v1  ;;  %v3513_v6 = vpop.eup %3512 }
 0x335   :  { %3516 = vtanh.f32 %v4458_v47 }
 0x33e   :  { %v3515_v0 = vpop.eup %3514 }
 0x33f   :  { %v3517_v56 = vpop.eup %3516  ;;  %v729_v33 = vmul.f32 %v3515_v0, %v3511_v54 }
 0x340   :  { %v730_v38 = vmul.f32 %v3517_v56, %v3513_v6 }
 0x341   :  { %v731_v63 = vpack.c.bf16 %v729_v33, %v729_v33 }
 0x342   :  { %v732_v46 = vpack.c.bf16 %v730_v38, %v730_v38 }
 0x343   :  { %v735_v48 = vunpack.c.l.b16 %v731_v63  ;;  %v4466_v62 = vsel %vm3112_vm1, %v3115_v34, %v731_v63 }
 0x344   :  { %v736_v40 = vunpack.c.l.b16 %v732_v46  ;;  %v4468_v42 = vsel %vm3112_vm1, %v3116_v49, %v732_v46  ;;  %vm3182_vm1 = vcmask 1045504  }
 0x345   :  { %v737_v43 = vrot.slane %v735_v48, 2  ;;  %vm3184_vm3 = vmand %vm3182_vm1, %vm3183_vm2 }
 0x346   :  { %v738_v39 = vrot.slane %v736_v40, 1 }
 0x348   :  { %v739_v58 = vsel %vm393_vm0, %v738_v39, %v737_v43  ;;  %v892_v43 = vrot.slane %v4456_v1, 7 }
 0x349   :  { %v740_v60 = vpack.c.b16 %v739_v58, %v739_v58 }
 0x34b   :  { %775 = vmatmul.mubr.bf16.vlgmr.msra.gmra.mrb[12].mxu0 %v740_v60  ;;  %816 = vmatmul.mubr.bf16.vlgmr.msra.gmra.mrb[12].mxu1 %v740_v60 }
 0x34c   :  { %918 = vmatpush1.bf16.msra.mxu0 %v4074_v2  ;;  %959 = vmatpush1.bf16.msra.mxu1 %v4102_v7  ;;  %v5783_v2 = vld [vmem:[#allocation6_spill] sm:$0xff] }
 0x34d   :  { %919 = vmatprep.subr.bf16.mxu0 %v4080_v3  ;;  %960 = vmatprep.subr.bf16.mxu1 %v4121_v10  ;;  %v5784_v3 = vld [vmem:[#allocation4_spill] sm:$0xff] }
 0x34e   :  { %949 = vmatprep.mubr.bf16.mxu0 %v5782_v52  ;;  %990 = vmatprep.mubr.bf16.mxu1 %v5782_v52 }
 0x350   :  { %920 = vmatpush1.bf16.msra.mxu0 %v4086_v4  ;;  %961 = vmatpush1.bf16.msra.mxu1 %v4126_v11  ;;  %v5785_v4 = vld [vmem:[#allocation5_spill] sm:$0xff] }
 0x351   :  { %921 = vmatprep.subr.bf16.mxu0 %v4092_v5  ;;  %962 = vmatprep.subr.bf16.mxu1 %v4143_v14 }
 0x354   :  { %922 = vmatpush1.bf16.msra.mxu0 %v4108_v8  ;;  %963 = vmatpush1.bf16.msra.mxu1 %v4150_v15 }
 0x355   :  { %923 = vmatprep.subr.bf16.mxu0 %v4115_v9  ;;  %964 = vmatprep.subr.bf16.mxu1 %v4156_v16 }
 0x358   :  { %924 = vmatpush1.bf16.msra.mxu0 %v4133_v12  ;;  %965 = vmatpush1.bf16.msra.mxu1 %v4174_v19 }
 0x359   :  { %925 = vmatprep.subr.bf16.mxu0 %v4138_v13  ;;  %966 = vmatprep.subr.bf16.mxu1 %v4180_v20 }
 0x35c   :  { %926 = vmatpush1.bf16.msra.mxu0 %v4162_v17  ;;  %967 = vmatpush1.bf16.msra.mxu1 %v4198_v23 }
 0x35d   :  { %927 = vmatprep.subr.bf16.mxu0 %v4168_v18  ;;  %968 = vmatprep.subr.bf16.mxu1 %v4204_v24 }
 0x360   :  { %928 = vmatpush1.bf16.msra.mxu0 %v4185_v21  ;;  %969 = vmatpush1.bf16.msra.mxu1 %v4222_v27 }
 0x361   :  { %929 = vmatprep.subr.bf16.mxu0 %v4191_v22  ;;  %970 = vmatprep.subr.bf16.mxu1 %v4228_v28 }
 0x364   :  { %930 = vmatpush1.bf16.msra.mxu0 %v4210_v25  ;;  %971 = vmatpush1.bf16.msra.mxu1 %v4241_v30 }
 0x365   :  { %931 = vmatprep.subr.bf16.mxu0 %v4216_v26  ;;  %972 = vmatprep.subr.bf16.mxu1 %v4247_v31 }
 0x368   :  { %932 = vmatpush1.bf16.msra.mxu0 %v4234_v29  ;;  %973 = vmatpush1.bf16.msra.mxu1 %v5783_v2  ;;  %v893_v2 = vrot.slane %v4458_v47, 7 }
 0x369   :  { %1092 = vmatprep.subr.bf16.mxu0 %v5784_v3  ;;  %1133 = vmatprep.subr.bf16.mxu1 %v5785_v4 }
 0x41e   :  { %v776_v5 = vpop.f32.mrb[12].mxu0  ;;  %v817_v7 = vpop.f32.mrb[12].mxu1 }
 0x41f   :  { %v828_v8 = vrot.slane %v776_v5, 5  ;;  %v832_v9 = vrot.slane %v776_v5, 6  ;;  %v778_v10 = vpop.f32.mrb[13].mxu0  ;;  %v819_v11 = vpop.f32.mrb[13].mxu1  ;;  %v830_v28 = vrot.slane %v817_v7, 5  ;;  %v834_v29 = vrot.slane %v817_v7, 6 }
 0x420   :  { %v829_v12 = vrot.slane %v778_v10, 5  ;;  %v833_v13 = vrot.slane %v778_v10, 6  ;;  %v780_v14 = vpop.f32.mrb[14].mxu0  ;;  %v821_v15 = vpop.f32.mrb[14].mxu1  ;;  %v831_v26 = vrot.slane %v819_v11, 5  ;;  %v835_v27 = vrot.slane %v819_v11, 6 }
 0x421   :  { %v844_v16 = vadd.f32 %v828_v8, %v4297_v35  ;;  %v848_v17 = vadd.f32 %v832_v9, %v4307_v37  ;;  %v781_v18 = vpop.f32.mrb[15].mxu0  ;;  %v822_v19 = vpop.f32.mrb[15].mxu1  ;;  %v850_v53 = vadd.f32 %v834_v29, %v4338_v32  ;;  %v4570_v29 = vld [vmem:[%s5756_s1 + $0x20] ss:$16 sps:$4 sm:$0xff]  }
 0x422   :  { %v845_v20 = vadd.f32 %v829_v12, %v4302_v36  ;;  %v849_v21 = vadd.f32 %v833_v13, %v4313_v41  ;;  %v847_v30 = vadd.f32 %v831_v26, %v4321_v51  ;;  %v851_v31 = vadd.f32 %v835_v27, %v4326_v55  ;;  %v4550_v26 = vld [vmem:[%s5756_s1 + $0x8] ss:$16 sps:$4 sm:$0xff]   ;;  %v4556_v27 = vld [vmem:[%s5756_s1 + $0x24] ss:$16 sps:$4 sm:$0xff]  }
 0x423   :  { %v3287_v22 = vmul.f32 -1.442695, %v844_v16  ;;  %v3288_v23 = vmul.f32 -1.442695, %v848_v17  ;;  %v846_v36 = vadd.f32 %v830_v28, %v4331_v57  ;;  %v4562_v28 = vld [vmem:[%s5756_s1 + $0x2c] ss:$16 sps:$4 sm:$0xff]  }
 0x424   :  { %v3289_v24 = vmul.f32 -1.442695, %v845_v20  ;;  %v3290_v25 = vmul.f32 -1.442695, %v849_v21  ;;  %v3291_v59 = vmul.f32 -1.442695, %v847_v30 }
 0x425   :  { %3518 = vpow2.f32 %v3287_v22  ;;  %v3292_v61 = vmul.f32 -1.442695, %v851_v31  ;;  %v4576_v30 = vld [vmem:[%s5756_s1 + $0x28] ss:$16 sps:$4 sm:$0xff]   ;;  %v4582_v31 = vld [vmem:[%s5756_s1 + $0x44] ss:$16 sps:$4 sm:$0xff]  }
 0x426   :  { %3520 = vpow2.f32 %v3288_v23 }
 0x427   :  { %3522 = vpow2.f32 %v3289_v24 }
 0x428   :  { %3524 = vpow2.f32 %v3290_v25  ;;  %v4544_v25 = vld [vmem:[%s5756_s1] ss:$16 sps:$4 sm:$0xff]  }
 0x429   :  { %3526 = vtanh.f32 %v846_v36  ;;  %v4588_v36 = vld [vmem:[%s5756_s1 + $0x4c] ss:$16 sps:$4 sm:$0xff]  }
 0x42a   :  { %3528 = vtanh.f32 %v850_v53  ;;  %v4594_v53 = vld [vmem:[%s5756_s1 + $0x40] ss:$16 sps:$4 sm:$0xff]  }
 0x42b   :  { %3530 = vpow2.f32 %v3291_v59  ;;  %v4600_v59 = vld [vmem:[%s5756_s1 + $0x48] ss:$16 sps:$4 sm:$0xff]  }
 0x42c   :  { %3532 = vpow2.f32 %v3292_v61  ;;  %v4606_v61 = vld [vmem:[%s5756_s1 + $0x64] ss:$16 sps:$4 sm:$0xff]  }
 0x42f   :  { %v3519_v44 = vpop.eup %3518 }
 0x430   :  { %v3521_v45 = vpop.eup %3520  ;;  %v858_v50 = vadd.f32 1.0, %v3519_v44  ;;  %v4612_v44 = vld [vmem:[%s5756_s1 + $0x6c] ss:$16 sps:$4 sm:$0xff]  }
 0x431   :  { %v3523_v54 = vpop.eup %3522  ;;  %v859_v6 = vadd.f32 1.0, %v3521_v45  ;;  %v4618_v45 = vld [vmem:[%s5756_s1 + $0x60] ss:$16 sps:$4 sm:$0xff]  }
 0x432   :  { %v3525_v0 = vpop.eup %3524  ;;  %3534 = vrcp.f32 %v858_v50  ;;  %v870_v56 = vadd.f32 1.0, %v3523_v54  ;;  %v4624_v50 = vld [vmem:[%s5756_s1 + $0x68] ss:$16 sps:$4 sm:$0xff]   ;;  %v4630_v54 = vld [vmem:[%s5756_s1 + $0x84] ss:$16 sps:$4 sm:$0xff]  }
 0x433   :  { %3536 = vrcp.f32 %v859_v6  ;;  %v871_v33 = vadd.f32 1.0, %v3525_v0  ;;  %v3527_v38 = vpop.eup %3526  ;;  %v4636_v6 = vld [vmem:[%s5756_s1 + $0x8c] ss:$16 sps:$4 sm:$0xff]   ;;  %v4642_v0 = vld [vmem:[%s5756_s1 + $0x80] ss:$16 sps:$4 sm:$0xff]  }
 0x434   :  { %3538 = vrcp.f32 %v870_v56  ;;  %v3529_v63 = vpop.eup %3528  ;;  %v4648_v56 = vld [vmem:[%s5756_s1 + $0x88] ss:$16 sps:$4 sm:$0xff]  }
 0x435   :  { %3540 = vrcp.f32 %v871_v33  ;;  %v3531_v34 = vpop.eup %3530  ;;  %v4654_v33 = vld [vmem:[%s5756_s1 + $0xa4] ss:$16 sps:$4 sm:$0xff]  }
 0x436   :  { %v3533_v46 = vpop.eup %3532  ;;  %v884_v39 = vadd.f32 1.0, %v3531_v34  ;;  %v4672_v34 = vld [vmem:[%s5756_s1 + $0xa8] ss:$16 sps:$4 sm:$0xff]  }
 0x437   :  { %v885_v3 = vadd.f32 1.0, %v3533_v46  ;;  %v4678_v46 = vld [vmem:[%s5756_s1 + $0xc4] ss:$16 sps:$4 sm:$0xff]  }
 0x438   :  { %3542 = vrcp.f32 %v884_v39  ;;  %v4708_v39 = vld [vmem:[%s5756_s1 + $0xec] ss:$16 sps:$4 sm:$0xff]  }
 0x439   :  { %3544 = vrcp.f32 %v885_v3  ;;  %5788 = vst [vmem:[#allocation6_spill] sm:$0xff] %v4708_v39  ;;  %v4732_v3 = vld [vmem:[%s5756_s1 + $0xc] ss:$16 sps:$4 sm:$0xff]  }
 0x43a   :  { %5792 = vst [vmem:[#allocation8_spill] sm:$0xff] %v4732_v3 }
 0x43c   :  { %v3535_v49 = vpop.eup %3534 }
 0x43d   :  { %v3537_v48 = vpop.eup %3536  ;;  %v898_v40 = vmul.f32 %v3535_v49, %v3527_v38  ;;  %v4660_v38 = vld [vmem:[%s5756_s1 + $0xac] ss:$16 sps:$4 sm:$0xff]  }
 0x43e   :  { %v3539_v58 = vpop.eup %3538  ;;  %v899_v60 = vmul.f32 %v3537_v48, %v3529_v63  ;;  %v4666_v63 = vld [vmem:[%s5756_s1 + $0xa0] ss:$16 sps:$4 sm:$0xff]   ;;  %v4684_v49 = vld [vmem:[%s5756_s1 + $0xcc] ss:$16 sps:$4 sm:$0xff]  }
 0x43f   :  { %v3541_v4 = vpop.eup %3540  ;;  %v896_v5 = vmul.f32 %v3539_v58, %v892_v43  ;;  %v4690_v48 = vld [vmem:[%s5756_s1 + $0xc0] ss:$16 sps:$4 sm:$0xff]   ;;  %v4702_v43 = vld [vmem:[%s5756_s1 + $0xe4] ss:$16 sps:$4 sm:$0xff]  }
 0x440   :  { %v897_v7 = vmul.f32 %v3541_v4, %v893_v2  ;;  %v4714_v58 = vld [vmem:[%s5756_s1 + $0xe0] ss:$16 sps:$4 sm:$0xff]   ;;  %v4726_v2 = vld [vmem:[%s5756_s1 + $0x4] ss:$16 sps:$4 sm:$0xff]  }
 0x441   :  { %v4515_v8 = vadd.f32 %v898_v40, %v896_v5  ;;  %v4696_v40 = vld [vmem:[%s5756_s1 + $0xc8] ss:$16 sps:$4 sm:$0xff]   ;;  %5789 = vst [vmem:[#allocation4_spill] sm:$0xff] %v4714_v58  ;;  %5791 = vst [vmem:[#allocation7_spill] sm:$0xff] %v4726_v2 }
 0x442   :  { %v4517_v9 = vadd.f32 %v899_v60, %v897_v7  ;;  %v3543_v1 = vpop.eup %3542  ;;  %v4720_v60 = vld [vmem:[%s5756_s1 + $0xe8] ss:$16 sps:$4 sm:$0xff]  }
 0x443   :  { %3546 = vtanh.f32 %v4515_v8  ;;  %v3545_v10 = vpop.eup %3544  ;;  %5790 = vst [vmem:[#allocation5_spill] sm:$0xff] %v4720_v60 }
 0x444   :  { %3548 = vtanh.f32 %v4517_v9 }
 0x44d   :  { %v3547_v11 = vpop.eup %3546 }
 0x44e   :  { %v3549_v47 = vpop.eup %3548  ;;  %v904_v12 = vmul.f32 %v3547_v11, %v3543_v1 }
 0x44f   :  { %v905_v13 = vmul.f32 %v3549_v47, %v3545_v10 }
 0x450   :  { %v4526_v15 = vpack.c.bf16 %v904_v12, %v904_v12 }
 0x451   :  { %v4528_v16 = vpack.c.bf16 %v905_v13, %v905_v13 }
 0x452   :  { %v910_v17 = vunpack.c.l.b16 %v4526_v15 }
 0x453   :  { %v911_v19 = vunpack.c.l.b16 %v4528_v16 }
 0x454   :  { %v912_v21 = vrot.slane %v910_v17, 3 }
 0x455   :  { %v913_v22 = vrot.slane %v911_v19, 2 }
 0x457   :  { %v914_v23 = vsel %vm393_vm0, %v913_v22, %v912_v21 }
 0x458   :  { %v915_v24 = vpack.c.b16 %v914_v23, %v914_v23 }
 0x45a   :  { %950 = vmatmul.mubr.bf16.vlgmr.msra.gmra.mrb[16].mxu0 %v915_v24  ;;  %991 = vmatmul.mubr.bf16.vlgmr.msra.gmra.mrb[16].mxu1 %v915_v24  ;;  %v4740_v24 = vld [vmem:[%s5757_s0 + $0x8] sm:$0xff] }
 0x45b   :  { %1093 = vmatpush1.bf16.msra.mxu0 %v4544_v25  ;;  %1134 = vmatpush1.bf16.msra.mxu1 %v4550_v26 }
 0x45c   :  { %1094 = vmatprep.subr.bf16.mxu0 %v4556_v27  ;;  %1135 = vmatprep.subr.bf16.mxu1 %v4562_v28 }
 0x45d   :  { %1124 = vmatprep.mubr.bf16.mxu0 %v5782_v52  ;;  %1165 = vmatprep.mubr.bf16.mxu1 %v5782_v52 }
 0x45f   :  { %1095 = vmatpush1.bf16.msra.mxu0 %v4570_v29  ;;  %1136 = vmatpush1.bf16.msra.mxu1 %v4576_v30 }
 0x460   :  { %1096 = vmatprep.subr.bf16.mxu0 %v4582_v31  ;;  %1137 = vmatprep.subr.bf16.mxu1 %v4588_v36 }
 0x463   :  { %1097 = vmatpush1.bf16.msra.mxu0 %v4594_v53  ;;  %1138 = vmatpush1.bf16.msra.mxu1 %v4600_v59 }
 0x464   :  { %1098 = vmatprep.subr.bf16.mxu0 %v4606_v61  ;;  %1139 = vmatprep.subr.bf16.mxu1 %v4612_v44 }
 0x467   :  { %1099 = vmatpush1.bf16.msra.mxu0 %v4618_v45  ;;  %1140 = vmatpush1.bf16.msra.mxu1 %v4624_v50 }
 0x468   :  { %1100 = vmatprep.subr.bf16.mxu0 %v4630_v54  ;;  %1141 = vmatprep.subr.bf16.mxu1 %v4636_v6 }
 0x46b   :  { %1101 = vmatpush1.bf16.msra.mxu0 %v4642_v0  ;;  %1142 = vmatpush1.bf16.msra.mxu1 %v4648_v56 }
 0x46c   :  { %1102 = vmatprep.subr.bf16.mxu0 %v4654_v33  ;;  %1143 = vmatprep.subr.bf16.mxu1 %v4660_v38 }
 0x46f   :  { %1103 = vmatpush1.bf16.msra.mxu0 %v4666_v63  ;;  %1144 = vmatpush1.bf16.msra.mxu1 %v4672_v34 }
 0x470   :  { %1104 = vmatprep.subr.bf16.mxu0 %v4678_v46  ;;  %1145 = vmatprep.subr.bf16.mxu1 %v4684_v49 }
 0x473   :  { %1105 = vmatpush1.bf16.msra.mxu0 %v4690_v48  ;;  %1146 = vmatpush1.bf16.msra.mxu1 %v4696_v40 }
 0x474   :  { %1106 = vmatprep.subr.bf16.mxu0 %v4702_v43  ;;  %1147 = vmatprep.subr.bf16.mxu1 %v4708_v39 }
 0x477   :  { %1107 = vmatpush1.bf16.msra.mxu0 %v4714_v58  ;;  %1148 = vmatpush1.bf16.msra.mxu1 %v4720_v60 }
 0x478   :  { %1267 = vmatprep.subr.bf16.mxu0 %v4726_v2  ;;  %1308 = vmatprep.subr.bf16.mxu1 %v4732_v3 }
 0x52d   :  { %v951_v4 = vpop.f32.mrb[16].mxu0  ;;  %v992_v5 = vpop.f32.mrb[16].mxu1 }
 0x52e   :  { %v1003_v7 = vrot.slane %v951_v4, 4  ;;  %v1007_v1 = vrot.slane %v951_v4, 5  ;;  %v953_v10 = vpop.f32.mrb[17].mxu0  ;;  %v994_v11 = vpop.f32.mrb[17].mxu1 }
 0x52f   :  { %v1004_v47 = vrot.slane %v953_v10, 4  ;;  %v1008_v12 = vrot.slane %v953_v10, 5  ;;  %v955_v13 = vpop.f32.mrb[18].mxu0  ;;  %v996_v17 = vpop.f32.mrb[18].mxu1 }
 0x530   :  { %v1019_v19 = vadd.f32 %v1003_v7, %v4297_v35  ;;  %v1023_v21 = vadd.f32 %v1007_v1, %v4307_v37  ;;  %v956_v22 = vpop.f32.mrb[19].mxu0  ;;  %v997_v23 = vpop.f32.mrb[19].mxu1  ;;  %v1006_v17 = vrot.slane %v994_v11, 4  ;;  %v1010_v35 = vrot.slane %v994_v11, 5 }
 0x531   :  { %v1020_v20 = vadd.f32 %v4740_v24, %v1004_v47  ;;  %v1024_v4 = vadd.f32 %v1008_v12, %v4313_v41  ;;  %v1005_v37 = vrot.slane %v992_v5, 4  ;;  %v1009_v7 = vrot.slane %v992_v5, 5 }
 0x532   :  { %v3293_v18 = vmul.f32 -1.442695, %v1019_v19  ;;  %v3294_v3 = vmul.f32 -1.442695, %v1023_v21  ;;  %v1022_v1 = vadd.f32 %v1006_v17, %v4321_v51  ;;  %v1026_v22 = vadd.f32 %v1010_v35, %v4326_v55 }
 0x533   :  { %v3295_v10 = vmul.f32 -1.442695, %v1020_v20  ;;  %v3296_v13 = vmul.f32 -1.442695, %v1024_v4  ;;  %v1021_v47 = vadd.f32 %v1005_v37, %v4331_v57  ;;  %v1025_v41 = vadd.f32 %v1009_v7, %v4338_v32 }
 0x534   :  { %3550 = vpow2.f32 %v3293_v18  ;;  %v3297_v12 = vmul.f32 -1.442695, %v1022_v1  ;;  %v3298_v19 = vmul.f32 -1.442695, %v1026_v22  ;;  %v1067_v35 = vrot.slane %v4515_v8, 7 }
 0x535   :  { %3552 = vpow2.f32 %v3294_v3  ;;  %v1068_v22 = vrot.slane %v4517_v9, 7 }
 0x536   :  { %3554 = vpow2.f32 %v3295_v10 }
 0x537   :  { %3556 = vpow2.f32 %v3296_v13 }
 0x538   :  { %3558 = vtanh.f32 %v1021_v47 }
 0x539   :  { %3560 = vtanh.f32 %v1025_v41 }
 0x53a   :  { %3562 = vpow2.f32 %v3297_v12 }
 0x53b   :  { %3564 = vpow2.f32 %v3298_v19 }
 0x53e   :  { %v3551_v20 = vpop.eup %3550 }
 0x53f   :  { %v3553_v18 = vpop.eup %3552  ;;  %v1033_v11 = vadd.f32 1.0, %v3551_v20 }
 0x540   :  { %v3555_v3 = vpop.eup %3554  ;;  %v1034_v5 = vadd.f32 1.0, %v3553_v18 }
 0x541   :  { %v3557_v21 = vpop.eup %3556  ;;  %3566 = vrcp.f32 %v1033_v11  ;;  %v1045_v51 = vadd.f32 1.0, %v3555_v3 }
 0x542   :  { %3568 = vrcp.f32 %v1034_v5  ;;  %v1046_v55 = vadd.f32 1.0, %v3557_v21  ;;  %v3559_v57 = vpop.eup %3558 }
 0x543   :  { %3570 = vrcp.f32 %v1045_v51  ;;  %v3561_v32 = vpop.eup %3560 }
 0x544   :  { %3572 = vrcp.f32 %v1046_v55  ;;  %v3563_v23 = vpop.eup %3562 }
 0x545   :  { %v3565_v4 = vpop.eup %3564  ;;  %v1059_v37 = vadd.f32 1.0, %v3563_v23 }
 0x546   :  { %v1060_v47 = vadd.f32 1.0, %v3565_v4 }
 0x547   :  { %3574 = vrcp.f32 %v1059_v37 }
 0x548   :  { %3576 = vrcp.f32 %v1060_v47 }
 0x54b   :  { %v3567_v10 = vpop.eup %3566 }
 0x54c   :  { %v3569_v13 = vpop.eup %3568  ;;  %v1073_v17 = vmul.f32 %v3567_v10, %v3559_v57  ;;  %v5794_v10 = vsel %vm4522_vm6, %v4468_v42, %v4528_v16 }
 0x54d   :  { %v3571_v7 = vpop.eup %3570  ;;  %v1074_v1 = vmul.f32 %v3569_v13, %v3561_v32  ;;  %v5793_v32 = vsel %vm4522_vm6, %v4466_v62, %v4526_v15  ;;  %v5795_v62 = vld [vmem:[#allocation8_spill] sm:$0xff] }
 0x54e   :  { %v3573_v41 = vpop.eup %3572  ;;  %v1071_v12 = vmul.f32 %v3571_v7, %v1067_v35 }
 0x54f   :  { %v1072_v19 = vmul.f32 %v3573_v41, %v1068_v22 }
 0x550   :  { %v4750_v20 = vadd.f32 %v1073_v17, %v1071_v12 }
 0x551   :  { %v4752_v18 = vadd.f32 %v1074_v1, %v1072_v19  ;;  %v3575_v8 = vpop.eup %3574 }
 0x552   :  { %3578 = vtanh.f32 %v4750_v20  ;;  %v3577_v11 = vpop.eup %3576 }
 0x553   :  { %3580 = vtanh.f32 %v4752_v18 }
 0x55c   :  { %v3579_v3 = vpop.eup %3578 }
 0x55d   :  { %v3581_v5 = vpop.eup %3580  ;;  %v1079_v21 = vmul.f32 %v3579_v3, %v3575_v8  ;;  %v4810_v8 = vld [vmem:[%s5757_s0] sm:$0xff] }
 0x55e   :  { %v1080_v9 = vmul.f32 %v3581_v5, %v3577_v11  ;;  %v4816_v3 = vld [vmem:[%s5757_s0 + $0x40] sm:$0xff] }
 0x55f   :  { %v1081_v51 = vpack.c.bf16 %v1079_v21, %v1079_v21 }
 0x560   :  { %v1082_v55 = vpack.c.bf16 %v1080_v9, %v1080_v9 }
 0x561   :  { %v1085_v57 = vunpack.c.l.b16 %v1081_v51  ;;  %v4762_v23 = vsel %vm3126_vm4, %v5793_v32, %v1081_v51 }
 0x562   :  { %v1086_v4 = vunpack.c.l.b16 %v1082_v55  ;;  %v4770_v13 = vsel %vm3126_vm4, %v5794_v10, %v1082_v55  ;;  %v4823_v55 = vld [vmem:[%s5757_s0 + $0x48] sm:$0xff]  ;;  %vm3196_vm4 = vcmask 1046528  }
 0x563   :  { %v1087_v17 = vrot.slane %v1085_v57, 4  ;;  %vm3198_vm6 = vmand %vm3196_vm4, %vm3197_vm5 }
 0x564   :  { %v1088_v35 = vrot.slane %v1086_v4, 3 }
 0x566   :  { %v1089_v37 = vsel %vm393_vm0, %v1088_v35, %v1087_v17 }
 0x567   :  { %v1090_v7 = vpack.c.b16 %v1089_v37, %v1089_v37 }
 0x569   :  { %1125 = vmatmul.mubr.bf16.vlgmr.msra.gmra.mrb[20].mxu0 %v1090_v7  ;;  %1166 = vmatmul.mubr.bf16.vlgmr.msra.gmra.mrb[20].mxu1 %v1090_v7 }
 0x56a   :  { %1268 = vmatpush1.bf16.msra.mxu0 %v4544_v25  ;;  %1309 = vmatpush1.bf16.msra.mxu1 %v4550_v26 }
 0x56b   :  { %1269 = vmatprep.subr.bf16.mxu0 %v4556_v27  ;;  %1310 = vmatprep.subr.bf16.mxu1 %v4562_v28 }
 0x56c   :  { %1299 = vmatprep.mubr.bf16.mxu0 %v5782_v52  ;;  %1340 = vmatprep.mubr.bf16.mxu1 %v5782_v52 }
 0x56e   :  { %1270 = vmatpush1.bf16.msra.mxu0 %v4570_v29  ;;  %1311 = vmatpush1.bf16.msra.mxu1 %v4576_v30 }
 0x56f   :  { %1271 = vmatprep.subr.bf16.mxu0 %v4582_v31  ;;  %1312 = vmatprep.subr.bf16.mxu1 %v4588_v36 }
 0x572   :  { %1272 = vmatpush1.bf16.msra.mxu0 %v4594_v53  ;;  %1313 = vmatpush1.bf16.msra.mxu1 %v4600_v59 }
 0x573   :  { %1273 = vmatprep.subr.bf16.mxu0 %v4606_v61  ;;  %1314 = vmatprep.subr.bf16.mxu1 %v4612_v44 }
 0x576   :  { %1274 = vmatpush1.bf16.msra.mxu0 %v4618_v45  ;;  %1315 = vmatpush1.bf16.msra.mxu1 %v4624_v50 }
 0x577   :  { %1275 = vmatprep.subr.bf16.mxu0 %v4630_v54  ;;  %1316 = vmatprep.subr.bf16.mxu1 %v4636_v6 }
 0x57a   :  { %1276 = vmatpush1.bf16.msra.mxu0 %v4642_v0  ;;  %1317 = vmatpush1.bf16.msra.mxu1 %v4648_v56 }
 0x57b   :  { %1277 = vmatprep.subr.bf16.mxu0 %v4654_v33  ;;  %1318 = vmatprep.subr.bf16.mxu1 %v4660_v38 }
 0x57e   :  { %1278 = vmatpush1.bf16.msra.mxu0 %v4666_v63  ;;  %1319 = vmatpush1.bf16.msra.mxu1 %v4672_v34 }
 0x57f   :  { %1279 = vmatprep.subr.bf16.mxu0 %v4678_v46  ;;  %1320 = vmatprep.subr.bf16.mxu1 %v4684_v49 }
 0x582   :  { %1280 = vmatpush1.bf16.msra.mxu0 %v4690_v48  ;;  %1321 = vmatpush1.bf16.msra.mxu1 %v4696_v40 }
 0x583   :  { %1281 = vmatprep.subr.bf16.mxu0 %v4702_v43  ;;  %1322 = vmatprep.subr.bf16.mxu1 %v4708_v39 }
 0x586   :  { %1282 = vmatpush1.bf16.msra.mxu0 %v4714_v58  ;;  %1323 = vmatpush1.bf16.msra.mxu1 %v4720_v60 }
 0x587   :  { %1442 = vmatprep.subr.bf16.mxu0 %v4726_v2  ;;  %1483 = vmatprep.subr.bf16.mxu1 %v5795_v62 }
 0x63c   :  { %v1126_v42 = vpop.f32.mrb[20].mxu0  ;;  %v1167_v14 = vpop.f32.mrb[20].mxu1 }
 0x63d   :  { %v1178_v15 = vrot.slane %v1126_v42, 3  ;;  %v1182_v16 = vrot.slane %v1126_v42, 4  ;;  %v1128_v1 = vpop.f32.mrb[21].mxu0  ;;  %v1169_v22 = vpop.f32.mrb[21].mxu1  ;;  %v1180_v7 = vrot.slane %v1167_v14, 3  ;;  %v1184_v42 = vrot.slane %v1167_v14, 4 }
 0x63e   :  { %v1179_v47 = vrot.slane %v1128_v1, 3  ;;  %v1183_v41 = vrot.slane %v1128_v1, 4  ;;  %v1130_v12 = vpop.f32.mrb[22].mxu0  ;;  %v1171_v19 = vpop.f32.mrb[22].mxu1  ;;  %v1181_v35 = vrot.slane %v1169_v22, 3  ;;  %v1185_v37 = vrot.slane %v1169_v22, 4 }
 0x63f   :  { %v1194_v11 = vadd.f32 %v4810_v8, %v1178_v15  ;;  %v1198_v5 = vadd.f32 %v4816_v3, %v1182_v16  ;;  %v1131_v21 = vpop.f32.mrb[23].mxu0  ;;  %v1172_v9 = vpop.f32.mrb[23].mxu1  ;;  %v4829_v15 = vld [vmem:[%s5757_s0 + $0x18] sm:$0xff]  ;;  %v4841_v14 = vld [vmem:[%s5757_s0 + $0x10] sm:$0xff] }
 0x640   :  { %v1195_v51 = vadd.f32 %v4740_v24, %v1179_v47  ;;  %v1199_v57 = vadd.f32 %v4823_v55, %v1183_v41  ;;  %v1197_v16 = vadd.f32 %v4829_v15, %v1181_v35  ;;  %v4835_v1 = vld [vmem:[%s5757_s0 + $0x58] sm:$0xff]  ;;  %v1196_v22 = vadd.f32 %v4841_v14, %v1180_v7  ;;  %v4847_v41 = vld [vmem:[%s5757_s0 + $0x50] sm:$0xff] }
 0x641   :  { %v3299_v32 = vmul.f32 -1.442695, %v1194_v11  ;;  %v3300_v4 = vmul.f32 -1.442695, %v1198_v5  ;;  %v1201_v47 = vadd.f32 %v4835_v1, %v1185_v37  ;;  %v1200_v12 = vadd.f32 %v4847_v41, %v1184_v42 }
 0x642   :  { %v3301_v10 = vmul.f32 -1.442695, %v1195_v51  ;;  %v3302_v17 = vmul.f32 -1.442695, %v1199_v57  ;;  %v3303_v19 = vmul.f32 -1.442695, %v1197_v16 }
 0x643   :  { %3582 = vpow2.f32 %v3299_v32  ;;  %v3304_v11 = vmul.f32 -1.442695, %v1201_v47 }
 0x644   :  { %3584 = vpow2.f32 %v3300_v4 }
 0x645   :  { %3586 = vpow2.f32 %v3301_v10 }
 0x646   :  { %3588 = vpow2.f32 %v3302_v17 }
 0x647   :  { %3590 = vtanh.f32 %v1196_v22  ;;  %v1242_v22 = vrot.slane %v4750_v20, 7 }
 0x648   :  { %3592 = vtanh.f32 %v1200_v12 }
 0x649   :  { %3594 = vpow2.f32 %v3303_v19 }
 0x64a   :  { %3596 = vpow2.f32 %v3304_v11  ;;  %v1243_v11 = vrot.slane %v4752_v18, 7 }
 0x64d   :  { %v3583_v5 = vpop.eup %3582 }
 0x64e   :  { %v3585_v21 = vpop.eup %3584  ;;  %v1208_v9 = vadd.f32 1.0, %v3583_v5 }
 0x64f   :  { %v3587_v51 = vpop.eup %3586  ;;  %v1209_v57 = vadd.f32 1.0, %v3585_v21 }
 0x650   :  { %v3589_v32 = vpop.eup %3588  ;;  %3598 = vrcp.f32 %v1208_v9  ;;  %v1220_v4 = vadd.f32 1.0, %v3587_v51 }
 0x651   :  { %3600 = vrcp.f32 %v1209_v57  ;;  %v1221_v10 = vadd.f32 1.0, %v3589_v32  ;;  %v3591_v17 = vpop.eup %3590 }
 0x652   :  { %3602 = vrcp.f32 %v1220_v4  ;;  %v3593_v35 = vpop.eup %3592 }
 0x653   :  { %3604 = vrcp.f32 %v1221_v10  ;;  %v3595_v37 = vpop.eup %3594 }
 0x654   :  { %v3597_v7 = vpop.eup %3596  ;;  %v1234_v12 = vadd.f32 1.0, %v3595_v37 }
 0x655   :  { %v1235_v21 = vadd.f32 1.0, %v3597_v7  ;;  %v5802_v7 = vld [vmem:[#allocation5_spill] sm:$0xff] }
 0x656   :  { %3606 = vrcp.f32 %v1234_v12 }
 0x657   :  { %3608 = vrcp.f32 %v1235_v21 }
 0x65a   :  { %v3599_v42 = vpop.eup %3598 }
 0x65b   :  { %v3601_v16 = vpop.eup %3600  ;;  %v1248_v47 = vmul.f32 %v3599_v42, %v3591_v17 }
 0x65c   :  { %v3603_v19 = vpop.eup %3602  ;;  %v1249_v5 = vmul.f32 %v3601_v16, %v3593_v35 }
 0x65d   :  { %v3605_v9 = vpop.eup %3604  ;;  %v1246_v51 = vmul.f32 %v3603_v19, %v1242_v22 }
 0x65e   :  { %v1247_v57 = vmul.f32 %v3605_v9, %v1243_v11 }
 0x65f   :  { %v4852_v32 = vadd.f32 %v1248_v47, %v1246_v51 }
 0x660   :  { %v4854_v4 = vadd.f32 %v1249_v5, %v1247_v57  ;;  %v3607_v20 = vpop.eup %3606 }
 0x661   :  { %3610 = vtanh.f32 %v4852_v32  ;;  %v3609_v10 = vpop.eup %3608 }
 0x662   :  { %3612 = vtanh.f32 %v4854_v4 }
 0x66b   :  { %v3611_v17 = vpop.eup %3610 }
 0x66c   :  { %v3613_v18 = vpop.eup %3612  ;;  %v1254_v35 = vmul.f32 %v3611_v17, %v3607_v20 }
 0x66d   :  { %v1255_v37 = vmul.f32 %v3613_v18, %v3609_v10 }
 0x66e   :  { %v4863_v42 = vpack.c.bf16 %v1254_v35, %v1254_v35 }
 0x66f   :  { %v4865_v16 = vpack.c.bf16 %v1255_v37, %v1255_v37 }
 0x670   :  { %v1260_v47 = vunpack.c.l.b16 %v4863_v42 }
 0x671   :  { %v1261_v12 = vunpack.c.l.b16 %v4865_v16 }
 0x672   :  { %v1262_v5 = vrot.slane %v1260_v47, 5 }
 0x673   :  { %v1263_v11 = vrot.slane %v1261_v12, 4 }
 0x675   :  { %v1264_v21 = vsel %vm393_vm0, %v1263_v11, %v1262_v5 }
 0x676   :  { %v1265_v9 = vpack.c.b16 %v1264_v21, %v1264_v21 }
 0x678   :  { %1300 = vmatmul.mubr.bf16.vlgmr.msra.gmra.mrb[24].mxu0 %v1265_v9  ;;  %1341 = vmatmul.mubr.bf16.vlgmr.msra.gmra.mrb[24].mxu1 %v1265_v9 }
 0x679   :  { %1443 = vmatpush1.bf16.msra.mxu0 %v4544_v25  ;;  %1484 = vmatpush1.bf16.msra.mxu1 %v4550_v26 }
 0x67a   :  { %1444 = vmatprep.subr.bf16.mxu0 %v4556_v27  ;;  %1485 = vmatprep.subr.bf16.mxu1 %v4562_v28 }
 0x67b   :  { %1474 = vmatprep.mubr.bf16.mxu0 %v5782_v52  ;;  %1515 = vmatprep.mubr.bf16.mxu1 %v5782_v52 }
 0x67d   :  { %1445 = vmatpush1.bf16.msra.mxu0 %v4570_v29  ;;  %1486 = vmatpush1.bf16.msra.mxu1 %v4576_v30 }
 0x67e   :  { %1446 = vmatprep.subr.bf16.mxu0 %v4582_v31  ;;  %1487 = vmatprep.subr.bf16.mxu1 %v4588_v36 }
 0x681   :  { %1447 = vmatpush1.bf16.msra.mxu0 %v4594_v53  ;;  %1488 = vmatpush1.bf16.msra.mxu1 %v4600_v59 }
 0x682   :  { %1448 = vmatprep.subr.bf16.mxu0 %v4606_v61  ;;  %1489 = vmatprep.subr.bf16.mxu1 %v4612_v44 }
 0x685   :  { %1449 = vmatpush1.bf16.msra.mxu0 %v4618_v45  ;;  %1490 = vmatpush1.bf16.msra.mxu1 %v4624_v50 }
 0x686   :  { %1450 = vmatprep.subr.bf16.mxu0 %v4630_v54  ;;  %1491 = vmatprep.subr.bf16.mxu1 %v4636_v6 }
 0x689   :  { %1451 = vmatpush1.bf16.msra.mxu0 %v4642_v0  ;;  %1492 = vmatpush1.bf16.msra.mxu1 %v4648_v56 }
 0x68a   :  { %1452 = vmatprep.subr.bf16.mxu0 %v4654_v33  ;;  %1493 = vmatprep.subr.bf16.mxu1 %v4660_v38 }
 0x68d   :  { %1453 = vmatpush1.bf16.msra.mxu0 %v4666_v63  ;;  %1494 = vmatpush1.bf16.msra.mxu1 %v4672_v34 }
 0x68e   :  { %1454 = vmatprep.subr.bf16.mxu0 %v4678_v46  ;;  %1495 = vmatprep.subr.bf16.mxu1 %v4684_v49 }
 0x691   :  { %1455 = vmatpush1.bf16.msra.mxu0 %v4690_v48  ;;  %1496 = vmatpush1.bf16.msra.mxu1 %v4696_v40 }
 0x692   :  { %1456 = vmatprep.subr.bf16.mxu0 %v4702_v43  ;;  %1497 = vmatprep.subr.bf16.mxu1 %v4708_v39 }
 0x695   :  { %1457 = vmatpush1.bf16.msra.mxu0 %v4714_v58  ;;  %1498 = vmatpush1.bf16.msra.mxu1 %v4720_v60 }
 0x696   :  { %1617 = vmatprep.subr.bf16.mxu0 %v4726_v2  ;;  %1658 = vmatprep.subr.bf16.mxu1 %v5795_v62 }
 0x74b   :  { %v1301_v51 = vpop.f32.mrb[24].mxu0  ;;  %v1342_v57 = vpop.f32.mrb[24].mxu1 }
 0x74c   :  { %v1353_v20 = vrot.slane %v1301_v51, 2  ;;  %v1357_v10 = vrot.slane %v1301_v51, 3  ;;  %v1303_v17 = vpop.f32.mrb[25].mxu0  ;;  %v1344_v18 = vpop.f32.mrb[25].mxu1 }
 0x74d   :  { %v1354_v35 = vrot.slane %v1303_v17, 2  ;;  %v1358_v37 = vrot.slane %v1303_v17, 3  ;;  %v1305_v47 = vpop.f32.mrb[26].mxu0  ;;  %v1346_v12 = vpop.f32.mrb[26].mxu1  ;;  %v1356_v58 = vrot.slane %v1344_v18, 2  ;;  %v1360_v39 = vrot.slane %v1344_v18, 3 }
 0x74e   :  { %v1369_v5 = vadd.f32 %v4810_v8, %v1353_v20  ;;  %v1373_v11 = vadd.f32 %v4816_v3, %v1357_v10  ;;  %v1306_v21 = vpop.f32.mrb[27].mxu0  ;;  %v1347_v9 = vpop.f32.mrb[27].mxu1  ;;  %v1355_v17 = vrot.slane %v1342_v57, 2  ;;  %v1359_v47 = vrot.slane %v1342_v57, 3 }
 0x74f   :  { %v1370_v19 = vadd.f32 %v4740_v24, %v1354_v35  ;;  %v1374_v22 = vadd.f32 %v4823_v55, %v1358_v37  ;;  %v1372_v20 = vadd.f32 %v4829_v15, %v1356_v58  ;;  %v1376_v10 = vadd.f32 %v4835_v1, %v1360_v39 }
 0x750   :  { %v3305_v62 = vmul.f32 -1.442695, %v1369_v5  ;;  %v3306_v2 = vmul.f32 -1.442695, %v1373_v11  ;;  %v1371_v35 = vadd.f32 %v4841_v14, %v1355_v17  ;;  %v1375_v37 = vadd.f32 %v4847_v41, %v1359_v47 }
 0x751   :  { %v3307_v60 = vmul.f32 -1.442695, %v1370_v19  ;;  %v3308_v51 = vmul.f32 -1.442695, %v1374_v22  ;;  %v3309_v12 = vmul.f32 -1.442695, %v1372_v20 }
 0x752   :  { %3614 = vpow2.f32 %v3305_v62  ;;  %v3310_v5 = vmul.f32 -1.442695, %v1376_v10  ;;  %v1417_v20 = vrot.slane %v4852_v32, 7 }
 0x753   :  { %3616 = vpow2.f32 %v3306_v2 }
 0x754   :  { %3618 = vpow2.f32 %v3307_v60 }
 0x755   :  { %3620 = vpow2.f32 %v3308_v51 }
 0x756   :  { %3622 = vtanh.f32 %v1371_v35 }
 0x757   :  { %3624 = vtanh.f32 %v1375_v37 }
 0x758   :  { %3626 = vpow2.f32 %v3309_v12  ;;  %v1418_v12 = vrot.slane %v4854_v4, 7 }
 0x759   :  { %3628 = vpow2.f32 %v3310_v5 }
 0x75c   :  { %v3615_v22 = vpop.eup %3614 }
 0x75d   :  { %v3617_v62 = vpop.eup %3616  ;;  %v1383_v19 = vadd.f32 1.0, %v3615_v22 }
 0x75e   :  { %v3619_v2 = vpop.eup %3618  ;;  %v1384_v57 = vadd.f32 1.0, %v3617_v62 }
 0x75f   :  { %v3621_v60 = vpop.eup %3620  ;;  %3630 = vrcp.f32 %v1383_v19  ;;  %v1395_v58 = vadd.f32 1.0, %v3619_v2 }
 0x760   :  { %3632 = vrcp.f32 %v1384_v57  ;;  %v1396_v39 = vadd.f32 1.0, %v3621_v60  ;;  %v3623_v18 = vpop.eup %3622 }
 0x761   :  { %3634 = vrcp.f32 %v1395_v58  ;;  %v3625_v11 = vpop.eup %3624 }
 0x762   :  { %3636 = vrcp.f32 %v1396_v39  ;;  %v3627_v21 = vpop.eup %3626 }
 0x763   :  { %v3629_v9 = vpop.eup %3628  ;;  %v1409_v10 = vadd.f32 1.0, %v3627_v21 }
 0x764   :  { %v1410_v5 = vadd.f32 1.0, %v3629_v9 }
 0x765   :  { %3638 = vrcp.f32 %v1409_v10 }
 0x766   :  { %3640 = vrcp.f32 %v1410_v5 }
 0x769   :  { %v3631_v51 = vpop.eup %3630 }
 0x76a   :  { %v3633_v17 = vpop.eup %3632  ;;  %v1423_v47 = vmul.f32 %v3631_v51, %v3623_v18  ;;  %v5798_v51 = vsel %vm4859_vm9, %v4762_v23, %v4863_v42  ;;  %v5800_v23 = vld [vmem:[#allocation6_spill] sm:$0xff]  ;;  %v5803_v42 = vld [vmem:[#allocation7_spill] sm:$0xff] }
 0x76b   :  { %v3635_v35 = vpop.eup %3634  ;;  %v1424_v37 = vmul.f32 %v3633_v17, %v3625_v11 }
 0x76c   :  { %v3637_v22 = vpop.eup %3636  ;;  %v1421_v62 = vmul.f32 %v3635_v35, %v1417_v20  ;;  %v5799_v20 = vsel %vm4859_vm9, %v4770_v13, %v4865_v16  ;;  %v5801_v13 = vld [vmem:[#allocation4_spill] sm:$0xff] }
 0x76d   :  { %v1422_v19 = vmul.f32 %v3637_v22, %v1418_v12  ;;  %v5804_v16 = vld [vmem:[#allocation8_spill] sm:$0xff] }
 0x76e   :  { %v4922_v2 = vadd.f32 %v1423_v47, %v1421_v62 }
 0x76f   :  { %v4924_v57 = vadd.f32 %v1424_v37, %v1422_v19  ;;  %v3639_v32 = vpop.eup %3638 }
 0x770   :  { %3642 = vtanh.f32 %v4922_v2  ;;  %v3641_v60 = vpop.eup %3640 }
 0x771   :  { %3644 = vtanh.f32 %v4924_v57 }
 0x77a   :  { %v3643_v58 = vpop.eup %3642 }
 0x77b   :  { %v3645_v39 = vpop.eup %3644  ;;  %v1429_v18 = vmul.f32 %v3643_v58, %v3639_v32 }
 0x77c   :  { %v1430_v4 = vmul.f32 %v3645_v39, %v3641_v60 }
 0x77d   :  { %v1431_v11 = vpack.c.bf16 %v1429_v18, %v1429_v18 }
 0x77e   :  { %v1432_v21 = vpack.c.bf16 %v1430_v4, %v1430_v4 }
 0x77f   :  { %v1435_v9 = vunpack.c.l.b16 %v1431_v11  ;;  %v4934_v17 = vsel %vm3140_vm7, %v5798_v51, %v1431_v11 }
 0x780   :  { %v1436_v47 = vunpack.c.l.b16 %v1432_v21  ;;  %v4942_v10 = vsel %vm3140_vm7, %v5799_v20, %v1432_v21  ;;  %vm3210_vm7 = vcmask 1047552  }
 0x781   :  { %v1437_v35 = vrot.slane %v1435_v9, 6  ;;  %vm3212_vm9 = vmand %vm3210_vm7, %vm3211_vm8 }
 0x782   :  { %v1438_v37 = vrot.slane %v1436_v47, 5 }
 0x784   :  { %v1439_v12 = vsel %vm393_vm0, %v1438_v37, %v1437_v35 }
 0x785   :  { %v1440_v5 = vpack.c.b16 %v1439_v12, %v1439_v12 }
 0x787   :  { %1475 = vmatmul.mubr.bf16.vlgmr.msra.gmra.mrb[28].mxu0 %v1440_v5  ;;  %1516 = vmatmul.mubr.bf16.vlgmr.msra.gmra.mrb[28].mxu1 %v1440_v5 }
 0x788   :  { %1618 = vmatpush1.bf16.msra.mxu0 %v4544_v25  ;;  %1659 = vmatpush1.bf16.msra.mxu1 %v4550_v26 }
 0x789   :  { %1619 = vmatprep.subr.bf16.mxu0 %v4556_v27  ;;  %1660 = vmatprep.subr.bf16.mxu1 %v4562_v28 }
 0x78a   :  { %1649 = vmatprep.mubr.bf16.mxu0 %v5782_v52  ;;  %1690 = vmatprep.mubr.bf16.mxu1 %v5782_v52 }
 0x78c   :  { %1620 = vmatpush1.bf16.msra.mxu0 %v4570_v29  ;;  %1661 = vmatpush1.bf16.msra.mxu1 %v4576_v30 }
 0x78d   :  { %1621 = vmatprep.subr.bf16.mxu0 %v4582_v31  ;;  %1662 = vmatprep.subr.bf16.mxu1 %v4588_v36 }
 0x790   :  { %1622 = vmatpush1.bf16.msra.mxu0 %v4594_v53  ;;  %1663 = vmatpush1.bf16.msra.mxu1 %v4600_v59 }
 0x791   :  { %1623 = vmatprep.subr.bf16.mxu0 %v4606_v61  ;;  %1664 = vmatprep.subr.bf16.mxu1 %v4612_v44 }
 0x794   :  { %1624 = vmatpush1.bf16.msra.mxu0 %v4618_v45  ;;  %1665 = vmatpush1.bf16.msra.mxu1 %v4624_v50 }
 0x795   :  { %1625 = vmatprep.subr.bf16.mxu0 %v4630_v54  ;;  %1666 = vmatprep.subr.bf16.mxu1 %v4636_v6 }
 0x798   :  { %1626 = vmatpush1.bf16.msra.mxu0 %v4642_v0  ;;  %1667 = vmatpush1.bf16.msra.mxu1 %v4648_v56 }
 0x799   :  { %1627 = vmatprep.subr.bf16.mxu0 %v4654_v33  ;;  %1668 = vmatprep.subr.bf16.mxu1 %v4660_v38 }
 0x79c   :  { %1628 = vmatpush1.bf16.msra.mxu0 %v4666_v63  ;;  %1669 = vmatpush1.bf16.msra.mxu1 %v4672_v34 }
 0x79d   :  { %1629 = vmatprep.subr.bf16.mxu0 %v4678_v46  ;;  %1670 = vmatprep.subr.bf16.mxu1 %v4684_v49 }
 0x7a0   :  { %1630 = vmatpush1.bf16.msra.mxu0 %v4690_v48  ;;  %1671 = vmatpush1.bf16.msra.mxu1 %v4696_v40 }
 0x7a1   :  { %1631 = vmatprep.subr.bf16.mxu0 %v4702_v43  ;;  %1672 = vmatprep.subr.bf16.mxu1 %v5800_v23 }
 0x7a4   :  { %1632 = vmatpush1.bf16.msra.mxu0 %v5801_v13  ;;  %1673 = vmatpush1.bf16.msra.mxu1 %v5802_v7 }
 0x7a5   :  { %1787 = vmatprep.subr.bf16.mxu0 %v5803_v42  ;;  %1828 = vmatprep.subr.bf16.mxu1 %v5804_v16 }
 0x85a   :  { %v1476_v22 = vpop.f32.mrb[28].mxu0  ;;  %v1517_v62 = vpop.f32.mrb[28].mxu1 }
 0x85b   :  { %v1528_v19 = vrot.slane %v1476_v22, 1  ;;  %v1532_v32 = vrot.slane %v1476_v22, 2  ;;  %v1478_v60 = vpop.f32.mrb[29].mxu0  ;;  %v1519_v58 = vpop.f32.mrb[29].mxu1 }
 0x85c   :  { %v1529_v39 = vrot.slane %v1478_v60, 1  ;;  %v1533_v18 = vrot.slane %v1478_v60, 2  ;;  %v1480_v4 = vpop.f32.mrb[30].mxu0  ;;  %v1521_v11 = vpop.f32.mrb[30].mxu1  ;;  %v1531_v16 = vrot.slane %v1519_v58, 1  ;;  %v1535_v42 = vrot.slane %v1519_v58, 2 }
 0x85d   :  { %v1544_v21 = vadd.f32 %v4810_v8, %v1528_v19  ;;  %v1548_v9 = vadd.f32 %v4816_v3, %v1532_v32  ;;  %v1481_v51 = vpop.f32.mrb[31].mxu0  ;;  %v1522_v47 = vpop.f32.mrb[31].mxu1  ;;  %v1530_v60 = vrot.slane %v1517_v62, 1  ;;  %v1534_v4 = vrot.slane %v1517_v62, 2 }
 0x85e   :  { %v1545_v20 = vadd.f32 %v4740_v24, %v1529_v39  ;;  %v1549_v35 = vadd.f32 %v4823_v55, %v1533_v18  ;;  %v1547_v8 = vadd.f32 %v4829_v15, %v1531_v16  ;;  %v1551_v3 = vadd.f32 %v4835_v1, %v1535_v42 }
 0x85f   :  { %v3311_v37 = vmul.f32 -1.442695, %v1544_v21  ;;  %v3312_v12 = vmul.f32 -1.442695, %v1548_v9  ;;  %v1546_v24 = vadd.f32 %v4841_v14, %v1530_v60  ;;  %v1550_v55 = vadd.f32 %v4847_v41, %v1534_v4 }
 0x860   :  { %v3313_v5 = vmul.f32 -1.442695, %v1545_v20  ;;  %v3314_v22 = vmul.f32 -1.442695, %v1549_v35  ;;  %v3315_v19 = vmul.f32 -1.442695, %v1547_v8 }
 0x861   :  { %3646 = vpow2.f32 %v3311_v37  ;;  %v3316_v32 = vmul.f32 -1.442695, %v1551_v3  ;;  %v1592_v20 = vrot.slane %v4922_v2, 7 }
 0x862   :  { %3648 = vpow2.f32 %v3312_v12 }
 0x863   :  { %3650 = vpow2.f32 %v3313_v5  ;;  %v1593_v5 = vrot.slane %v4924_v57, 7 }
 0x864   :  { %3652 = vpow2.f32 %v3314_v22 }
 0x865   :  { %3654 = vtanh.f32 %v1546_v24 }
 0x866   :  { %3656 = vtanh.f32 %v1550_v55 }
 0x867   :  { %3658 = vpow2.f32 %v3315_v19 }
 0x868   :  { %3660 = vpow2.f32 %v3316_v32 }
 0x86b   :  { %v3647_v39 = vpop.eup %3646 }
 0x86c   :  { %v3649_v18 = vpop.eup %3648  ;;  %v1558_v58 = vadd.f32 1.0, %v3647_v39 }
 0x86d   :  { %v3651_v11 = vpop.eup %3650  ;;  %v1559_v62 = vadd.f32 1.0, %v3649_v18  ;;  %v5131_v18 = vld [vmem:[%s5756_s1 + $0x8] ss:$16 sps:$4 sm:$0xff]  }
 0x86e   :  { %v3653_v21 = vpop.eup %3652  ;;  %3662 = vrcp.f32 %v1558_v58  ;;  %v1570_v15 = vadd.f32 1.0, %v3651_v11 }
 0x86f   :  { %3664 = vrcp.f32 %v1559_v62  ;;  %v1571_v1 = vadd.f32 1.0, %v3653_v21  ;;  %v3655_v14 = vpop.eup %3654 }
 0x870   :  { %3666 = vrcp.f32 %v1570_v15  ;;  %v3657_v41 = vpop.eup %3656 }
 0x871   :  { %3668 = vrcp.f32 %v1571_v1  ;;  %v3659_v42 = vpop.eup %3658 }
 0x872   :  { %v3661_v16 = vpop.eup %3660  ;;  %v1584_v35 = vadd.f32 1.0, %v3659_v42 }
 0x873   :  { %v1585_v22 = vadd.f32 1.0, %v3661_v16 }
 0x874   :  { %3670 = vrcp.f32 %v1584_v35 }
 0x875   :  { %3672 = vrcp.f32 %v1585_v22 }
 0x878   :  { %v3663_v9 = vpop.eup %3662 }
 0x879   :  { %v3665_v51 = vpop.eup %3664  ;;  %v1598_v47 = vmul.f32 %v3663_v9, %v3655_v14 }
 0x87a   :  { %v3667_v37 = vpop.eup %3666  ;;  %v1599_v12 = vmul.f32 %v3665_v51, %v3657_v41 }
 0x87b   :  { %v3669_v60 = vpop.eup %3668  ;;  %v1596_v4 = vmul.f32 %v3667_v37, %v1592_v20 }
 0x87c   :  { %v1597_v8 = vmul.f32 %v3669_v60, %v1593_v5 }
 0x87d   :  { %v4989_v3 = vadd.f32 %v1598_v47, %v1596_v4  ;;  %v5094_v47 = vld [vmem:[%s5757_s0 + $0x70] sm:$0xff] }
 0x87e   :  { %v4991_v24 = vadd.f32 %v1599_v12, %v1597_v8  ;;  %v3671_v2 = vpop.eup %3670 }
 0x87f   :  { %3674 = vtanh.f32 %v4989_v3  ;;  %v3673_v55 = vpop.eup %3672 }
 0x880   :  { %3676 = vtanh.f32 %v4991_v24 }
 0x889   :  { %v3675_v19 = vpop.eup %3674 }
 0x88a   :  { %v3677_v57 = vpop.eup %3676  ;;  %v1604_v32 = vmul.f32 %v3675_v19, %v3671_v2 }
 0x88b   :  { %v1605_v39 = vmul.f32 %v3677_v57, %v3673_v55 }
 0x88c   :  { %v5000_v58 = vpack.c.bf16 %v1604_v32, %v1604_v32 }
 0x88d   :  { %v5002_v11 = vpack.c.bf16 %v1605_v39, %v1605_v39 }
 0x88e   :  { %v1610_v62 = vunpack.c.l.b16 %v5000_v58  ;;  %v3157_v21 = vsel %vm4996_vm12, %v4934_v17, %v5000_v58  ;;  %v5125_v17 = vld [vmem:[%s5756_s1] ss:$16 sps:$4 sm:$0xff]   ;;  %v5143_v58 = vld [vmem:[%s5756_s1 + $0x2c] ss:$16 sps:$4 sm:$0xff]  }
 0x88f   :  { %v1611_v15 = vunpack.c.l.b16 %v5002_v11  ;;  %v3158_v1 = vsel %vm4996_vm12, %v4942_v10, %v5002_v11  ;;  %v5137_v10 = vld [vmem:[%s5756_s1 + $0x24] ss:$16 sps:$4 sm:$0xff]   ;;  %v5151_v11 = vld [vmem:[%s5756_s1 + $0x20] ss:$16 sps:$4 sm:$0xff]  }
 0x890   :  { %v1612_v14 = vrot.slane %v1610_v62, 7 }
 0x891   :  { %v1613_v41 = vrot.slane %v1611_v15, 6 }
 0x893   :  { %v1614_v42 = vsel %vm393_vm0, %v1613_v41, %v1612_v14  ;;  %v1763_v41 = vrot.slane %v4989_v3, 7 }
 0x894   :  { %v1615_v16 = vpack.c.b16 %v1614_v42, %v1614_v42 }
 0x896   :  { %1650 = vmatmul.mubr.bf16.vlgmr.msra.gmra.mrb[32].mxu0 %v1615_v16  ;;  %1691 = vmatmul.mubr.bf16.vlgmr.msra.gmra.mrb[32].mxu1 %v1615_v16 }
 0x897   :  { %1788 = vmatpush1.bf16.msra.mxu0 %v4544_v25  ;;  %1829 = vmatpush1.bf16.msra.mxu1 %v4550_v26  ;;  %v5807_v25 = vld [vmem:[#allocation7_spill] sm:$0xff]  ;;  %v5808_v26 = vld [vmem:[#allocation8_spill] sm:$0xff] }
 0x898   :  { %1789 = vmatprep.subr.bf16.mxu0 %v4556_v27  ;;  %1830 = vmatprep.subr.bf16.mxu1 %v4562_v28  ;;  %v5052_v27 = vld [vmem:[%s5757_s0 + $0x20] sm:$0xff]  ;;  %v5057_v28 = vld [vmem:[%s5757_s0 + $0x28] sm:$0xff] }
 0x899   :  { %1819 = vmatprep.mubr.bf16.mxu0 %v5782_v52  ;;  %1860 = vmatprep.mubr.bf16.mxu1 %v5782_v52 }
 0x89b   :  { %1790 = vmatpush1.bf16.msra.mxu0 %v4570_v29  ;;  %1831 = vmatpush1.bf16.msra.mxu1 %v4576_v30  ;;  %v5062_v29 = vld [vmem:[%s5757_s0 + $0x60] sm:$0xff] }
 0x89c   :  { %1791 = vmatprep.subr.bf16.mxu0 %v4582_v31  ;;  %1832 = vmatprep.subr.bf16.mxu1 %v4588_v36 }
 0x89f   :  { %1792 = vmatpush1.bf16.msra.mxu0 %v4594_v53  ;;  %1833 = vmatpush1.bf16.msra.mxu1 %v4600_v59  ;;  %v5068_v59 = vld [vmem:[%s5757_s0 + $0x68] sm:$0xff] }
 0x8a0   :  { %1793 = vmatprep.subr.bf16.mxu0 %v4606_v61  ;;  %1834 = vmatprep.subr.bf16.mxu1 %v4612_v44 }
 0x8a3   :  { %1794 = vmatpush1.bf16.msra.mxu0 %v4618_v45  ;;  %1835 = vmatpush1.bf16.msra.mxu1 %v4624_v50 }
 0x8a4   :  { %1795 = vmatprep.subr.bf16.mxu0 %v4630_v54  ;;  %1836 = vmatprep.subr.bf16.mxu1 %v4636_v6 }
 0x8a7   :  { %1796 = vmatpush1.bf16.msra.mxu0 %v4642_v0  ;;  %1837 = vmatpush1.bf16.msra.mxu1 %v4648_v56 }
 0x8a8   :  { %1797 = vmatprep.subr.bf16.mxu0 %v4654_v33  ;;  %1838 = vmatprep.subr.bf16.mxu1 %v4660_v38 }
 0x8ab   :  { %1798 = vmatpush1.bf16.msra.mxu0 %v4666_v63  ;;  %1839 = vmatpush1.bf16.msra.mxu1 %v4672_v34 }
 0x8ac   :  { %1799 = vmatprep.subr.bf16.mxu0 %v4678_v46  ;;  %1840 = vmatprep.subr.bf16.mxu1 %v4684_v49  ;;  %v5076_v49 = vld [vmem:[%s5757_s0 + $0x38] sm:$0xff] }
 0x8af   :  { %1800 = vmatpush1.bf16.msra.mxu0 %v4690_v48  ;;  %1841 = vmatpush1.bf16.msra.mxu1 %v4696_v40 }
 0x8b0   :  { %1801 = vmatprep.subr.bf16.mxu0 %v4702_v43  ;;  %1842 = vmatprep.subr.bf16.mxu1 %v5800_v23  ;;  %v5081_v43 = vld [vmem:[%s5757_s0 + $0x78] sm:$0xff]  ;;  %v5086_v23 = vld [vmem:[%s5757_s0 + $0x30] sm:$0xff] }
 0x8b3   :  { %1802 = vmatpush1.bf16.msra.mxu0 %v5801_v13  ;;  %1843 = vmatpush1.bf16.msra.mxu1 %v5802_v7 }
 0x8b4   :  { %1957 = vmatprep.subr.bf16.mxu0 %v5807_v25  ;;  %1998 = vmatprep.subr.bf16.mxu1 %v5808_v26  ;;  %v1764_v26 = vrot.slane %v4991_v24, 7 }
 0x969   :  { %v1651_v30 = vpop.f32.mrb[32].mxu0  ;;  %v1692_v31 = vpop.f32.mrb[32].mxu1 }
 0x96a   :  { %v1703_v36 = vrot.slane %v1651_v30, 1  ;;  %v1715_v53 = vadd.f32 %v1651_v30, %v5052_v27  ;;  %v1653_v61 = vpop.f32.mrb[33].mxu0  ;;  %v1694_v44 = vpop.f32.mrb[33].mxu1  ;;  %v1705_v9 = vrot.slane %v1692_v31, 1  ;;  %v1717_v51 = vadd.f32 %v1692_v31, %v5086_v23 }
 0x96b   :  { %v1704_v45 = vrot.slane %v1653_v61, 1  ;;  %v1716_v50 = vadd.f32 %v1653_v61, %v5057_v28  ;;  %v1655_v54 = vpop.f32.mrb[34].mxu0  ;;  %v1696_v6 = vpop.f32.mrb[34].mxu1  ;;  %v1706_v48 = vrot.slane %v1694_v44, 1  ;;  %v1718_v13 = vadd.f32 %v1694_v44, %v5076_v49 }
 0x96c   :  { %v1719_v0 = vadd.f32 %v1703_v36, %v5062_v29  ;;  %v3317_v56 = vmul.f32 -1.442695, %v1715_v53  ;;  %v1656_v33 = vpop.f32.mrb[35].mxu0  ;;  %v1697_v38 = vpop.f32.mrb[35].mxu1  ;;  %v1721_v12 = vadd.f32 %v1705_v9, %v5094_v47  ;;  %v5169_v9 = vld [vmem:[%s5756_s1 + $0x4c] ss:$16 sps:$4 sm:$0xff]  }
 0x96d   :  { %v1720_v63 = vadd.f32 %v1704_v45, %v5068_v59  ;;  %v3319_v34 = vmul.f32 -1.442695, %v1716_v50  ;;  %v1722_v7 = vadd.f32 %v1706_v48, %v5081_v43  ;;  %v3321_v20 = vmul.f32 -1.442695, %v1718_v13 }
 0x96e   :  { %3678 = vpow2.f32 %v3317_v56  ;;  %v3318_v46 = vmul.f32 -1.442695, %v1719_v0 }
 0x96f   :  { %v3320_v40 = vmul.f32 -1.442695, %v1720_v63  ;;  %v3322_v35 = vmul.f32 -1.442695, %v1722_v7 }
 0x970   :  { %3680 = vpow2.f32 %v3318_v46 }
 0x971   :  { %3682 = vpow2.f32 %v3319_v34 }
 0x972   :  { %3684 = vpow2.f32 %v3320_v40 }
 0x973   :  { %3686 = vtanh.f32 %v1717_v51  ;;  %v5175_v51 = vld [vmem:[%s5756_s1 + $0x40] ss:$16 sps:$4 sm:$0xff]  }
 0x974   :  { %3688 = vpow2.f32 %v3321_v20  ;;  %v5181_v20 = vld [vmem:[%s5756_s1 + $0x48] ss:$16 sps:$4 sm:$0xff]  }
 0x975   :  { %3690 = vpow2.f32 %v3322_v35  ;;  %v5187_v35 = vld [vmem:[%s5756_s1 + $0x64] ss:$16 sps:$4 sm:$0xff]  }
 0x978   :  { %v3679_v37 = vpop.eup %3678 }
 0x979   :  { %v1729_v5 = vadd.f32 1.0, %v3679_v37  ;;  %v5193_v37 = vld [vmem:[%s5756_s1 + $0x6c] ss:$16 sps:$4 sm:$0xff]  }
 0x97a   :  { %v3681_v22 = vpop.eup %3680 }
 0x97b   :  { %v3683_v60 = vpop.eup %3682  ;;  %v1730_v4 = vadd.f32 1.0, %v3681_v22  ;;  %3692 = vrcp.f32 %v1729_v5  ;;  %v5205_v5 = vld [vmem:[%s5756_s1 + $0x68] ss:$16 sps:$4 sm:$0xff]   ;;  %v5211_v22 = vld [vmem:[%s5756_s1 + $0x84] ss:$16 sps:$4 sm:$0xff]  }
 0x97c   :  { %v3685_v8 = vpop.eup %3684  ;;  %3694 = vtanh.f32 %v1721_v12  ;;  %v1741_v2 = vadd.f32 1.0, %v3683_v60  ;;  %v5199_v12 = vld [vmem:[%s5756_s1 + $0x60] ss:$16 sps:$4 sm:$0xff]   ;;  %v5217_v60 = vld [vmem:[%s5756_s1 + $0x8c] ss:$16 sps:$4 sm:$0xff]  }
 0x97d   :  { %3696 = vrcp.f32 %v1730_v4  ;;  %v1742_v55 = vadd.f32 1.0, %v3685_v8  ;;  %v3687_v19 = vpop.eup %3686  ;;  %v5223_v4 = vld [vmem:[%s5756_s1 + $0x80] ss:$16 sps:$4 sm:$0xff]   ;;  %v5229_v8 = vld [vmem:[%s5756_s1 + $0x88] ss:$16 sps:$4 sm:$0xff]  }
 0x97e   :  { %3698 = vrcp.f32 %v1741_v2  ;;  %v3689_v57 = vpop.eup %3688  ;;  %v5235_v2 = vld [vmem:[%s5756_s1 + $0xa4] ss:$16 sps:$4 sm:$0xff]  }
 0x97f   :  { %3700 = vrcp.f32 %v1742_v55  ;;  %v3691_v32 = vpop.eup %3690  ;;  %v1755_v42 = vadd.f32 1.0, %v3689_v57  ;;  %v5241_v55 = vld [vmem:[%s5756_s1 + $0xac] ss:$16 sps:$4 sm:$0xff]   ;;  %v5253_v57 = vld [vmem:[%s5756_s1 + $0xa8] ss:$16 sps:$4 sm:$0xff]  }
 0x980   :  { %v1756_v30 = vadd.f32 1.0, %v3691_v32  ;;  %v5259_v32 = vld [vmem:[%s5756_s1 + $0xc4] ss:$16 sps:$4 sm:$0xff]  }
 0x981   :  { %3702 = vrcp.f32 %v1755_v42  ;;  %v5295_v42 = vld [vmem:[%s5756_s1 + $0xe0] ss:$16 sps:$4 sm:$0xff]  }
 0x982   :  { %3704 = vrcp.f32 %v1756_v30 }
 0x985   :  { %v3693_v39 = vpop.eup %3692 }
 0x986   :  { %v3695_v62 = vpop.eup %3694  ;;  %v1769_v15 = vmul.f32 %v3693_v39, %v3687_v19  ;;  %v5247_v19 = vld [vmem:[%s5756_s1 + $0xa0] ss:$16 sps:$4 sm:$0xff]   ;;  %v5265_v39 = vld [vmem:[%s5756_s1 + $0xcc] ss:$16 sps:$4 sm:$0xff]  }
 0x987   :  { %v3697_v14 = vpop.eup %3696 }
 0x988   :  { %v3699_v16 = vpop.eup %3698  ;;  %v1770_v25 = vmul.f32 %v3697_v14, %v3695_v62  ;;  %v5271_v62 = vld [vmem:[%s5756_s1 + $0xc0] ss:$16 sps:$4 sm:$0xff]   ;;  %v5283_v14 = vld [vmem:[%s5756_s1 + $0xe4] ss:$16 sps:$4 sm:$0xff]  }
 0x989   :  { %v3701_v31 = vpop.eup %3700  ;;  %v1767_v36 = vmul.f32 %v3699_v16, %v1763_v41  ;;  %v5289_v41 = vld [vmem:[%s5756_s1 + $0xec] ss:$16 sps:$4 sm:$0xff]   ;;  %v5301_v16 = vld [vmem:[%s5756_s1 + $0xe8] ss:$16 sps:$4 sm:$0xff]  }
 0x98a   :  { %v1768_v53 = vmul.f32 %v3701_v31, %v1764_v26  ;;  %v5313_v26 = vld [vmem:[%s5756_s1 + $0xc] ss:$16 sps:$4 sm:$0xff]  }
 0x98b   :  { %v5099_v61 = vadd.f32 %v1769_v15, %v1767_v36  ;;  %v3703_v3 = vpop.eup %3702  ;;  %v5277_v15 = vld [vmem:[%s5756_s1 + $0xc8] ss:$16 sps:$4 sm:$0xff]   ;;  %5810 = vst [vmem:[#allocation4_spill] sm:$0xff] %v5313_v26 }
 0x98c   :  { %v5101_v44 = vadd.f32 %v1770_v25, %v1768_v53  ;;  %v3705_v45 = vpop.eup %3704  ;;  %v5307_v25 = vld [vmem:[%s5756_s1 + $0x4] ss:$16 sps:$4 sm:$0xff]  }
 0x98d   :  { %3706 = vtanh.f32 %v5099_v61  ;;  %5809 = vst [vmem:[#allocation6_spill] sm:$0xff] %v5307_v25 }
 0x98e   :  { %3708 = vtanh.f32 %v5101_v44 }
 0x997   :  { %v3707_v50 = vpop.eup %3706 }
 0x998   :  { %v3709_v54 = vpop.eup %3708  ;;  %v1775_v6 = vmul.f32 %v3707_v50, %v3703_v3 }
 0x999   :  { %v1776_v24 = vmul.f32 %v3709_v54, %v3705_v45 }
 0x99a   :  { %v1777_v0 = vpack.c.bf16 %v1775_v6, %v1775_v6 }
 0x99b   :  { %v1778_v56 = vpack.c.bf16 %v1776_v24, %v1776_v24 }
 0x99c   :  { %v3088_v33 = vrot.slane %v1777_v0, 4  ;;  %v1781_v46 = vunpack.c.l.b16 %v1777_v0 }
 0x99d   :  { %v1782_v38 = vunpack.c.l.b16 %v1778_v56  ;;  %v3089_v63 = vrot.slane %v1778_v56, 4 }
 0x99e   :  { %v5111_v34 = vsel %vm3154_vm10, %v3157_v21, %v3088_v33  ;;  %v5157_v21 = vld [vmem:[%s5756_s1 + $0x28] ss:$16 sps:$4 sm:$0xff]  }
 0x99f   :  { %v1783_v48 = vrot.slane %v1782_v38, 7  ;;  %v5119_v40 = vsel %vm3154_vm10, %v3158_v1, %v3089_v63  ;;  %v5163_v1 = vld [vmem:[%s5756_s1 + $0x44] ss:$16 sps:$4 sm:$0xff]  }
 0x9a1   :  { %v1784_v13 = vsel %vm393_vm0, %v1783_v48, %v1781_v46 }
 0x9a2   :  { %v1785_v7 = vpack.c.b16 %v1784_v13, %v1784_v13 }
 0x9a4   :  { %1820 = vmatmul.mubr.bf16.vlgmr.msra.gmra.mrb[36].mxu0 %v1785_v7  ;;  %1861 = vmatmul.mubr.bf16.vlgmr.msra.gmra.mrb[36].mxu1 %v1785_v7 }
 0x9a5   :  { %1958 = vmatpush1.bf16.msra.mxu0 %v5125_v17  ;;  %1999 = vmatpush1.bf16.msra.mxu1 %v5131_v18 }
 0x9a6   :  { %1959 = vmatprep.subr.bf16.mxu0 %v5137_v10  ;;  %2000 = vmatprep.subr.bf16.mxu1 %v5143_v58 }
 0x9a7   :  { %1989 = vmatprep.mubr.bf16.mxu0 %v5782_v52  ;;  %2030 = vmatprep.mubr.bf16.mxu1 %v5782_v52 }
 0x9a9   :  { %1960 = vmatpush1.bf16.msra.mxu0 %v5151_v11  ;;  %2001 = vmatpush1.bf16.msra.mxu1 %v5157_v21 }
 0x9aa   :  { %1961 = vmatprep.subr.bf16.mxu0 %v5163_v1  ;;  %2002 = vmatprep.subr.bf16.mxu1 %v5169_v9 }
 0x9ad   :  { %1962 = vmatpush1.bf16.msra.mxu0 %v5175_v51  ;;  %2003 = vmatpush1.bf16.msra.mxu1 %v5181_v20 }
 0x9ae   :  { %1963 = vmatprep.subr.bf16.mxu0 %v5187_v35  ;;  %2004 = vmatprep.subr.bf16.mxu1 %v5193_v37 }
 0x9b1   :  { %1964 = vmatpush1.bf16.msra.mxu0 %v5199_v12  ;;  %2005 = vmatpush1.bf16.msra.mxu1 %v5205_v5 }
 0x9b2   :  { %1965 = vmatprep.subr.bf16.mxu0 %v5211_v22  ;;  %2006 = vmatprep.subr.bf16.mxu1 %v5217_v60 }
 0x9b5   :  { %1966 = vmatpush1.bf16.msra.mxu0 %v5223_v4  ;;  %2007 = vmatpush1.bf16.msra.mxu1 %v5229_v8 }
 0x9b6   :  { %1967 = vmatprep.subr.bf16.mxu0 %v5235_v2  ;;  %2008 = vmatprep.subr.bf16.mxu1 %v5241_v55 }
 0x9b9   :  { %1968 = vmatpush1.bf16.msra.mxu0 %v5247_v19  ;;  %2009 = vmatpush1.bf16.msra.mxu1 %v5253_v57 }
 0x9ba   :  { %1969 = vmatprep.subr.bf16.mxu0 %v5259_v32  ;;  %2010 = vmatprep.subr.bf16.mxu1 %v5265_v39 }
 0x9bd   :  { %1970 = vmatpush1.bf16.msra.mxu0 %v5271_v62  ;;  %2011 = vmatpush1.bf16.msra.mxu1 %v5277_v15 }
 0x9be   :  { %1971 = vmatprep.subr.bf16.mxu0 %v5283_v14  ;;  %2012 = vmatprep.subr.bf16.mxu1 %v5289_v41 }
 0x9c1   :  { %1972 = vmatpush1.bf16.msra.mxu0 %v5295_v42  ;;  %2013 = vmatpush1.bf16.msra.mxu1 %v5301_v16 }
 0x9c2   :  { %2132 = vmatprep.subr.bf16.mxu0 %v5307_v25  ;;  %2173 = vmatprep.subr.bf16.mxu1 %v5313_v26 }
 0xa77   :  { %v1821_v30 = vpop.f32.mrb[36].mxu0  ;;  %v1862_v31 = vpop.f32.mrb[36].mxu1 }
 0xa78   :  { %v1873_v36 = vrot.slane %v1821_v30, 7  ;;  %v1889_v53 = vadd.f32 %v1821_v30, %v5062_v29  ;;  %v1823_v3 = vpop.f32.mrb[37].mxu0  ;;  %v1864_v45 = vpop.f32.mrb[37].mxu1 }
 0xa79   :  { %v1874_v50 = vrot.slane %v1823_v3, 7  ;;  %v1890_v54 = vadd.f32 %v1823_v3, %v5068_v59  ;;  %v1825_v6 = vpop.f32.mrb[38].mxu0  ;;  %v1866_v24 = vpop.f32.mrb[38].mxu1  ;;  %v1876_v46 = vrot.slane %v1864_v45, 7  ;;  %v1892_v3 = vadd.f32 %v1864_v45, %v5081_v43 }
 0xa7a   :  { %v1885_v0 = vadd.f32 %v1873_v36, %v5052_v27  ;;  %v3324_v56 = vmul.f32 -1.442695, %v1889_v53  ;;  %v1826_v33 = vpop.f32.mrb[39].mxu0  ;;  %v1867_v38 = vpop.f32.mrb[39].mxu1  ;;  %v1875_v6 = vrot.slane %v1862_v31, 7  ;;  %v1891_v36 = vadd.f32 %v1862_v31, %v5094_v47 }
 0xa7b   :  { %v1886_v63 = vadd.f32 %v1874_v50, %v5057_v28  ;;  %v3326_v13 = vmul.f32 -1.442695, %v1890_v54  ;;  %v1888_v30 = vadd.f32 %v1876_v46, %v5076_v49  ;;  %v3328_v24 = vmul.f32 -1.442695, %v1892_v3 }
 0xa7c   :  { %v3323_v48 = vmul.f32 -1.442695, %v1885_v0  ;;  %3710 = vpow2.f32 %v3324_v56  ;;  %v1887_v50 = vadd.f32 %v1875_v6, %v5086_v23 }
 0xa7d   :  { %v3325_v7 = vmul.f32 -1.442695, %v1886_v63  ;;  %v3327_v53 = vmul.f32 -1.442695, %v1888_v30 }
 0xa7e   :  { %3712 = vpow2.f32 %v3323_v48 }
 0xa7f   :  { %3714 = vpow2.f32 %v3325_v7 }
 0xa80   :  { %3716 = vpow2.f32 %v3326_v13 }
 0xa81   :  { %3718 = vtanh.f32 %v1891_v36  ;;  %v1933_v36 = vrot.slane %v5099_v61, 7 }
 0xa82   :  { %3720 = vpow2.f32 %v3327_v53 }
 0xa83   :  { %3722 = vpow2.f32 %v3328_v24 }
 0xa86   :  { %v3711_v33 = vpop.eup %3710 }
 0xa87   :  { %v1900_v0 = vadd.f32 1.0, %v3711_v33 }
 0xa88   :  { %v3713_v54 = vpop.eup %3712 }
 0xa89   :  { %v3715_v56 = vpop.eup %3714  ;;  %v1899_v38 = vadd.f32 1.0, %v3713_v54  ;;  %3724 = vrcp.f32 %v1900_v0  ;;  %v1934_v0 = vrot.slane %v5101_v44, 7 }
 0xa8a   :  { %v3717_v63 = vpop.eup %3716  ;;  %3726 = vtanh.f32 %v1887_v50  ;;  %v1911_v46 = vadd.f32 1.0, %v3715_v56 }
 0xa8b   :  { %3728 = vrcp.f32 %v1899_v38  ;;  %v1912_v45 = vadd.f32 1.0, %v3717_v63  ;;  %v3719_v31 = vpop.eup %3718 }
 0xa8c   :  { %3730 = vrcp.f32 %v1911_v46  ;;  %v3721_v48 = vpop.eup %3720 }
 0xa8d   :  { %3732 = vrcp.f32 %v1912_v45  ;;  %v3723_v13 = vpop.eup %3722  ;;  %v1925_v53 = vadd.f32 1.0, %v3721_v48 }
 0xa8e   :  { %v1926_v50 = vadd.f32 1.0, %v3723_v13 }
 0xa8f   :  { %3734 = vrcp.f32 %v1925_v53 }
 0xa90   :  { %3736 = vrcp.f32 %v1926_v50 }
 0xa93   :  { %v3725_v7 = vpop.eup %3724 }
 0xa94   :  { %v3727_v30 = vpop.eup %3726  ;;  %v1940_v3 = vmul.f32 %v3725_v7, %v3719_v31 }
 0xa95   :  { %v3729_v6 = vpop.eup %3728 }
 0xa96   :  { %v3731_v24 = vpop.eup %3730  ;;  %v1939_v33 = vmul.f32 %v3729_v6, %v3727_v30 }
 0xa97   :  { %v3733_v54 = vpop.eup %3732  ;;  %v1937_v56 = vmul.f32 %v3731_v24, %v1933_v36 }
 0xa98   :  { %v1938_v38 = vmul.f32 %v3733_v54, %v1934_v0 }
 0xa99   :  { %v5326_v63 = vadd.f32 %v1939_v33, %v1937_v56  ;;  %v3735_v61 = vpop.eup %3734 }
 0xa9a   :  { %v5328_v46 = vadd.f32 %v1940_v3, %v1938_v38  ;;  %v3737_v45 = vpop.eup %3736 }
 0xa9b   :  { %3738 = vtanh.f32 %v5326_v63 }
 0xa9c   :  { %3740 = vtanh.f32 %v5328_v46 }
 0xaa5   :  { %v3739_v31 = vpop.eup %3738 }
 0xaa6   :  { %v3741_v48 = vpop.eup %3740  ;;  %v1945_v7 = vmul.f32 %v3739_v31, %v3735_v61 }
 0xaa7   :  { %v1946_v44 = vmul.f32 %v3741_v48, %v3737_v45 }
 0xaa8   :  { %v1947_v13 = vpack.c.bf16 %v1945_v7, %v1945_v7 }
 0xaa9   :  { %v1948_v30 = vpack.c.bf16 %v1946_v44, %v1946_v44 }
 0xaaa   :  { %v1951_v6 = vunpack.c.l.b16 %v1947_v13  ;;  %v3090_v36 = vrot.slane %v1947_v13, 4 }
 0xaab   :  { %v3091_v3 = vrot.slane %v1948_v30, 4  ;;  %v1952_v53 = vunpack.c.l.b16 %v1948_v30 }
 0xaac   :  { %v1953_v24 = vrot.slane %v1951_v6, 1  ;;  %v5334_v33 = vsel %vm3170_vm15, %v5111_v34, %v3090_v36 }
 0xaad   :  { %v5337_v0 = vsel %vm3170_vm15, %v5119_v40, %v3091_v3 }
 0xaae   :  { %v1954_v50 = vsel %vm393_vm0, %v1952_v53, %v1953_v24 }
 0xaaf   :  { %v1955_v54 = vpack.c.b16 %v1954_v50, %v1954_v50 }
 0xab1   :  { %1990 = vmatmul.mubr.bf16.vlgmr.msra.gmra.mrb[40].mxu0 %v1955_v54  ;;  %2031 = vmatmul.mubr.bf16.vlgmr.msra.gmra.mrb[40].mxu1 %v1955_v54 }
 0xab2   :  { %2133 = vmatpush1.bf16.msra.mxu0 %v5125_v17  ;;  %2174 = vmatpush1.bf16.msra.mxu1 %v5131_v18 }
 0xab3   :  { %2134 = vmatprep.subr.bf16.mxu0 %v5137_v10  ;;  %2175 = vmatprep.subr.bf16.mxu1 %v5143_v58 }
 0xab4   :  { %2164 = vmatprep.mubr.bf16.mxu0 %v5782_v52  ;;  %2205 = vmatprep.mubr.bf16.mxu1 %v5782_v52 }
 0xab6   :  { %2135 = vmatpush1.bf16.msra.mxu0 %v5151_v11  ;;  %2176 = vmatpush1.bf16.msra.mxu1 %v5157_v21 }
 0xab7   :  { %2136 = vmatprep.subr.bf16.mxu0 %v5163_v1  ;;  %2177 = vmatprep.subr.bf16.mxu1 %v5169_v9 }
 0xaba   :  { %2137 = vmatpush1.bf16.msra.mxu0 %v5175_v51  ;;  %2178 = vmatpush1.bf16.msra.mxu1 %v5181_v20 }
 0xabb   :  { %2138 = vmatprep.subr.bf16.mxu0 %v5187_v35  ;;  %2179 = vmatprep.subr.bf16.mxu1 %v5193_v37 }
 0xabe   :  { %2139 = vmatpush1.bf16.msra.mxu0 %v5199_v12  ;;  %2180 = vmatpush1.bf16.msra.mxu1 %v5205_v5 }
 0xabf   :  { %2140 = vmatprep.subr.bf16.mxu0 %v5211_v22  ;;  %2181 = vmatprep.subr.bf16.mxu1 %v5217_v60 }
 0xac2   :  { %2141 = vmatpush1.bf16.msra.mxu0 %v5223_v4  ;;  %2182 = vmatpush1.bf16.msra.mxu1 %v5229_v8 }
 0xac3   :  { %2142 = vmatprep.subr.bf16.mxu0 %v5235_v2  ;;  %2183 = vmatprep.subr.bf16.mxu1 %v5241_v55 }
 0xac6   :  { %2143 = vmatpush1.bf16.msra.mxu0 %v5247_v19  ;;  %2184 = vmatpush1.bf16.msra.mxu1 %v5253_v57 }
 0xac7   :  { %2144 = vmatprep.subr.bf16.mxu0 %v5259_v32  ;;  %2185 = vmatprep.subr.bf16.mxu1 %v5265_v39 }
 0xaca   :  { %2145 = vmatpush1.bf16.msra.mxu0 %v5271_v62  ;;  %2186 = vmatpush1.bf16.msra.mxu1 %v5277_v15 }
 0xacb   :  { %2146 = vmatprep.subr.bf16.mxu0 %v5283_v14  ;;  %2187 = vmatprep.subr.bf16.mxu1 %v5289_v41 }
 0xace   :  { %2147 = vmatpush1.bf16.msra.mxu0 %v5295_v42  ;;  %2188 = vmatpush1.bf16.msra.mxu1 %v5301_v16 }
 0xacf   :  { %2307 = vmatprep.subr.bf16.mxu0 %v5307_v25  ;;  %2348 = vmatprep.subr.bf16.mxu1 %v5313_v26 }
 0xb84   :  { %v1991_v34 = vpop.f32.mrb[40].mxu0  ;;  %v2032_v40 = vpop.f32.mrb[40].mxu1 }
 0xb85   :  { %v2043_v56 = vrot.slane %v1991_v34, 6  ;;  %v2047_v38 = vrot.slane %v1991_v34, 7  ;;  %v1993_v61 = vpop.f32.mrb[41].mxu0  ;;  %v2034_v45 = vpop.f32.mrb[41].mxu1 }
 0xb86   :  { %v2044_v31 = vrot.slane %v1993_v61, 6  ;;  %v2048_v48 = vrot.slane %v1993_v61, 7  ;;  %v1995_v7 = vpop.f32.mrb[42].mxu0  ;;  %v2036_v44 = vpop.f32.mrb[42].mxu1  ;;  %v2046_v26 = vrot.slane %v2034_v45, 6  ;;  %v2050_v25 = vrot.slane %v2034_v45, 7 }
 0xb87   :  { %v2059_v13 = vadd.f32 %v2043_v56, %v5052_v27  ;;  %v2063_v30 = vadd.f32 %v2047_v38, %v5062_v29  ;;  %v1996_v6 = vpop.f32.mrb[43].mxu0  ;;  %v2037_v36 = vpop.f32.mrb[43].mxu1  ;;  %v2045_v61 = vrot.slane %v2032_v40, 6  ;;  %v2049_v7 = vrot.slane %v2032_v40, 7 }
 0xb88   :  { %v2060_v3 = vadd.f32 %v2044_v31, %v5057_v28  ;;  %v2064_v53 = vadd.f32 %v2048_v48, %v5068_v59  ;;  %v2062_v56 = vadd.f32 %v2046_v26, %v5076_v49  ;;  %v2066_v38 = vadd.f32 %v2050_v25, %v5081_v43 }
 0xb89   :  { %v3329_v24 = vmul.f32 -1.442695, %v2059_v13  ;;  %v3330_v50 = vmul.f32 -1.442695, %v2063_v30  ;;  %v2061_v31 = vadd.f32 %v2045_v61, %v5086_v23  ;;  %v2065_v48 = vadd.f32 %v2049_v7, %v5094_v47 }
 0xb8a   :  { %v3331_v54 = vmul.f32 -1.442695, %v2060_v3  ;;  %v3332_v34 = vmul.f32 -1.442695, %v2064_v53  ;;  %v3333_v44 = vmul.f32 -1.442695, %v2062_v56 }
 0xb8b   :  { %3742 = vpow2.f32 %v3329_v24  ;;  %v3334_v13 = vmul.f32 -1.442695, %v2066_v38  ;;  %v2107_v56 = vrot.slane %v5326_v63, 7 }
 0xb8c   :  { %3744 = vpow2.f32 %v3330_v50 }
 0xb8d   :  { %3746 = vpow2.f32 %v3331_v54 }
 0xb8e   :  { %3748 = vpow2.f32 %v3332_v34 }
 0xb8f   :  { %3750 = vtanh.f32 %v2061_v31 }
 0xb90   :  { %3752 = vtanh.f32 %v2065_v48 }
 0xb91   :  { %3754 = vpow2.f32 %v3333_v44  ;;  %v2108_v44 = vrot.slane %v5328_v46, 7 }
 0xb92   :  { %3756 = vpow2.f32 %v3334_v13 }
 0xb95   :  { %v3743_v30 = vpop.eup %3742 }
 0xb96   :  { %v3745_v6 = vpop.eup %3744  ;;  %v2073_v45 = vadd.f32 1.0, %v3743_v30 }
 0xb97   :  { %v3747_v36 = vpop.eup %3746  ;;  %v2074_v40 = vadd.f32 1.0, %v3745_v6 }
 0xb98   :  { %v3749_v3 = vpop.eup %3748  ;;  %3758 = vrcp.f32 %v2073_v45  ;;  %v2085_v26 = vadd.f32 1.0, %v3747_v36 }
 0xb99   :  { %3760 = vrcp.f32 %v2074_v40  ;;  %v2086_v25 = vadd.f32 1.0, %v3749_v3  ;;  %v3751_v53 = vpop.eup %3750 }
 0xb9a   :  { %3762 = vrcp.f32 %v2085_v26  ;;  %v3753_v24 = vpop.eup %3752 }
 0xb9b   :  { %3764 = vrcp.f32 %v2086_v25  ;;  %v3755_v50 = vpop.eup %3754 }
 0xb9c   :  { %v3757_v54 = vpop.eup %3756  ;;  %v2099_v38 = vadd.f32 1.0, %v3755_v50 }
 0xb9d   :  { %v2100_v13 = vadd.f32 1.0, %v3757_v54 }
 0xb9e   :  { %3766 = vrcp.f32 %v2099_v38 }
 0xb9f   :  { %3768 = vrcp.f32 %v2100_v13 }
 0xba2   :  { %v3759_v34 = vpop.eup %3758 }
 0xba3   :  { %v3761_v61 = vpop.eup %3760  ;;  %v2113_v7 = vmul.f32 %v3759_v34, %v3751_v53 }
 0xba4   :  { %v3763_v31 = vpop.eup %3762  ;;  %v2114_v48 = vmul.f32 %v3761_v61, %v3753_v24 }
 0xba5   :  { %v3765_v30 = vpop.eup %3764  ;;  %v2111_v6 = vmul.f32 %v3763_v31, %v2107_v56 }
 0xba6   :  { %v2112_v45 = vmul.f32 %v3765_v30, %v2108_v44 }
 0xba7   :  { %v5384_v36 = vadd.f32 %v2113_v7, %v2111_v6 }
 0xba8   :  { %v5386_v40 = vadd.f32 %v2114_v48, %v2112_v45  ;;  %v3767_v63 = vpop.eup %3766 }
 0xba9   :  { %3770 = vtanh.f32 %v5384_v36  ;;  %v3769_v3 = vpop.eup %3768 }
 0xbaa   :  { %3772 = vtanh.f32 %v5386_v40 }
 0xbb3   :  { %v3771_v26 = vpop.eup %3770 }
 0xbb4   :  { %v3773_v25 = vpop.eup %3772  ;;  %v2119_v53 = vmul.f32 %v3771_v26, %v3767_v63 }
 0xbb5   :  { %v2120_v46 = vmul.f32 %v3773_v25, %v3769_v3 }
 0xbb6   :  { %v2121_v24 = vpack.c.bf16 %v2119_v53, %v2119_v53 }
 0xbb7   :  { %v2122_v50 = vpack.c.bf16 %v2120_v46, %v2120_v46 }
 0xbb8   :  { %v2125_v54 = vunpack.c.l.b16 %v2121_v24  ;;  %v3094_v34 = vrot.slane %v2121_v24, 4 }
 0xbb9   :  { %v2126_v61 = vunpack.c.l.b16 %v2122_v50  ;;  %v3095_v7 = vrot.slane %v2122_v50, 4 }
 0xbba   :  { %v2127_v56 = vrot.slane %v2125_v54, 2  ;;  %v5392_v38 = vsel %vm3168_vm13, %v5334_v33, %v3094_v34  ;;  %v5811_v33 = vld [vmem:[#allocation6_spill] sm:$0xff] }
 0xbbb   :  { %v2128_v31 = vrot.slane %v2126_v61, 1  ;;  %v5396_v48 = vsel %vm3168_vm13, %v5337_v0, %v3095_v7  ;;  %v5812_v0 = vld [vmem:[#allocation4_spill] sm:$0xff] }
 0xbbd   :  { %v2129_v44 = vsel %vm393_vm0, %v2128_v31, %v2127_v56 }
 0xbbe   :  { %v2130_v13 = vpack.c.b16 %v2129_v44, %v2129_v44 }
 0xbc0   :  { %2165 = vmatmul.mubr.bf16.vlgmr.msra.gmra.mrb[44].mxu0 %v2130_v13  ;;  %2206 = vmatmul.mubr.bf16.vlgmr.msra.gmra.mrb[44].mxu1 %v2130_v13 }
 0xbc1   :  { %2308 = vmatpush1.bf16.msra.mxu0 %v5125_v17  ;;  %2349 = vmatpush1.bf16.msra.mxu1 %v5131_v18 }
 0xbc2   :  { %2309 = vmatprep.subr.bf16.mxu0 %v5137_v10  ;;  %2350 = vmatprep.subr.bf16.mxu1 %v5143_v58 }
 0xbc3   :  { %2339 = vmatprep.mubr.bf16.mxu0 %v5782_v52  ;;  %2380 = vmatprep.mubr.bf16.mxu1 %v5782_v52 }
 0xbc5   :  { %2310 = vmatpush1.bf16.msra.mxu0 %v5151_v11  ;;  %2351 = vmatpush1.bf16.msra.mxu1 %v5157_v21 }
 0xbc6   :  { %2311 = vmatprep.subr.bf16.mxu0 %v5163_v1  ;;  %2352 = vmatprep.subr.bf16.mxu1 %v5169_v9 }
 0xbc9   :  { %2312 = vmatpush1.bf16.msra.mxu0 %v5175_v51  ;;  %2353 = vmatpush1.bf16.msra.mxu1 %v5181_v20 }
 0xbca   :  { %2313 = vmatprep.subr.bf16.mxu0 %v5187_v35  ;;  %2354 = vmatprep.subr.bf16.mxu1 %v5193_v37 }
 0xbcd   :  { %2314 = vmatpush1.bf16.msra.mxu0 %v5199_v12  ;;  %2355 = vmatpush1.bf16.msra.mxu1 %v5205_v5 }
 0xbce   :  { %2315 = vmatprep.subr.bf16.mxu0 %v5211_v22  ;;  %2356 = vmatprep.subr.bf16.mxu1 %v5217_v60 }
 0xbd1   :  { %2316 = vmatpush1.bf16.msra.mxu0 %v5223_v4  ;;  %2357 = vmatpush1.bf16.msra.mxu1 %v5229_v8 }
 0xbd2   :  { %2317 = vmatprep.subr.bf16.mxu0 %v5235_v2  ;;  %2358 = vmatprep.subr.bf16.mxu1 %v5241_v55 }
 0xbd5   :  { %2318 = vmatpush1.bf16.msra.mxu0 %v5247_v19  ;;  %2359 = vmatpush1.bf16.msra.mxu1 %v5253_v57 }
 0xbd6   :  { %2319 = vmatprep.subr.bf16.mxu0 %v5259_v32  ;;  %2360 = vmatprep.subr.bf16.mxu1 %v5265_v39 }
 0xbd9   :  { %2320 = vmatpush1.bf16.msra.mxu0 %v5271_v62  ;;  %2361 = vmatpush1.bf16.msra.mxu1 %v5277_v15 }
 0xbda   :  { %2321 = vmatprep.subr.bf16.mxu0 %v5283_v14  ;;  %2362 = vmatprep.subr.bf16.mxu1 %v5289_v41 }
 0xbdd   :  { %2322 = vmatpush1.bf16.msra.mxu0 %v5295_v42  ;;  %2363 = vmatpush1.bf16.msra.mxu1 %v5301_v16 }
 0xbde   :  { %2482 = vmatprep.subr.bf16.mxu0 %v5811_v33  ;;  %2523 = vmatprep.subr.bf16.mxu1 %v5812_v0 }
 0xc93   :  { %v2166_v30 = vpop.f32.mrb[44].mxu0  ;;  %v2207_v6 = vpop.f32.mrb[44].mxu1 }
 0xc94   :  { %v2218_v45 = vrot.slane %v2166_v30, 5  ;;  %v2222_v63 = vrot.slane %v2166_v30, 6  ;;  %v2168_v3 = vpop.f32.mrb[45].mxu0  ;;  %v2209_v26 = vpop.f32.mrb[45].mxu1 }
 0xc95   :  { %v2219_v25 = vrot.slane %v2168_v3, 5  ;;  %v2223_v53 = vrot.slane %v2168_v3, 6  ;;  %v2170_v46 = vpop.f32.mrb[46].mxu0  ;;  %v2211_v24 = vpop.f32.mrb[46].mxu1  ;;  %v2221_v0 = vrot.slane %v2209_v26, 5  ;;  %v2225_v33 = vrot.slane %v2209_v26, 6 }
 0xc96   :  { %v2234_v50 = vadd.f32 %v2218_v45, %v5052_v27  ;;  %v2238_v54 = vadd.f32 %v2222_v63, %v5062_v29  ;;  %v2171_v34 = vpop.f32.mrb[47].mxu0  ;;  %v2212_v61 = vpop.f32.mrb[47].mxu1  ;;  %v2220_v3 = vrot.slane %v2207_v6, 5  ;;  %v2224_v46 = vrot.slane %v2207_v6, 6 }
 0xc97   :  { %v2235_v7 = vadd.f32 %v2219_v25, %v5057_v28  ;;  %v2239_v56 = vadd.f32 %v2223_v53, %v5068_v59  ;;  %v2237_v27 = vadd.f32 %v2221_v0, %v5076_v49  ;;  %v2241_v29 = vadd.f32 %v2225_v33, %v5081_v43 }
 0xc98   :  { %v3335_v31 = vmul.f32 -1.442695, %v2234_v50  ;;  %v3336_v44 = vmul.f32 -1.442695, %v2238_v54  ;;  %v2236_v28 = vadd.f32 %v2220_v3, %v5086_v23  ;;  %v2240_v59 = vadd.f32 %v2224_v46, %v5094_v47 }
 0xc99   :  { %v3337_v13 = vmul.f32 -1.442695, %v2235_v7  ;;  %v3338_v30 = vmul.f32 -1.442695, %v2239_v56  ;;  %v3339_v45 = vmul.f32 -1.442695, %v2237_v27 }
 0xc9a   :  { %3774 = vpow2.f32 %v3335_v31  ;;  %v3340_v63 = vmul.f32 -1.442695, %v2241_v29  ;;  %v2282_v31 = vrot.slane %v5384_v36, 7  ;;  %v2283_v3 = vrot.slane %v5386_v40, 7 }
 0xc9b   :  { %3776 = vpow2.f32 %v3336_v44 }
 0xc9c   :  { %3778 = vpow2.f32 %v3337_v13 }
 0xc9d   :  { %3780 = vpow2.f32 %v3338_v30 }
 0xc9e   :  { %3782 = vtanh.f32 %v2236_v28 }
 0xc9f   :  { %3784 = vtanh.f32 %v2240_v59 }
 0xca0   :  { %3786 = vpow2.f32 %v3339_v45 }
 0xca1   :  { %3788 = vpow2.f32 %v3340_v63 }
 0xca4   :  { %v3775_v25 = vpop.eup %3774 }
 0xca5   :  { %v3777_v53 = vpop.eup %3776  ;;  %v2248_v26 = vadd.f32 1.0, %v3775_v25 }
 0xca6   :  { %v3779_v24 = vpop.eup %3778  ;;  %v2249_v6 = vadd.f32 1.0, %v3777_v53 }
 0xca7   :  { %v3781_v50 = vpop.eup %3780  ;;  %3790 = vrcp.f32 %v2248_v26  ;;  %v2260_v49 = vadd.f32 1.0, %v3779_v24 }
 0xca8   :  { %3792 = vrcp.f32 %v2249_v6  ;;  %v2261_v43 = vadd.f32 1.0, %v3781_v50  ;;  %v3783_v33 = vpop.eup %3782 }
 0xca9   :  { %3794 = vrcp.f32 %v2260_v49  ;;  %v3785_v0 = vpop.eup %3784 }
 0xcaa   :  { %3796 = vrcp.f32 %v2261_v43  ;;  %v3787_v54 = vpop.eup %3786 }
 0xcab   :  { %v3789_v34 = vpop.eup %3788  ;;  %v2274_v44 = vadd.f32 1.0, %v3787_v54 }
 0xcac   :  { %v2275_v46 = vadd.f32 1.0, %v3789_v34 }
 0xcad   :  { %3798 = vrcp.f32 %v2274_v44 }
 0xcae   :  { %3800 = vrcp.f32 %v2275_v46 }
 0xcb1   :  { %v3791_v61 = vpop.eup %3790 }
 0xcb2   :  { %v3793_v7 = vpop.eup %3792  ;;  %v2288_v56 = vmul.f32 %v3791_v61, %v3783_v33 }
 0xcb3   :  { %v3795_v13 = vpop.eup %3794  ;;  %v2289_v30 = vmul.f32 %v3793_v7, %v3785_v0 }
 0xcb4   :  { %v3797_v27 = vpop.eup %3796  ;;  %v2286_v29 = vmul.f32 %v3795_v13, %v2282_v31 }
 0xcb5   :  { %v2287_v28 = vmul.f32 %v3797_v27, %v2283_v3 }
 0xcb6   :  { %v5443_v59 = vadd.f32 %v2288_v56, %v2286_v29 }
 0xcb7   :  { %v5445_v45 = vadd.f32 %v2289_v30, %v2287_v28  ;;  %v3799_v36 = vpop.eup %3798 }
 0xcb8   :  { %3802 = vtanh.f32 %v5443_v59  ;;  %v3801_v63 = vpop.eup %3800 }
 0xcb9   :  { %3804 = vtanh.f32 %v5445_v45 }
 0xcc2   :  { %v3803_v25 = vpop.eup %3802 }
 0xcc3   :  { %v3805_v53 = vpop.eup %3804  ;;  %v2294_v26 = vmul.f32 %v3803_v25, %v3799_v36 }
 0xcc4   :  { %v2295_v40 = vmul.f32 %v3805_v53, %v3801_v63  ;;  %v5494_v63 = vld [vmem:[%s5757_s0 + $0x20] sm:$0xff] }
 0xcc5   :  { %v2296_v24 = vpack.c.bf16 %v2294_v26, %v2294_v26  ;;  %v5500_v53 = vld [vmem:[%s5757_s0 + $0x60] sm:$0xff] }
 0xcc6   :  { %v2297_v6 = vpack.c.bf16 %v2295_v40, %v2295_v40 }
 0xcc7   :  { %v2300_v50 = vunpack.c.l.b16 %v2296_v24  ;;  %v3096_v49 = vrot.slane %v2296_v24, 4 }
 0xcc8   :  { %v2301_v43 = vunpack.c.l.b16 %v2297_v6  ;;  %v3097_v33 = vrot.slane %v2297_v6, 4  ;;  %v5506_v6 = vld [vmem:[%s5757_s0 + $0x28] sm:$0xff] }
 0xcc9   :  { %v2302_v0 = vrot.slane %v2300_v50, 3  ;;  %v5451_v54 = vsel %vm3184_vm3, %v5392_v38, %v3096_v49  ;;  %v5813_v38 = vld [vmem:[#allocation6_spill] sm:$0xff]  ;;  %v5512_v49 = vld [vmem:[%s5757_s0 + $0x68] sm:$0xff] }
 0xcca   :  { %v2303_v34 = vrot.slane %v2301_v43, 2  ;;  %v5454_v61 = vsel %vm3184_vm3, %v5396_v48, %v3097_v33  ;;  %v5814_v48 = vld [vmem:[#allocation4_spill] sm:$0xff] }
 0xccc   :  { %v2304_v7 = vsel %vm393_vm0, %v2303_v34, %v2302_v0 }
 0xccd   :  { %v2305_v56 = vpack.c.b16 %v2304_v7, %v2304_v7 }
 0xccf   :  { %2340 = vmatmul.mubr.bf16.vlgmr.msra.gmra.mrb[48].mxu0 %v2305_v56  ;;  %2381 = vmatmul.mubr.bf16.vlgmr.msra.gmra.mrb[48].mxu1 %v2305_v56 }
 0xcd0   :  { %2483 = vmatpush1.bf16.msra.mxu0 %v5125_v17  ;;  %2524 = vmatpush1.bf16.msra.mxu1 %v5131_v18 }
 0xcd1   :  { %2484 = vmatprep.subr.bf16.mxu0 %v5137_v10  ;;  %2525 = vmatprep.subr.bf16.mxu1 %v5143_v58 }
 0xcd2   :  { %2514 = vmatprep.mubr.bf16.mxu0 %v5782_v52  ;;  %2555 = vmatprep.mubr.bf16.mxu1 %v5782_v52 }
 0xcd4   :  { %2485 = vmatpush1.bf16.msra.mxu0 %v5151_v11  ;;  %2526 = vmatpush1.bf16.msra.mxu1 %v5157_v21 }
 0xcd5   :  { %2486 = vmatprep.subr.bf16.mxu0 %v5163_v1  ;;  %2527 = vmatprep.subr.bf16.mxu1 %v5169_v9 }
 0xcd8   :  { %2487 = vmatpush1.bf16.msra.mxu0 %v5175_v51  ;;  %2528 = vmatpush1.bf16.msra.mxu1 %v5181_v20 }
 0xcd9   :  { %2488 = vmatprep.subr.bf16.mxu0 %v5187_v35  ;;  %2529 = vmatprep.subr.bf16.mxu1 %v5193_v37 }
 0xcdc   :  { %2489 = vmatpush1.bf16.msra.mxu0 %v5199_v12  ;;  %2530 = vmatpush1.bf16.msra.mxu1 %v5205_v5 }
 0xcdd   :  { %2490 = vmatprep.subr.bf16.mxu0 %v5211_v22  ;;  %2531 = vmatprep.subr.bf16.mxu1 %v5217_v60 }
 0xce0   :  { %2491 = vmatpush1.bf16.msra.mxu0 %v5223_v4  ;;  %2532 = vmatpush1.bf16.msra.mxu1 %v5229_v8 }
 0xce1   :  { %2492 = vmatprep.subr.bf16.mxu0 %v5235_v2  ;;  %2533 = vmatprep.subr.bf16.mxu1 %v5241_v55 }
 0xce4   :  { %2493 = vmatpush1.bf16.msra.mxu0 %v5247_v19  ;;  %2534 = vmatpush1.bf16.msra.mxu1 %v5253_v57 }
 0xce5   :  { %2494 = vmatprep.subr.bf16.mxu0 %v5259_v32  ;;  %2535 = vmatprep.subr.bf16.mxu1 %v5265_v39 }
 0xce8   :  { %2495 = vmatpush1.bf16.msra.mxu0 %v5271_v62  ;;  %2536 = vmatpush1.bf16.msra.mxu1 %v5277_v15 }
 0xce9   :  { %2496 = vmatprep.subr.bf16.mxu0 %v5283_v14  ;;  %2537 = vmatprep.subr.bf16.mxu1 %v5289_v41 }
 0xcec   :  { %2497 = vmatpush1.bf16.msra.mxu0 %v5295_v42  ;;  %2538 = vmatpush1.bf16.msra.mxu1 %v5301_v16 }
 0xced   :  { %2657 = vmatprep.subr.bf16.mxu0 %v5813_v38  ;;  %2698 = vmatprep.subr.bf16.mxu1 %v5814_v48 }
 0xda2   :  { %v2341_v31 = vpop.f32.mrb[48].mxu0  ;;  %v2382_v44 = vpop.f32.mrb[48].mxu1 }
 0xda3   :  { %v2393_v13 = vrot.slane %v2341_v31, 4  ;;  %v2397_v30 = vrot.slane %v2341_v31, 5  ;;  %v2343_v3 = vpop.f32.mrb[49].mxu0  ;;  %v2384_v46 = vpop.f32.mrb[49].mxu1 }
 0xda4   :  { %v2394_v27 = vrot.slane %v2343_v3, 4  ;;  %v2398_v29 = vrot.slane %v2343_v3, 5  ;;  %v2345_v28 = vpop.f32.mrb[50].mxu0  ;;  %v2386_v36 = vpop.f32.mrb[50].mxu1  ;;  %v2396_v56 = vrot.slane %v2384_v46, 4  ;;  %v2400_v31 = vrot.slane %v2384_v46, 5 }
 0xda5   :  { %v2409_v25 = vadd.f32 %v5494_v63, %v2393_v13  ;;  %v2413_v26 = vadd.f32 %v5500_v53, %v2397_v30  ;;  %v2346_v40 = vpop.f32.mrb[51].mxu0  ;;  %v2387_v24 = vpop.f32.mrb[51].mxu1  ;;  %v2395_v13 = vrot.slane %v2382_v44, 4  ;;  %v2399_v30 = vrot.slane %v2382_v44, 5  ;;  %v5518_v3 = vld [vmem:[%s5757_s0 + $0x38] sm:$0xff] }
 0xda6   :  { %v2410_v50 = vadd.f32 %v5506_v6, %v2394_v27  ;;  %v2414_v43 = vadd.f32 %v5512_v49, %v2398_v29  ;;  %v2412_v27 = vadd.f32 %v5518_v3, %v2396_v56  ;;  %v5524_v29 = vld [vmem:[%s5757_s0 + $0x78] sm:$0xff] }
 0xda7   :  { %v3341_v33 = vmul.f32 -1.442695, %v2409_v25  ;;  %v3342_v0 = vmul.f32 -1.442695, %v2413_v26  ;;  %v2416_v28 = vadd.f32 %v5524_v29, %v2400_v31  ;;  %v2411_v46 = vadd.f32 %v2395_v13, %v5086_v23 }
 0xda8   :  { %v3343_v34 = vmul.f32 -1.442695, %v2410_v50  ;;  %v3344_v7 = vmul.f32 -1.442695, %v2414_v43  ;;  %v2415_v44 = vadd.f32 %v2399_v30, %v5094_v47  ;;  %v3345_v36 = vmul.f32 -1.442695, %v2412_v27 }
 0xda9   :  { %3806 = vpow2.f32 %v3341_v33  ;;  %v3346_v25 = vmul.f32 -1.442695, %v2416_v28  ;;  %v2457_v27 = vrot.slane %v5443_v59, 7 }
 0xdaa   :  { %3808 = vpow2.f32 %v3342_v0 }
 0xdab   :  { %3810 = vpow2.f32 %v3343_v34 }
 0xdac   :  { %3812 = vpow2.f32 %v3344_v7 }
 0xdad   :  { %3814 = vtanh.f32 %v2411_v46 }
 0xdae   :  { %3816 = vtanh.f32 %v2415_v44 }
 0xdaf   :  { %3818 = vpow2.f32 %v3345_v36  ;;  %v2458_v36 = vrot.slane %v5445_v45, 7 }
 0xdb0   :  { %3820 = vpow2.f32 %v3346_v25 }
 0xdb3   :  { %v3807_v26 = vpop.eup %3806 }
 0xdb4   :  { %v3809_v40 = vpop.eup %3808  ;;  %v2423_v24 = vadd.f32 1.0, %v3807_v26 }
 0xdb5   :  { %v3811_v50 = vpop.eup %3810  ;;  %v2424_v43 = vadd.f32 1.0, %v3809_v40 }
 0xdb6   :  { %v3813_v33 = vpop.eup %3812  ;;  %3822 = vrcp.f32 %v2423_v24  ;;  %v2435_v0 = vadd.f32 1.0, %v3811_v50 }
 0xdb7   :  { %3824 = vrcp.f32 %v2424_v43  ;;  %v2436_v34 = vadd.f32 1.0, %v3813_v33  ;;  %v3815_v23 = vpop.eup %3814 }
 0xdb8   :  { %3826 = vrcp.f32 %v2435_v0  ;;  %v3817_v47 = vpop.eup %3816 }
 0xdb9   :  { %3828 = vrcp.f32 %v2436_v34  ;;  %v3819_v7 = vpop.eup %3818 }
 0xdba   :  { %v3821_v56 = vpop.eup %3820  ;;  %v2449_v28 = vadd.f32 1.0, %v3819_v7 }
 0xdbb   :  { %v2450_v25 = vadd.f32 1.0, %v3821_v56 }
 0xdbc   :  { %3830 = vrcp.f32 %v2449_v28 }
 0xdbd   :  { %3832 = vrcp.f32 %v2450_v25 }
 0xdc0   :  { %v3823_v31 = vpop.eup %3822 }
 0xdc1   :  { %v3825_v13 = vpop.eup %3824  ;;  %v2463_v30 = vmul.f32 %v3823_v31, %v3815_v23 }
 0xdc2   :  { %v3827_v46 = vpop.eup %3826  ;;  %v2464_v44 = vmul.f32 %v3825_v13, %v3817_v47 }
 0xdc3   :  { %v3829_v26 = vpop.eup %3828  ;;  %v2461_v40 = vmul.f32 %v3827_v46, %v2457_v27 }
 0xdc4   :  { %v2462_v24 = vmul.f32 %v3829_v26, %v2458_v36 }
 0xdc5   :  { %v5531_v50 = vadd.f32 %v2463_v30, %v2461_v40 }
 0xdc6   :  { %v5533_v43 = vadd.f32 %v2464_v44, %v2462_v24  ;;  %v3831_v59 = vpop.eup %3830 }
 0xdc7   :  { %3834 = vtanh.f32 %v5531_v50  ;;  %v3833_v33 = vpop.eup %3832 }
 0xdc8   :  { %3836 = vtanh.f32 %v5533_v43 }
 0xdd1   :  { %v3835_v0 = vpop.eup %3834 }
 0xdd2   :  { %v3837_v34 = vpop.eup %3836  ;;  %v2469_v23 = vmul.f32 %v3835_v0, %v3831_v59 }
 0xdd3   :  { %v2470_v45 = vmul.f32 %v3837_v34, %v3833_v33 }
 0xdd4   :  { %v2471_v47 = vpack.c.bf16 %v2469_v23, %v2469_v23 }
 0xdd5   :  { %v2472_v7 = vpack.c.bf16 %v2470_v45, %v2470_v45 }
 0xdd6   :  { %v2475_v56 = vunpack.c.l.b16 %v2471_v47  ;;  %v3100_v31 = vrot.slane %v2471_v47, 4 }
 0xdd7   :  { %v2476_v13 = vunpack.c.l.b16 %v2472_v7  ;;  %v3101_v30 = vrot.slane %v2472_v7, 4 }
 0xdd8   :  { %v2477_v27 = vrot.slane %v2475_v56, 4  ;;  %v5539_v28 = vsel %vm3182_vm1, %v5451_v54, %v3100_v31 }
 0xdd9   :  { %v2478_v46 = vrot.slane %v2476_v13, 3  ;;  %v5543_v44 = vsel %vm3182_vm1, %v5454_v61, %v3101_v30  ;;  %v2632_v13 = vrot.slane %v5531_v50, 7 }
 0xddb   :  { %v2479_v36 = vsel %vm393_vm0, %v2478_v46, %v2477_v27 }
 0xddc   :  { %v2480_v25 = vpack.c.b16 %v2479_v36, %v2479_v36  ;;  %v2633_v36 = vrot.slane %v5533_v43, 7 }
 0xdde   :  { %2515 = vmatmul.mubr.bf16.vlgmr.msra.gmra.mrb[52].mxu0 %v2480_v25  ;;  %2556 = vmatmul.mubr.bf16.vlgmr.msra.gmra.mrb[52].mxu1 %v2480_v25 }
 0xddf   :  { %2658 = vmatpush1.bf16.msra.mxu0 %v5125_v17  ;;  %2699 = vmatpush1.bf16.msra.mxu1 %v5131_v18 }
 0xde0   :  { %2659 = vmatprep.subr.bf16.mxu0 %v5137_v10  ;;  %2700 = vmatprep.subr.bf16.mxu1 %v5143_v58 }
 0xde1   :  { %2689 = vmatprep.mubr.bf16.mxu0 %v5782_v52  ;;  %2730 = vmatprep.mubr.bf16.mxu1 %v5782_v52 }
 0xde3   :  { %2660 = vmatpush1.bf16.msra.mxu0 %v5151_v11  ;;  %2701 = vmatpush1.bf16.msra.mxu1 %v5157_v21 }
 0xde4   :  { %2661 = vmatprep.subr.bf16.mxu0 %v5163_v1  ;;  %2702 = vmatprep.subr.bf16.mxu1 %v5169_v9 }
 0xde7   :  { %2662 = vmatpush1.bf16.msra.mxu0 %v5175_v51  ;;  %2703 = vmatpush1.bf16.msra.mxu1 %v5181_v20 }
 0xde8   :  { %2663 = vmatprep.subr.bf16.mxu0 %v5187_v35  ;;  %2704 = vmatprep.subr.bf16.mxu1 %v5193_v37 }
 0xdeb   :  { %2664 = vmatpush1.bf16.msra.mxu0 %v5199_v12  ;;  %2705 = vmatpush1.bf16.msra.mxu1 %v5205_v5 }
 0xdec   :  { %2665 = vmatprep.subr.bf16.mxu0 %v5211_v22  ;;  %2706 = vmatprep.subr.bf16.mxu1 %v5217_v60 }
 0xdef   :  { %2666 = vmatpush1.bf16.msra.mxu0 %v5223_v4  ;;  %2707 = vmatpush1.bf16.msra.mxu1 %v5229_v8 }
 0xdf0   :  { %2667 = vmatprep.subr.bf16.mxu0 %v5235_v2  ;;  %2708 = vmatprep.subr.bf16.mxu1 %v5241_v55 }
 0xdf3   :  { %2668 = vmatpush1.bf16.msra.mxu0 %v5247_v19  ;;  %2709 = vmatpush1.bf16.msra.mxu1 %v5253_v57 }
 0xdf4   :  { %2669 = vmatprep.subr.bf16.mxu0 %v5259_v32  ;;  %2710 = vmatprep.subr.bf16.mxu1 %v5265_v39 }
 0xdf7   :  { %2670 = vmatpush1.bf16.msra.mxu0 %v5271_v62  ;;  %2711 = vmatpush1.bf16.msra.mxu1 %v5277_v15 }
 0xdf8   :  { %2671 = vmatprep.subr.bf16.mxu0 %v5283_v14  ;;  %2712 = vmatprep.subr.bf16.mxu1 %v5289_v41  ;;  %v5589_v14 = vld [vmem:[%s5757_s0 + $0x30] sm:$0xff] }
 0xdfb   :  { %2672 = vmatpush1.bf16.msra.mxu0 %v5295_v42  ;;  %2713 = vmatpush1.bf16.msra.mxu1 %v5301_v16  ;;  %v5595_v42 = vld [vmem:[%s5757_s0 + $0x70] sm:$0xff] }
 0xdfc   :  { %2832 = vmatprep.subr.bf16.mxu0 %v5813_v38  ;;  %2873 = vmatprep.subr.bf16.mxu1 %v5814_v48 }
 0xeb1   :  { %v2516_v17 = vpop.f32.mrb[52].mxu0  ;;  %v2557_v18 = vpop.f32.mrb[52].mxu1 }
 0xeb2   :  { %v2568_v10 = vrot.slane %v2516_v17, 3  ;;  %v2572_v58 = vrot.slane %v2516_v17, 4  ;;  %v2518_v11 = vpop.f32.mrb[53].mxu0  ;;  %v2559_v21 = vpop.f32.mrb[53].mxu1  ;;  %v2570_v32 = vrot.slane %v2557_v18, 3  ;;  %v2574_v39 = vrot.slane %v2557_v18, 4 }
 0xeb3   :  { %v2569_v1 = vrot.slane %v2518_v11, 3  ;;  %v2573_v9 = vrot.slane %v2518_v11, 4  ;;  %v2520_v51 = vpop.f32.mrb[54].mxu0  ;;  %v2561_v20 = vpop.f32.mrb[54].mxu1  ;;  %v2571_v19 = vrot.slane %v2559_v21, 3  ;;  %v2575_v57 = vrot.slane %v2559_v21, 4 }
 0xeb4   :  { %v2584_v35 = vadd.f32 %v5494_v63, %v2568_v10  ;;  %v2588_v37 = vadd.f32 %v5500_v53, %v2572_v58  ;;  %v2521_v12 = vpop.f32.mrb[55].mxu0  ;;  %v2562_v5 = vpop.f32.mrb[55].mxu1  ;;  %v2586_v41 = vadd.f32 %v5589_v14, %v2570_v32  ;;  %v2590_v16 = vadd.f32 %v5595_v42, %v2574_v39  ;;  %v4015_v32 = vld [vmem:[%s5756_s1 + $0x8] ss:$16 sps:$4 sm:$0xff]   ;;  %v4018_v39 = vld [vmem:[%s5756_s1 + $0x20] ss:$16 sps:$4 sm:$0xff]  }
 0xeb5   :  { %v2585_v22 = vadd.f32 %v5506_v6, %v2569_v1  ;;  %v2589_v60 = vadd.f32 %v5512_v49, %v2573_v9  ;;  %v2587_v62 = vadd.f32 %v5518_v3, %v2571_v19  ;;  %v2591_v15 = vadd.f32 %v5524_v29, %v2575_v57  ;;  %v4014_v57 = vld [vmem:[%s5756_s1] ss:$16 sps:$4 sm:$0xff]  }
 0xeb6   :  { %v3347_v4 = vmul.f32 -1.442695, %v2584_v35  ;;  %v3348_v8 = vmul.f32 -1.442695, %v2588_v37 }
 0xeb7   :  { %v3349_v2 = vmul.f32 -1.442695, %v2585_v22  ;;  %v3350_v55 = vmul.f32 -1.442695, %v2589_v60  ;;  %v3351_v54 = vmul.f32 -1.442695, %v2587_v62 }
 0xeb8   :  { %3838 = vpow2.f32 %v3347_v4  ;;  %v3352_v61 = vmul.f32 -1.442695, %v2591_v15  ;;  %v4019_v62 = vld [vmem:[%s5756_s1 + $0x28] ss:$16 sps:$4 sm:$0xff]   ;;  %v4020_v15 = vld [vmem:[%s5756_s1 + $0x44] ss:$16 sps:$4 sm:$0xff]  }
 0xeb9   :  { %3840 = vpow2.f32 %v3348_v8 }
 0xeba   :  { %3842 = vpow2.f32 %v3349_v2 }
 0xebb   :  { %3844 = vpow2.f32 %v3350_v55 }
 0xebc   :  { %3846 = vtanh.f32 %v2586_v41  ;;  %v4021_v41 = vld [vmem:[%s5756_s1 + $0x4c] ss:$16 sps:$4 sm:$0xff]  }
 0xebd   :  { %3848 = vtanh.f32 %v2590_v16  ;;  %v4023_v16 = vld [vmem:[%s5756_s1 + $0x48] ss:$16 sps:$4 sm:$0xff]  }
 0xebe   :  { %3850 = vpow2.f32 %v3351_v54  ;;  %v4024_v54 = vld [vmem:[%s5756_s1 + $0x64] ss:$16 sps:$4 sm:$0xff]  }
 0xebf   :  { %3852 = vpow2.f32 %v3352_v61  ;;  %v4025_v61 = vld [vmem:[%s5756_s1 + $0x6c] ss:$16 sps:$4 sm:$0xff]  }
 0xec2   :  { %v3839_v38 = vpop.eup %3838 }
 0xec3   :  { %v3841_v48 = vpop.eup %3840  ;;  %v2598_v26 = vadd.f32 1.0, %v3839_v38  ;;  %v4026_v38 = vld [vmem:[%s5756_s1 + $0x60] ss:$16 sps:$4 sm:$0xff]  }
 0xec4   :  { %v3843_v40 = vpop.eup %3842  ;;  %v2599_v24 = vadd.f32 1.0, %v3841_v48  ;;  %v4027_v48 = vld [vmem:[%s5756_s1 + $0x68] ss:$16 sps:$4 sm:$0xff]  }
 0xec5   :  { %v3845_v59 = vpop.eup %3844  ;;  %3854 = vrcp.f32 %v2598_v26  ;;  %v2610_v33 = vadd.f32 1.0, %v3843_v40  ;;  %v4028_v26 = vld [vmem:[%s5756_s1 + $0x84] ss:$16 sps:$4 sm:$0xff]   ;;  %v4029_v40 = vld [vmem:[%s5756_s1 + $0x8c] ss:$16 sps:$4 sm:$0xff]  }
 0xec6   :  { %3856 = vrcp.f32 %v2599_v24  ;;  %v2611_v0 = vadd.f32 1.0, %v3845_v59  ;;  %v3847_v34 = vpop.eup %3846  ;;  %v4030_v24 = vld [vmem:[%s5756_s1 + $0x80] ss:$16 sps:$4 sm:$0xff]   ;;  %v4031_v59 = vld [vmem:[%s5756_s1 + $0x88] ss:$16 sps:$4 sm:$0xff]  }
 0xec7   :  { %3858 = vrcp.f32 %v2610_v33  ;;  %v3849_v23 = vpop.eup %3848  ;;  %v4032_v33 = vld [vmem:[%s5756_s1 + $0xa4] ss:$16 sps:$4 sm:$0xff]  }
 0xec8   :  { %3860 = vrcp.f32 %v2611_v0  ;;  %v3851_v45 = vpop.eup %3850  ;;  %v4033_v0 = vld [vmem:[%s5756_s1 + $0xac] ss:$16 sps:$4 sm:$0xff]  }
 0xec9   :  { %v3853_v47 = vpop.eup %3852  ;;  %v2624_v30 = vadd.f32 1.0, %v3851_v45  ;;  %v4036_v45 = vld [vmem:[%s5756_s1 + $0xc4] ss:$16 sps:$4 sm:$0xff]  }
 0xeca   :  { %v2625_v25 = vadd.f32 1.0, %v3853_v47  ;;  %v4037_v47 = vld [vmem:[%s5756_s1 + $0xcc] ss:$16 sps:$4 sm:$0xff]  }
 0xecb   :  { %3862 = vrcp.f32 %v2624_v30  ;;  %v4042_v30 = vld [vmem:[%s5756_s1 + $0xe0] ss:$16 sps:$4 sm:$0xff]  }
 0xecc   :  { %3864 = vrcp.f32 %v2625_v25 }
 0xecf   :  { %v3855_v7 = vpop.eup %3854 }
 0xed0   :  { %v3857_v56 = vpop.eup %3856  ;;  %v2638_v31 = vmul.f32 %v3855_v7, %v3847_v34  ;;  %v4034_v34 = vld [vmem:[%s5756_s1 + $0xa0] ss:$16 sps:$4 sm:$0xff]  }
 0xed1   :  { %v3859_v27 = vpop.eup %3858  ;;  %v2639_v46 = vmul.f32 %v3857_v56, %v3849_v23  ;;  %v4035_v23 = vld [vmem:[%s5756_s1 + $0xa8] ss:$16 sps:$4 sm:$0xff]   ;;  %v4038_v7 = vld [vmem:[%s5756_s1 + $0xc0] ss:$16 sps:$4 sm:$0xff]  }
 0xed2   :  { %v3861_v17 = vpop.eup %3860  ;;  %v2636_v18 = vmul.f32 %v3859_v27, %v2632_v13  ;;  %v4039_v56 = vld [vmem:[%s5756_s1 + $0xc8] ss:$16 sps:$4 sm:$0xff]   ;;  %v4041_v13 = vld [vmem:[%s5756_s1 + $0xec] ss:$16 sps:$4 sm:$0xff]  }
 0xed3   :  { %v2637_v10 = vmul.f32 %v3861_v17, %v2633_v36  ;;  %v4043_v27 = vld [vmem:[%s5756_s1 + $0xe8] ss:$16 sps:$4 sm:$0xff]  }
 0xed4   :  { %v5600_v58 = vadd.f32 %v2638_v31, %v2636_v18  ;;  %v4040_v31 = vld [vmem:[%s5756_s1 + $0xe4] ss:$16 sps:$4 sm:$0xff]  }
 0xed5   :  { %v5602_v11 = vadd.f32 %v2639_v46, %v2637_v10  ;;  %v3863_v50 = vpop.eup %3862 }
 0xed6   :  { %3866 = vtanh.f32 %v5600_v58  ;;  %v3865_v21 = vpop.eup %3864 }
 0xed7   :  { %3868 = vtanh.f32 %v5602_v11 }
 0xee0   :  { %v3867_v1 = vpop.eup %3866 }
 0xee1   :  { %v3869_v9 = vpop.eup %3868  ;;  %v2644_v51 = vmul.f32 %v3867_v1, %v3863_v50 }
 0xee2   :  { %v2645_v43 = vmul.f32 %v3869_v9, %v3865_v21 }
 0xee3   :  { %v2646_v20 = vpack.c.bf16 %v2644_v51, %v2644_v51 }
 0xee4   :  { %v2647_v35 = vpack.c.bf16 %v2645_v43, %v2645_v43 }
 0xee5   :  { %v2650_v37 = vunpack.c.l.b16 %v2646_v20  ;;  %v3102_v12 = vrot.slane %v2646_v20, 4 }
 0xee6   :  { %v2651_v5 = vunpack.c.l.b16 %v2647_v35  ;;  %v3103_v22 = vrot.slane %v2647_v35, 4 }
 0xee7   :  { %v2652_v60 = vrot.slane %v2650_v37, 5  ;;  %v5608_v4 = vsel %vm3198_vm6, %v5539_v28, %v3102_v12  ;;  %v4016_v28 = vld [vmem:[%s5756_s1 + $0x24] ss:$16 sps:$4 sm:$0xff]  }
 0xee8   :  { %v2653_v8 = vrot.slane %v2651_v5, 4  ;;  %v5611_v2 = vsel %vm3198_vm6, %v5543_v44, %v3103_v22  ;;  %v4017_v44 = vld [vmem:[%s5756_s1 + $0x2c] ss:$16 sps:$4 sm:$0xff]  }
 0xeea   :  { %v2654_v55 = vsel %vm393_vm0, %v2653_v8, %v2652_v60 }
 0xeeb   :  { %v2655_v19 = vpack.c.b16 %v2654_v55, %v2654_v55 }
 0xeed   :  { %2690 = vmatmul.mubr.bf16.vlgmr.msra.gmra.mrb[56].mxu0 %v2655_v19  ;;  %2731 = vmatmul.mubr.bf16.vlgmr.msra.gmra.mrb[56].mxu1 %v2655_v19 }
 0xeee   :  { %2833 = vmatpush1.bf16.msra.mxu0 %v4014_v57  ;;  %2874 = vmatpush1.bf16.msra.mxu1 %v4015_v32 }
 0xeef   :  { %2834 = vmatprep.subr.bf16.mxu0 %v4016_v28  ;;  %2875 = vmatprep.subr.bf16.mxu1 %v4017_v44 }
 0xef0   :  { %2864 = vmatprep.mubr.bf16.mxu0 %v5782_v52  ;;  %2905 = vmatprep.mubr.bf16.mxu1 %v5782_v52  ;;  %v4022_v52 = vld [vmem:[%s5756_s1 + $0x40] ss:$16 sps:$4 sm:$0xff]  }
 0xef2   :  { %2835 = vmatpush1.bf16.msra.mxu0 %v4018_v39  ;;  %2876 = vmatpush1.bf16.msra.mxu1 %v4019_v62 }
 0xef3   :  { %2836 = vmatprep.subr.bf16.mxu0 %v4020_v15  ;;  %2877 = vmatprep.subr.bf16.mxu1 %v4021_v41 }
 0xef6   :  { %2837 = vmatpush1.bf16.msra.mxu0 %v4022_v52  ;;  %2878 = vmatpush1.bf16.msra.mxu1 %v4023_v16 }
 0xef7   :  { %2838 = vmatprep.subr.bf16.mxu0 %v4024_v54  ;;  %2879 = vmatprep.subr.bf16.mxu1 %v4025_v61 }
 0xefa   :  { %2839 = vmatpush1.bf16.msra.mxu0 %v4026_v38  ;;  %2880 = vmatpush1.bf16.msra.mxu1 %v4027_v48 }
 0xefb   :  { %2840 = vmatprep.subr.bf16.mxu0 %v4028_v26  ;;  %2881 = vmatprep.subr.bf16.mxu1 %v4029_v40 }
 0xefe   :  { %2841 = vmatpush1.bf16.msra.mxu0 %v4030_v24  ;;  %2882 = vmatpush1.bf16.msra.mxu1 %v4031_v59 }
 0xeff   :  { %2842 = vmatprep.subr.bf16.mxu0 %v4032_v33  ;;  %2883 = vmatprep.subr.bf16.mxu1 %v4033_v0 }
 0xf02   :  { %2843 = vmatpush1.bf16.msra.mxu0 %v4034_v34  ;;  %2884 = vmatpush1.bf16.msra.mxu1 %v4035_v23 }
 0xf03   :  { %2844 = vmatprep.subr.bf16.mxu0 %v4036_v45  ;;  %2885 = vmatprep.subr.bf16.mxu1 %v4037_v47  ;;  %v2807_v47 = vrot.slane %v5600_v58, 7 }
 0xf06   :  { %2845 = vmatpush1.bf16.msra.mxu0 %v4038_v7  ;;  %2886 = vmatpush1.bf16.msra.mxu1 %v4039_v56 }
 0xf07   :  { %2846 = vmatprep.subr.bf16.mxu0 %v4040_v31  ;;  %2887 = vmatprep.subr.bf16.mxu1 %v4041_v13  ;;  %v2808_v13 = vrot.slane %v5602_v11, 7 }
 0xf0a   :  { %2847 = vmatpush1.bf16.msra.mxu0 %v4042_v30  ;;  %2888 = vmatpush1.bf16.msra.mxu1 %v4043_v27 }
 0xfc0   :  { %v2691_v46 = vpop.f32.mrb[56].mxu0  ;;  %v2732_v36 = vpop.f32.mrb[56].mxu1 }
 0xfc1   :  { %v2743_v25 = vrot.slane %v2691_v46, 2  ;;  %v2747_v17 = vrot.slane %v2691_v46, 3  ;;  %v2693_v18 = vpop.f32.mrb[57].mxu0  ;;  %v2734_v10 = vpop.f32.mrb[57].mxu1  ;;  %v2745_v57 = vrot.slane %v2732_v36, 2  ;;  %v2749_v32 = vrot.slane %v2732_v36, 3 }
 0xfc2   :  { %v2744_v50 = vrot.slane %v2693_v18, 2  ;;  %v2748_v21 = vrot.slane %v2693_v18, 3  ;;  %v2695_v1 = vpop.f32.mrb[58].mxu0  ;;  %v2736_v9 = vpop.f32.mrb[58].mxu1  ;;  %v2746_v55 = vrot.slane %v2734_v10, 2  ;;  %v2750_v19 = vrot.slane %v2734_v10, 3 }
 0xfc3   :  { %v2759_v51 = vadd.f32 %v5494_v63, %v2743_v25  ;;  %v2763_v43 = vadd.f32 %v5500_v53, %v2747_v17  ;;  %v2696_v20 = vpop.f32.mrb[59].mxu0  ;;  %v2737_v35 = vpop.f32.mrb[59].mxu1  ;;  %v2761_v39 = vadd.f32 %v5589_v14, %v2745_v57  ;;  %v2765_v62 = vadd.f32 %v5595_v42, %v2749_v32 }
 0xfc4   :  { %v2760_v37 = vadd.f32 %v5506_v6, %v2744_v50  ;;  %v2764_v12 = vadd.f32 %v5512_v49, %v2748_v21  ;;  %v2762_v28 = vadd.f32 %v5518_v3, %v2746_v55  ;;  %v2766_v44 = vadd.f32 %v5524_v29, %v2750_v19 }
 0xfc5   :  { %v3353_v5 = vmul.f32 -1.442695, %v2759_v51  ;;  %v3354_v22 = vmul.f32 -1.442695, %v2763_v43 }
 0xfc6   :  { %v3355_v60 = vmul.f32 -1.442695, %v2760_v37  ;;  %v3356_v8 = vmul.f32 -1.442695, %v2764_v12  ;;  %v3357_v15 = vmul.f32 -1.442695, %v2762_v28 }
 0xfc7   :  { %3870 = vpow2.f32 %v3353_v5  ;;  %v3358_v41 = vmul.f32 -1.442695, %v2766_v44 }
 0xfc8   :  { %3872 = vpow2.f32 %v3354_v22 }
 0xfc9   :  { %3874 = vpow2.f32 %v3355_v60 }
 0xfca   :  { %3876 = vpow2.f32 %v3356_v8 }
 0xfcb   :  { %3878 = vtanh.f32 %v2761_v39 }
 0xfcc   :  { %3880 = vtanh.f32 %v2765_v62 }
 0xfcd   :  { %3882 = vpow2.f32 %v3357_v15 }
 0xfce   :  { %3884 = vpow2.f32 %v3358_v41 }
 0xfd1   :  { %v3871_v52 = vpop.eup %3870 }
 0xfd2   :  { %v3873_v16 = vpop.eup %3872  ;;  %v2773_v54 = vadd.f32 1.0, %v3871_v52 }
 0xfd3   :  { %v3875_v61 = vpop.eup %3874  ;;  %v2774_v38 = vadd.f32 1.0, %v3873_v16 }
 0xfd4   :  { %v3877_v48 = vpop.eup %3876  ;;  %3886 = vrcp.f32 %v2773_v54  ;;  %v2785_v26 = vadd.f32 1.0, %v3875_v61 }
 0xfd5   :  { %3888 = vrcp.f32 %v2774_v38  ;;  %v2786_v40 = vadd.f32 1.0, %v3877_v48  ;;  %v3879_v24 = vpop.eup %3878 }
 0xfd6   :  { %3890 = vrcp.f32 %v2785_v26  ;;  %v3881_v59 = vpop.eup %3880 }
 0xfd7   :  { %3892 = vrcp.f32 %v2786_v40  ;;  %v3883_v33 = vpop.eup %3882 }
 0xfd8   :  { %v3885_v0 = vpop.eup %3884  ;;  %v2799_v7 = vadd.f32 1.0, %v3883_v33 }
 0xfd9   :  { %v2800_v30 = vadd.f32 1.0, %v3885_v0 }
 0xfda   :  { %3894 = vrcp.f32 %v2799_v7 }
 0xfdb   :  { %3896 = vrcp.f32 %v2800_v30 }
 0xfde   :  { %v3887_v34 = vpop.eup %3886 }
 0xfdf   :  { %v3889_v23 = vpop.eup %3888  ;;  %v2813_v45 = vmul.f32 %v3887_v34, %v3879_v24 }
 0xfe0   :  { %v3891_v56 = vpop.eup %3890  ;;  %v2814_v31 = vmul.f32 %v3889_v23, %v3881_v59 }
 0xfe1   :  { %v3893_v27 = vpop.eup %3892  ;;  %v2811_v46 = vmul.f32 %v3891_v56, %v2807_v47 }
 0xfe2   :  { %v2812_v36 = vmul.f32 %v3893_v27, %v2808_v13 }
 0xfe3   :  { %v5716_v25 = vadd.f32 %v2813_v45, %v2811_v46 }
 0xfe4   :  { %v5718_v17 = vadd.f32 %v2814_v31, %v2812_v36  ;;  %v3895_v58 = vpop.eup %3894 }
 0xfe5   :  { %3898 = vtanh.f32 %v5716_v25  ;;  %v3897_v18 = vpop.eup %3896 }
 0xfe6   :  { %3900 = vtanh.f32 %v5718_v17 }
 0xfef   :  { %v3899_v10 = vpop.eup %3898 }
 0xff0   :  { %v3901_v50 = vpop.eup %3900  ;;  %v2819_v21 = vmul.f32 %v3899_v10, %v3895_v58 }
 0xff1   :  { %v2820_v11 = vmul.f32 %v3901_v50, %v3897_v18  ;;  %v2982_v18 = vrot.slane %v5716_v25, 7  ;;  %v3003_v25 = vlaneseq }
 0xff2   :  { %v2821_v1 = vpack.c.bf16 %v2819_v21, %v2819_v21 }
 0xff3   :  { %v2822_v9 = vpack.c.bf16 %v2820_v11, %v2820_v11  ;;  %v2983_v11 = vrot.slane %v5718_v17, 7 }
 0xff4   :  { %v2825_v51 = vunpack.c.l.b16 %v2821_v1  ;;  %v3106_v43 = vrot.slane %v2821_v1, 4 }
 0xff5   :  { %v2826_v20 = vunpack.c.l.b16 %v2822_v9  ;;  %v3107_v35 = vrot.slane %v2822_v9, 4 }
 0xff6   :  { %v2827_v37 = vrot.slane %v2825_v51, 6  ;;  %v5724_v12 = vsel %vm3196_vm4, %v5608_v4, %v3106_v43 }
 0xff7   :  { %v2828_v5 = vrot.slane %v2826_v20, 5  ;;  %v5728_v22 = vsel %vm3196_vm4, %v5611_v2, %v3107_v35 }
 0xff9   :  { %v2829_v60 = vsel %vm393_vm0, %v2828_v5, %v2827_v37  ;;  %v4046_v5 = vmov 1966171168  }
 0xffa   :  { %v2830_v8 = vpack.c.b16 %v2829_v60, %v2829_v60  ;;  %v3001_v60 = vunpack.c.l.s4 %v4046_v5 }
 0xffc   :  { %2865 = vmatmul.mubr.bf16.vlgmr.msra.gmra.mrb[60].mxu0 %v2830_v8  ;;  %2906 = vmatmul.mubr.bf16.vlgmr.msra.gmra.mrb[60].mxu1 %v2830_v8  ;;  %v3002_v8 = vunpack.c.0.s8 %v3001_v60 }
0x10cf   :  { %v2866_v55 = vpop.f32.mrb[60].mxu0  ;;  %v2907_v19 = vpop.f32.mrb[60].mxu1 }
0x10d0   :  { %v2918_v57 = vrot.slane %v2866_v55, 1  ;;  %v2922_v32 = vrot.slane %v2866_v55, 2  ;;  %v2868_v28 = vpop.f32.mrb[61].mxu0  ;;  %v2909_v44 = vpop.f32.mrb[61].mxu1  ;;  %v2920_v33 = vrot.slane %v2907_v19, 1  ;;  %v2924_v0 = vrot.slane %v2907_v19, 2 }
0x10d1   :  { %v2919_v39 = vrot.slane %v2868_v28, 1  ;;  %v2923_v62 = vrot.slane %v2868_v28, 2  ;;  %v2870_v4 = vpop.f32.mrb[62].mxu0  ;;  %v2911_v15 = vpop.f32.mrb[62].mxu1  ;;  %v2921_v24 = vrot.slane %v2909_v44, 1  ;;  %v2925_v59 = vrot.slane %v2909_v44, 2 }
0x10d2   :  { %v2934_v41 = vadd.f32 %v5494_v63, %v2918_v57  ;;  %v2938_v2 = vadd.f32 %v5500_v53, %v2922_v32  ;;  %v2871_v52 = vpop.f32.mrb[63].mxu0  ;;  %v2912_v16 = vpop.f32.mrb[63].mxu1  ;;  %v3004_v55 = vshrl.u32 %v3003_v25, 7 }
0x10d3   :  { %v2935_v54 = vadd.f32 %v5506_v6, %v2919_v39  ;;  %v2939_v61 = vadd.f32 %v5512_v49, %v2923_v62  ;;  %v2937_v63 = vadd.f32 %v5518_v3, %v2921_v24  ;;  %v2941_v53 = vadd.f32 %v5524_v29, %v2925_v59 }
0x10d4   :  { %v3359_v38 = vmul.f32 -1.442695, %v2934_v41  ;;  %v3360_v48 = vmul.f32 -1.442695, %v2938_v2  ;;  %v2936_v6 = vadd.f32 %v5589_v14, %v2920_v33  ;;  %v2940_v49 = vadd.f32 %v5595_v42, %v2924_v0 }
0x10d5   :  { %v3361_v26 = vmul.f32 -1.442695, %v2935_v54  ;;  %v3362_v40 = vmul.f32 -1.442695, %v2939_v61  ;;  %v3363_v34 = vmul.f32 -1.442695, %v2937_v63  ;;  %v3005_v32 = vsub.s32 %v3002_v8, %v3004_v55 }
0x10d6   :  { %3902 = vpow2.f32 %v3359_v38  ;;  %v3364_v23 = vmul.f32 -1.442695, %v2941_v53  ;;  %v4047_v39 = vmov 1935823168  }
0x10d7   :  { %3904 = vpow2.f32 %v3360_v48  ;;  %v3033_v62 = vunpack.c.l.s4 %v4047_v39 }
0x10d8   :  { %3906 = vpow2.f32 %v3361_v26 }
0x10d9   :  { %3908 = vpow2.f32 %v3362_v40  ;;  %v3034_v52 = vunpack.c.0.s8 %v3033_v62 }
0x10da   :  { %3910 = vtanh.f32 %v2936_v6 }
0x10db   :  { %3912 = vtanh.f32 %v2940_v49  ;;  %v3037_v0 = vsub.s32 %v3034_v52, %v3004_v55 }
0x10dc   :  { %3914 = vpow2.f32 %v3363_v34 }
0x10dd   :  { %3916 = vpow2.f32 %v3364_v23 }
0x10e0   :  { %v3903_v45 = vpop.eup %3902 }
0x10e1   :  { %v3905_v47 = vpop.eup %3904  ;;  %v2948_v7 = vadd.f32 1.0, %v3903_v45 }
0x10e2   :  { %v3907_v56 = vpop.eup %3906  ;;  %v2949_v31 = vadd.f32 1.0, %v3905_v47 }
0x10e3   :  { %v3909_v13 = vpop.eup %3908  ;;  %3918 = vrcp.f32 %v2948_v7  ;;  %v2960_v3 = vadd.f32 1.0, %v3907_v56 }
0x10e4   :  { %3920 = vrcp.f32 %v2949_v31  ;;  %v2961_v29 = vadd.f32 1.0, %v3909_v13  ;;  %v3911_v14 = vpop.eup %3910 }
0x10e5   :  { %3922 = vrcp.f32 %v2960_v3  ;;  %v3913_v42 = vpop.eup %3912 }
0x10e6   :  { %3924 = vrcp.f32 %v2961_v29  ;;  %v3915_v30 = vpop.eup %3914 }
0x10e7   :  { %v3917_v27 = vpop.eup %3916  ;;  %v2974_v10 = vadd.f32 1.0, %v3915_v30 }
0x10e8   :  { %v2975_v1 = vadd.f32 1.0, %v3917_v27 }
0x10e9   :  { %3926 = vrcp.f32 %v2974_v10 }
0x10ea   :  { %3928 = vrcp.f32 %v2975_v1 }
0x10ed   :  { %v3919_v46 = vpop.eup %3918 }
0x10ee   :  { %v3921_v36 = vpop.eup %3920  ;;  %v2988_v58 = vmul.f32 %v3919_v46, %v3911_v14 }
0x10ef   :  { %v3923_v50 = vpop.eup %3922  ;;  %v2989_v21 = vmul.f32 %v3921_v36, %v3913_v42 }
0x10f0   :  { %v3925_v9 = vpop.eup %3924  ;;  %v2986_v51 = vmul.f32 %v3923_v50, %v2982_v18 }
0x10f1   :  { %v2987_v43 = vmul.f32 %v3925_v9, %v2983_v11 }
0x10f2   :  { %v2990_v20 = vadd.f32 %v2988_v58, %v2986_v51 }
0x10f3   :  { %v2991_v35 = vadd.f32 %v2989_v21, %v2987_v43  ;;  %v3927_v19 = vpop.eup %3926 }
0x10f4   :  { %3930 = vtanh.f32 %v2990_v20  ;;  %3086 = vst [vmem:[#allocation3 - $0x7] sm:$0x80] %v2990_v20  ;;  %v3929_v17 = vpop.eup %3928 }
0x10f5   :  { %3932 = vtanh.f32 %v2991_v35  ;;  %v3083_v37 = vrot.slane %v2991_v35, 7 }
0x10f7   :  { %3087 = vst [vmem:[#allocation3 + $0x1] sm:$0x1] %v3083_v37 }
0x10fe   :  { %v3931_v57 = vpop.eup %3930 }
0x10ff   :  { %v3933_v28 = vpop.eup %3932  ;;  %v2994_v44 = vmul.f32 %v3931_v57, %v3927_v19 }
0x1100   :  { %v2995_v4 = vmul.f32 %v3933_v28, %v3929_v17 }
0x1101   :  { %v2996_v15 = vpack.c.bf16 %v2994_v44, %v2994_v44 }
0x1102   :  { %v2997_v41 = vpack.c.bf16 %v2995_v4, %v2995_v4 }
0x1103   :  { %v3006_v2 = vrot.slane %v2996_v15, %v3005_v32  ;;  %v3108_v16 = vrot.slane %v2996_v15, 4 }
0x1104   :  { %v3022_v54 = vrot.slane %v2997_v41, %v3005_v32  ;;  %v3109_v61 = vrot.slane %v2997_v41, 4 }
0x1105   :  { %v3007_v38 = vcombine.high %v3006_v2, %v3006_v2  ;;  %v3213_v48 = vsel %vm3212_vm9, %v5724_v12, %v3108_v16 }
0x1106   :  { %v3023_v26 = vcombine.high %v3022_v54, %v3022_v54  ;;  %v3214_v40 = vsel %vm3212_vm9, %v5728_v22, %v3109_v61  ;;  %v3366_v24 = vcombine.low %v3213_v48, %v3213_v48  ;;  %v3367_v59 = vcombine.high %v3213_v48, %v3213_v48 }
0x1107   :  { %v3014_v33 = vrot.slane %v3007_v38, %v3005_v32  ;;  %v3368_v63 = vcombine.low %v3214_v40, %v3214_v40  ;;  %v3369_v53 = vcombine.high %v3214_v40, %v3214_v40 }
0x1108   :  { %v3030_v6 = vrot.slane %v3023_v26, %v3005_v32  ;;  %3229 = vst [vmem:[%s5758_s2] sm:$0xf] %v3366_v24  ;;  %3230 = vst [vmem:[%s5758_s2 + $0x4] sm:$0xf] %v3367_v59 }
0x1109   :  { %v3015_v49 = vcombine.high %v3014_v33, %v3014_v33  ;;  %3231 = vst [vmem:[%s5758_s2 + $0x8] sm:$0xf] %v3368_v63  ;;  %3232 = vst [vmem:[%s5758_s2 + $0xc] sm:$0xf] %v3369_v53 }
0x110a   :  { %v3031_v12 = vcombine.high %v3030_v6, %v3030_v6 }
0x110b   :  { %v3038_v22 = vrot.slane %v3015_v49, %v3037_v0 }
0x110c   :  { %v3052_v34 = vrot.slane %v3031_v12, %v3037_v0 }
0x110d   :  { %v3045_v23 = vrot.slane %v3038_v22, %v3037_v0 }
0x110e   :  { %v3059_v45 = vrot.slane %v3052_v34, %v3037_v0 }
0x110f   :  { %v3060_v47 = vunpack.c.l.b16 %v3045_v23 }
0x1110   :  { %v3061_v7 = vunpack.c.l.b16 %v3059_v45 }
0x1111   :  { %v3062_v56 = vrot.slane %v3060_v47, 1 }
0x1113   :  { %v3063_v31 = vsel %vm393_vm0, %v3061_v7, %v3062_v56 }
0x1114   :  { %v3064_v13 = vpack.c.b16 %v3063_v31, %v3063_v31 }
0x1116   :  { %v3071_v3 = vrot.slane %v3064_v13, %v3005_v32 }
0x1118   :  { %3365 = vst.sshfl [vmem:[#allocation2] sm:$0x1 pattern:$0x73625140] %v3071_v3 }

</bundles_post_ra>
